<compile_context>
chip_gen: v5e
topology: v5e:2x2
jax: 0.10.0
libtpu: 0.0.40
codegen_flags: <defaults>
</compile_context>

<pallas_src>
import math

import jax
import jax.numpy as jnp
from jax import lax
from jax.experimental import pallas as pl
from jax.experimental.pallas import tpu as pltpu


def rits_kernel(bounds_ref,                     # SMEM (2,)  [lower, upper]
                x_ref, mx_ref, mbar_ref, w_ref,  # VMEM (TC,B,2) x4
                gh_ref,                         # (TC,B,H)   precomputed gamma_h
                alpha_ref,                      # (TC,B,2)   precomputed combine weights
                zobs_ref,                       # (TC,B,2)   x_obs@Wfeat_obs^T + b_feat
                gin_ref,                        # (TC,B,4H)  m@Wih_m^T + b_ih + b_hh (perm'd)
                Wcat_ref,                       # (H, 4H+2)  [W_hh^T (perm'd) | W_hist^T]
                bhist_ref,                      # (1,2)
                WfxcT_ref,                      # (2,2)      feat_reg x_c weights (transposed)
                WiccT_ref,                      # (2,4H)     LSTM c_c weights (transposed, perm'd)
                loss_ref, imp_ref,              # SMEM (1,1), VMEM (TC,B,2)
                h_sc, c_sc, acc_sc):            # VMEM scratch: (B,H),(B,H),(B,2)
    TC, B, _ = x_ref.shape
    H = Wcat_ref.shape[0]
    G = 4 * H

    @pl.when(pl.program_id(0) == 0)
    def _init():
        h_sc[...] = jnp.zeros_like(h_sc)
        c_sc[...] = jnp.zeros_like(c_sc)
        acc_sc[...] = jnp.zeros_like(acc_sc)

    lb = bounds_ref[0]
    ub = bounds_ref[1]

    # Hoisted once per chunk (loop-invariant).
    Wcat = Wcat_ref[...]                                       # (H, 4H+2)
    bhist_b = jnp.broadcast_to(bhist_ref[...], (B, 2))         # (B, 2)
    wf0 = WfxcT_ref[0:1, :]                                    # (1, 2)
    wf1 = WfxcT_ref[1:2, :]                                    # (1, 2)
    wi0 = WiccT_ref[0:1, :]                                    # (1, 4H)
    wi1 = WiccT_ref[1:2, :]                                    # (1, 4H)

    def step(t, carry):
        h, c, acc = carry
        x = x_ref[t]            # (B, 2)
        mx = mx_ref[t]          # (B, 2)   m*x  (precomputed)
        mbar = mbar_ref[t]      # (B, 2)   1-m  (precomputed)
        w = w_ref[t]            # (B, 2)   loss weights (mask / denom)

        # temporal decay of hidden state (gamma_h precomputed)
        h = h * gh_ref[t]

        # single fused MXU dot: cols 0:4H -> gate term, 4H:4H+2 -> hist reg
        hw = jnp.dot(h, Wcat, preferred_element_type=jnp.float32)   # (B, 4H+2)
        x_h = jnp.clip(hw[:, G:G + 2] + bhist_b, lb, ub)

        x_c = mx + mbar * x_h

        # feature regression: x_c part as VPU FMAs, x_obs part precomputed
        z_h = jnp.clip(x_c[:, 0:1] * wf0 + x_c[:, 1:2] * wf1 + zobs_ref[t],
                       lb, ub)

        # combine (alpha precomputed from gamma_x and m)
        a = alpha_ref[t]
        c_h = jnp.clip(a * z_h + (1.0 - a) * x_h, lb, ub)

        c_c = mx + mbar * c_h

        # masked-L1 loss accumulation, normalization folded into w (no XLU here)
        acc = acc + (jnp.abs(x - x_h) + jnp.abs(x - z_h) + jnp.abs(x - c_h)) * w

        # LSTMCell: mask/bias precomputed, c_c term as FMAs, h term from fused dot.
        # Gate order permuted in wrapper to [i, f, o, g] -> one sigmoid + one tanh.
        gates = gin_ref[t] + c_c[:, 0:1] * wi0 + c_c[:, 1:2] * wi1 + hw[:, 0:G]
        sg = jax.nn.sigmoid(gates[:, 0:3 * H])
        g_g = jnp.tanh(gates[:, 3 * H:G])
        i_g = sg[:, 0:H]
        f_g = sg[:, H:2 * H]
        o_g = sg[:, 2 * H:3 * H]
        c = f_g * c + i_g * g_g
        h = o_g * jnp.tanh(c)

        imp_ref[t] = c_c
        return h, c, acc

    h, c, acc = lax.fori_loop(0, TC, step,
                              (h_sc[...], c_sc[...], acc_sc[...]),
                              unroll=True)
    h_sc[...] = h
    c_sc[...] = c
    acc_sc[...] = acc
    # Cumulative loss written every chunk (output block index constant -> resident).
    loss_ref[0, 0] = jnp.sum(acc)


def _pick_chunk(T, max_chunk=16):
    for c in range(min(T, max_chunk), 0, -1):
        if T % c == 0:
            return c
    return T


def rits_forward(params, data, no_hr_loss=False):
    nsr = data['nsr_nhr_values']    # (B, T, 2)
    xobs = data['dw_hd_values']     # (B, T, 31)
    masks = data['masks']           # (B, T, 2)
    deltas = data['deltas']         # (B, T, 2)
    max_sr = data['max_sr']
    sr_mean = data['sr_mean']
    sr_std = data['sr_std']

    upper = (1.5 * max_sr - sr_mean) / sr_std
    lower = (0.0 - sr_mean) / sr_std
    bounds = jnp.stack([lower, upper]).astype(jnp.float32)   # (2,)

    B, T, _ = nsr.shape
    H = params['W_h'].shape[0]
    G = 4 * H

    # time-major layouts for the kernel
    x_t = jnp.transpose(nsr, (1, 0, 2)).astype(jnp.float32)       # (T,B,2)
    xobs_t = jnp.transpose(xobs, (1, 0, 2)).astype(jnp.float32)   # (T,B,31)
    m_t = jnp.transpose(masks, (1, 0, 2)).astype(jnp.float32)     # (T,B,2)
    d_t = jnp.transpose(deltas, (1, 0, 2)).astype(jnp.float32)    # (T,B,2)

    mx_t = m_t * x_t                 # (T,B,2)  precomputed m*x
    mbar_t = 1.0 - m_t               # (T,B,2)  precomputed (1-m)

    # fixed buffer masks (parameter setup, same as the PyTorch buffers)
    eye2 = jnp.eye(2, dtype=jnp.float32)
    mfeat = jnp.ones((2, 33), jnp.float32).at[0, 0].set(0.0).at[1, 1].set(0.0)
    Wx_masked = params['W_x'] * eye2
    Wfeat_masked = params['W_feat'] * mfeat

    # gate permutation [i, f, o, g] so sigmoid covers one contiguous 3H slab
    perm = jnp.concatenate([jnp.arange(0, H), jnp.arange(H, 2 * H),
                            jnp.arange(3 * H, 4 * H), jnp.arange(2 * H, 3 * H)])
    W_ih_p = params['W_ih'][perm]            # (4H, 4)
    W_hh_p = params['W_hh'][perm]            # (4H, H)
    b_ih_p = params['b_ih'][perm]
    b_hh_p = params['b_hh'][perm]

    # ---- hoisted input-only matmuls: one batched (T*B, K) matmul each ----
    d2 = d_t.reshape(T * B, 2)
    m2 = m_t.reshape(T * B, 2)
    xobs2 = xobs_t.reshape(T * B, 31)

    gamma_h = jnp.exp(-jnp.maximum(d2 @ params['W_h'].T + params['b_h'], 0.0)
                      ).reshape(T, B, H)
    gamma_x = jnp.exp(-jnp.maximum(d2 @ Wx_masked.T + params['b_x'], 0.0))   # (T*B,2)
    alpha = (gamma_x @ params['W_comb'][:, 0:2].T
             + m2 @ params['W_comb'][:, 2:4].T
             + params['b_comb']).reshape(T, B, 2)
    zobs = (xobs2 @ Wfeat_masked[:, 2:33].T + params['b_feat']).reshape(T, B, 2)
    gates_in = (m2 @ W_ih_p[:, 2:4].T + b_ih_p + b_hh_p).reshape(T, B, G)

    # ---- loss weights: mask / per-step denominator (column 0 only if no_hr_loss) ----
    if no_hr_loss:
        denom = jnp.sum(m_t[:, :, 0], axis=1) + 1e-5                  # (T,)
        w_loss = (m_t * jnp.array([1.0, 0.0], jnp.float32)) / denom[:, None, None]
    else:
        denom = jnp.sum(m_t, axis=(1, 2)) + 1e-5                      # (T,)
        w_loss = m_t / denom[:, None, None]
    w_loss = w_loss.astype(jnp.float32)

    # pre-transposed / fused recurrent weights (no in-kernel transposes)
    WhistT = params['W_hist'].T.astype(jnp.float32)          # (H, 2)
    WhhT = W_hh_p.T.astype(jnp.float32)                      # (H, 4H)  perm'd
    Wcat = jnp.concatenate([WhhT, WhistT], axis=1)           # (H, 4H+2)
    bhist = params['b_hist'].reshape(1, -1).astype(jnp.float32)
    WfxcT = Wfeat_masked[:, 0:2].T.astype(jnp.float32)       # (2, 2)
    WiccT = W_ih_p[:, 0:2].T.astype(jnp.float32)             # (2, 4H)  perm'd

    # ---- T-chunk grid: stream per-step tensors, carry h/c/acc in scratch ----
    TC = _pick_chunk(T, max_chunk=16)
    n_chunks = T // TC

    step_spec2 = pl.BlockSpec((TC, B, 2), lambda i: (i, 0, 0))
    step_specH = pl.BlockSpec((TC, B, H), lambda i: (i, 0, 0))
    step_specG = pl.BlockSpec((TC, B, G), lambda i: (i, 0, 0))
    full = lambda shape: pl.BlockSpec(shape, lambda i: tuple(0 for _ in shape))
    smem = pl.BlockSpec(memory_space=pltpu.MemorySpace.SMEM)

    in_specs = [
        smem,                      # bounds
        step_spec2, step_spec2, step_spec2, step_spec2,   # x, mx, mbar, w
        step_specH,                # gamma_h
        step_spec2, step_spec2,    # alpha, zobs
        step_specG,                # gates_in
        full((H, G + 2)),          # Wcat
        full((1, 2)),              # bhist
        full((2, 2)),              # WfxcT
        full((2, G)),              # WiccT
    ]
    out_specs = (smem,             # loss (scalar, resident across chunks)
                 step_spec2)       # imputations chunk

    # VMEM budget: double-buffered chunk streams + weights + scratch + margin
    f32 = 4
    chunk_bytes = (6 * TC * B * 2 + TC * B * H + TC * B * G + TC * B * 2) * f32
    weight_bytes = (H * (G + 2) + 2 + 4 + 2 * G) * f32
    scratch_bytes = (2 * B * H + B * 2) * f32
    vmem_limit = 2 * chunk_bytes + 2 * weight_bytes + scratch_bytes + (8 << 20)
    vmem_limit = int(min(max(vmem_limit, 16 << 20), 64 << 20))

    cost = pl.CostEstimate(
        flops=int(T * (2 * B * H * (G + 2) + 16 * B * G + 60 * B)),
        transcendentals=int(T * B * 5 * H),
        bytes_accessed=int((7 * T * B * 2 + T * B * H + T * B * G) * f32
                           + weight_bytes + T * B * 2 * f32),
    )

    args = (bounds, x_t, mx_t, mbar_t, w_loss,
            gamma_h.astype(jnp.float32), alpha.astype(jnp.float32),
            zobs.astype(jnp.float32), gates_in.astype(jnp.float32),
            Wcat, bhist, WfxcT, WiccT)

    loss, imp_t = pl.pallas_call(
        rits_kernel,
        grid=(n_chunks,),
        out_shape=(jax.ShapeDtypeStruct((1, 1), jnp.float32),
                   jax.ShapeDtypeStruct((T, B, 2), jnp.float32)),
        in_specs=in_specs,
        out_specs=out_specs,
        scratch_shapes=[pltpu.VMEM((B, H), jnp.float32),
                        pltpu.VMEM((B, H), jnp.float32),
                        pltpu.VMEM((B, 2), jnp.float32)],
        compiler_params=pltpu.CompilerParams(
            dimension_semantics=("arbitrary",),
            vmem_limit_bytes=vmem_limit),
        cost_estimate=cost,
    )(*args)

    return {'loss': loss[0, 0], 'imputations': jnp.transpose(imp_t, (1, 0, 2))}


def rits_reference(params, data, no_hr_loss=False):
    """Pure-JAX reference (mirrors the PyTorch forward) for validation."""
    nsr = data['nsr_nhr_values']
    xobs = data['dw_hd_values']
    masks = data['masks']
    deltas = data['deltas']
    upper = (1.5 * data['max_sr'] - data['sr_mean']) / data['sr_std']
    lower = (0.0 - data['sr_mean']) / data['sr_std']

    B, T, _ = nsr.shape
    H = params['W_h'].shape[0]
    eye2 = jnp.eye(2, dtype=jnp.float32)
    mfeat = jnp.ones((2, 33), jnp.float32).at[0, 0].set(0.0).at[1, 1].set(0.0)

    h = jnp.zeros((B, H), jnp.float32)
    c = jnp.zeros((B, H), jnp.float32)
    loss = 0.0
    imps = []

    def lt(x, pred, m):
        err = jnp.abs(x - pred) * m
        if no_hr_loss:
            return jnp.sum(err[:, 0]) / (jnp.sum(m[:, 0]) + 1e-5)
        return jnp.sum(err) / (jnp.sum(m) + 1e-5)

    for t in range(T):
        x = nsr[:, t, :]
        x_obs = xobs[:, t, :]
        m = masks[:, t, :]
        d = deltas[:, t, :]
        gamma_h = jnp.exp(-jnp.maximum(d @ params['W_h'].T + params['b_h'], 0.0))
        gamma_x = jnp.exp(-jnp.maximum(d @ (params['W_x'] * eye2).T + params['b_x'], 0.0))
        h = h * gamma_h
        x_h = jnp.clip(h @ params['W_hist'].T + params['b_hist'], lower, upper)
        loss = loss + lt(x, x_h, m)
        x_c = m * x + (1 - m) * x_h
        x_cat = jnp.concatenate([x_c, x_obs], axis=-1)
        z_h = jnp.clip(x_cat @ (params['W_feat'] * mfeat).T + params['b_feat'], lower, upper)
        loss = loss + lt(x, z_h, m)
        alpha = jnp.concatenate([gamma_x, m], axis=1) @ params['W_comb'].T + params['b_comb']
        c_h = jnp.clip(alpha * z_h + (1 - alpha) * x_h, lower, upper)
        loss = loss + lt(x, c_h, m)
        c_c = m * x + (1 - m) * c_h
        inp = jnp.concatenate([c_c, m], axis=1)
        gates = inp @ params['W_ih'].T + params['b_ih'] + h @ params['W_hh'].T + params['b_hh']
        i_g = jax.nn.sigmoid(gates[:, 0:H])
        f_g = jax.nn.sigmoid(gates[:, H:2 * H])
        g_g = jnp.tanh(gates[:, 2 * H:3 * H])
        o_g = jax.nn.sigmoid(gates[:, 3 * H:4 * H])
        c = f_g * c + i_g * g_g
        h = o_g * jnp.tanh(c)
        imps.append(c_c[:, None, :])
    return {'loss': loss, 'imputations': jnp.concatenate(imps, axis=1)}


def init_params(key, H=32):
    ks = jax.random.split(key, 16)
    u = lambda k, shape, s: jax.random.uniform(k, shape, jnp.float32, -s, s)
    sH = 1.0 / math.sqrt(H)
    s2 = 1.0 / math.sqrt(2.0)
    return dict(
        W_h=u(ks[0], (H, 2), sH),      b_h=u(ks[1], (H,), sH),        # temp_decay_h
        W_x=u(ks[2], (2, 2), s2),      b_x=u(ks[3], (2,), s2),        # temp_decay_x
        W_hist=u(ks[4], (2, H), sH),   b_hist=u(ks[5], (2,), sH),     # hist_reg
        W_feat=u(ks[6], (2, 33), s2),  b_feat=u(ks[7], (2,), s2),     # feat_reg
        W_comb=u(ks[8], (2, 4), 0.5),  b_comb=u(ks[9], (2,), 0.5),    # weight_combine
        W_ih=u(ks[10], (4 * H, 4), sH), W_hh=u(ks[11], (4 * H, H), sH),
        b_ih=u(ks[12], (4 * H,), sH),  b_hh=u(ks[13], (4 * H,), sH),  # LSTMCell
    )


if __name__ == "__main__":
    B, T, H, OBS = 2, 8, 32, 31   # feat_reg input 33 = 2 (x_c) + 31 (x_obs)
    key = jax.random.PRNGKey(0)
    kp, k1, k2, k3, k4 = jax.random.split(key, 5)

    params = init_params(kp, H=H)

    data = dict(
        nsr_nhr_values=jax.random.normal(k1, (B, T, 2), jnp.float32),
        dw_hd_values=jax.random.normal(k2, (B, T, OBS), jnp.float32),
        masks=(jax.random.uniform(k3, (B, T, 2)) > 0.4).astype(jnp.float32),
        deltas=jax.random.uniform(k4, (B, T, 2), jnp.float32, 0.0, 3.0),
        max_sr=jnp.float32(2.0),
        sr_mean=jnp.float32(0.5),
        sr_std=jnp.float32(1.0),
    )

    for flag in (False, True):
        out = rits_forward(params, data, no_hr_loss=flag)
        out = jax.tree_util.tree_map(jax.block_until_ready, out)
        ref = rits_reference(params, data, no_hr_loss=flag)
        assert out['imputations'].shape == (B, T, 2)
        assert jnp.allclose(out['loss'], ref['loss'], rtol=1e-3, atol=1e-3)
        assert jnp.allclose(out['imputations'], ref['imputations'], rtol=1e-3, atol=1e-3)

    print("KERNEL_OK")
</pallas_src>

<mosaic_0001>
module attributes {stable_mosaic.version = 11 : i64} {
  func.func @rits_kernel(%arg0: i32, %arg1: memref<2xf32, #tpu.memory_space<smem>>, %arg2: memref<8x2x2xf32, #tpu.memory_space<vmem>>, %arg3: memref<8x2x2xf32, #tpu.memory_space<vmem>>, %arg4: memref<8x2x2xf32, #tpu.memory_space<vmem>>, %arg5: memref<8x2x2xf32, #tpu.memory_space<vmem>>, %arg6: memref<8x2x32xf32, #tpu.memory_space<vmem>>, %arg7: memref<8x2x2xf32, #tpu.memory_space<vmem>>, %arg8: memref<8x2x2xf32, #tpu.memory_space<vmem>>, %arg9: memref<8x2x128xf32, #tpu.memory_space<vmem>>, %arg10: memref<32x130xf32, #tpu.memory_space<vmem>>, %arg11: memref<1x2xf32, #tpu.memory_space<vmem>>, %arg12: memref<2x2xf32, #tpu.memory_space<vmem>>, %arg13: memref<2x128xf32, #tpu.memory_space<vmem>>, %arg14: memref<1x1xf32, #tpu.memory_space<smem>>, %arg15: memref<8x2x2xf32, #tpu.memory_space<vmem>>, %arg16: memref<2x32xf32, #tpu.memory_space<vmem>>, %arg17: memref<2x32xf32, #tpu.memory_space<vmem>>, %arg18: memref<2x2xf32, #tpu.memory_space<vmem>>) attributes {dimension_semantics = [#tpu.dimension_semantics<arbitrary>], iteration_bounds = array<i64: 1>, scalar_prefetch = 0 : i64, scratch_operands = 3 : i64, tpu.core_type = #tpu.core_type<tc>, window_params = [{transform_indices = @transform_0, window_bounds = array<i64: 2>}, {transform_indices = @transform_1, window_bounds = array<i64: 8, 2, 2>}, {transform_indices = @transform_2, window_bounds = array<i64: 8, 2, 2>}, {transform_indices = @transform_3, window_bounds = array<i64: 8, 2, 2>}, {transform_indices = @transform_4, window_bounds = array<i64: 8, 2, 2>}, {transform_indices = @transform_5, window_bounds = array<i64: 8, 2, 32>}, {transform_indices = @transform_6, window_bounds = array<i64: 8, 2, 2>}, {transform_indices = @transform_7, window_bounds = array<i64: 8, 2, 2>}, {transform_indices = @transform_8, window_bounds = array<i64: 8, 2, 128>}, {pipeline_mode = #tpu.pipeline_mode<synchronous>, transform_indices = @transform_9, window_bounds = array<i64: 32, 130>}, {pipeline_mode = #tpu.pipeline_mode<synchronous>, transform_indices = @transform_10, window_bounds = array<i64: 1, 2>}, {pipeline_mode = #tpu.pipeline_mode<synchronous>, transform_indices = @transform_11, window_bounds = array<i64: 2, 2>}, {pipeline_mode = #tpu.pipeline_mode<synchronous>, transform_indices = @transform_12, window_bounds = array<i64: 2, 128>}, {transform_indices = @transform_13, window_bounds = array<i64: 1, 1>}, {transform_indices = @transform_14, window_bounds = array<i64: 8, 2, 2>}]} {
    %c0_i32 = arith.constant 0 : i32
    %0 = arith.cmpi eq, %arg0, %c0_i32 : i32
    %1 = arith.extui %0 : i1 to i32
    %c0_i32_0 = arith.constant 0 : i32
    %2 = arith.cmpi ne, %1, %c0_i32_0 : i32
    scf.if %2 {
      %cst_196 = arith.constant 0.000000e+00 : f32
      %832 = vector.broadcast %cst_196 : f32 to vector<2x32xf32>
      %c0_197 = arith.constant 0 : index
      %c0_198 = arith.constant 0 : index
      %833 = vector.load %arg16[%c0_197, %c0_198] : memref<2x32xf32, #tpu.memory_space<vmem>>, vector<2x32xf32>
      tpu.vector_store %arg16[%c0_197, %c0_198], %832 {strides = array<i32>} : memref<2x32xf32, #tpu.memory_space<vmem>>, vector<2x32xf32>,
      %cst_199 = arith.constant 0.000000e+00 : f32
      %834 = vector.broadcast %cst_199 : f32 to vector<2x32xf32>
      %c0_200 = arith.constant 0 : index
      %c0_201 = arith.constant 0 : index
      %835 = vector.load %arg17[%c0_200, %c0_201] : memref<2x32xf32, #tpu.memory_space<vmem>>, vector<2x32xf32>
      tpu.vector_store %arg17[%c0_200, %c0_201], %834 {strides = array<i32>} : memref<2x32xf32, #tpu.memory_space<vmem>>, vector<2x32xf32>,
      %cst_202 = arith.constant 0.000000e+00 : f32
      %836 = vector.broadcast %cst_202 : f32 to vector<2x2xf32>
      %c0_203 = arith.constant 0 : index
      %c0_204 = arith.constant 0 : index
      %837 = vector.load %arg18[%c0_203, %c0_204] : memref<2x2xf32, #tpu.memory_space<vmem>>, vector<2x2xf32>
      tpu.vector_store %arg18[%c0_203, %c0_204], %836 {strides = array<i32>} : memref<2x2xf32, #tpu.memory_space<vmem>>, vector<2x2xf32>,
    } else {
    }
    %c0 = arith.constant 0 : index
    %3 = memref.load %arg1[%c0] : memref<2xf32, #tpu.memory_space<smem>>
    %c1 = arith.constant 1 : index
    %4 = memref.load %arg1[%c1] : memref<2xf32, #tpu.memory_space<smem>>
    %c0_1 = arith.constant 0 : index
    %c0_2 = arith.constant 0 : index
    %5 = vector.load %arg10[%c0_1, %c0_2] : memref<32x130xf32, #tpu.memory_space<vmem>>, vector<32x130xf32>
    %c0_3 = arith.constant 0 : index
    %c0_4 = arith.constant 0 : index
    %6 = vector.load %arg11[%c0_3, %c0_4] : memref<1x2xf32, #tpu.memory_space<vmem>>, vector<1x2xf32>
    %7 = vector.shape_cast %6 : vector<1x2xf32> to vector<1x2xf32>
    %8 = vector.broadcast %7 : vector<1x2xf32> to vector<2x2xf32>
    %c0_5 = arith.constant 0 : index
    %c0_6 = arith.constant 0 : index
    %9 = vector.load %arg12[%c0_5, %c0_6] : memref<2x2xf32, #tpu.memory_space<vmem>>, vector<1x2xf32>
    %c1_7 = arith.constant 1 : index
    %c0_8 = arith.constant 0 : index
    %10 = vector.load %arg12[%c1_7, %c0_8] : memref<2x2xf32, #tpu.memory_space<vmem>>, vector<1x2xf32>
    %c0_9 = arith.constant 0 : index
    %c0_10 = arith.constant 0 : index
    %11 = vector.load %arg13[%c0_9, %c0_10] : memref<2x128xf32, #tpu.memory_space<vmem>>, vector<1x128xf32>
    %c1_11 = arith.constant 1 : index
    %c0_12 = arith.constant 0 : index
    %12 = vector.load %arg13[%c1_11, %c0_12] : memref<2x128xf32, #tpu.memory_space<vmem>>, vector<1x128xf32>
    %c0_13 = arith.constant 0 : index
    %c0_14 = arith.constant 0 : index
    %13 = vector.load %arg16[%c0_13, %c0_14] : memref<2x32xf32, #tpu.memory_space<vmem>>, vector<2x32xf32>
    %c0_15 = arith.constant 0 : index
    %c0_16 = arith.constant 0 : index
    %14 = vector.load %arg17[%c0_15, %c0_16] : memref<2x32xf32, #tpu.memory_space<vmem>>, vector<2x32xf32>
    %c0_17 = arith.constant 0 : index
    %c0_18 = arith.constant 0 : index
    %15 = vector.load %arg18[%c0_17, %c0_18] : memref<2x2xf32, #tpu.memory_space<vmem>>, vector<2x2xf32>
    %c0_i32_19 = arith.constant 0 : i32
    %16 = arith.index_cast %c0_i32_19 : i32 to index
    %c0_20 = arith.constant 0 : index
    %c0_21 = arith.constant 0 : index
    %17 = vector.load %arg2[%16, %c0_20, %c0_21] : memref<8x2x2xf32, #tpu.memory_space<vmem>>, vector<1x2x2xf32>
    %18 = vector.shape_cast %17 : vector<1x2x2xf32> to vector<2x2xf32>
    %19 = arith.index_cast %c0_i32_19 : i32 to index
    %c0_22 = arith.constant 0 : index
    %c0_23 = arith.constant 0 : index
    %20 = vector.load %arg3[%19, %c0_22, %c0_23] : memref<8x2x2xf32, #tpu.memory_space<vmem>>, vector<1x2x2xf32>
    %21 = vector.shape_cast %20 : vector<1x2x2xf32> to vector<2x2xf32>
    %22 = arith.index_cast %c0_i32_19 : i32 to index
    %c0_24 = arith.constant 0 : index
    %c0_25 = arith.constant 0 : index
    %23 = vector.load %arg4[%22, %c0_24, %c0_25] : memref<8x2x2xf32, #tpu.memory_space<vmem>>, vector<1x2x2xf32>
    %24 = vector.shape_cast %23 : vector<1x2x2xf32> to vector<2x2xf32>
    %25 = arith.index_cast %c0_i32_19 : i32 to index
    %c0_26 = arith.constant 0 : index
    %c0_27 = arith.constant 0 : index
    %26 = vector.load %arg5[%25, %c0_26, %c0_27] : memref<8x2x2xf32, #tpu.memory_space<vmem>>, vector<1x2x2xf32>
    %27 = vector.shape_cast %26 : vector<1x2x2xf32> to vector<2x2xf32>
    %28 = arith.index_cast %c0_i32_19 : i32 to index
    %c0_28 = arith.constant 0 : index
    %c0_29 = arith.constant 0 : index
    %29 = vector.load %arg6[%28, %c0_28, %c0_29] : memref<8x2x32xf32, #tpu.memory_space<vmem>>, vector<1x2x32xf32>
    %30 = vector.shape_cast %29 : vector<1x2x32xf32> to vector<2x32xf32>
    %31 = arith.mulf %13, %30 : vector<2x32xf32>
    %cst = arith.constant dense<0.000000e+00> : vector<2x130xf32>
    %32 = tpu.matmul %31, %5, %cst {dimension_numbers = #tpu.dot_dimension_numbers<[1], [0], [0], [1], [0, 0, 1, 1], [], []>} : vector<2x32xf32>, vector<32x130xf32>, vector<2x130xf32> -> vector<2x130xf32>
    %33 = vector.extract_strided_slice %32 {offsets = [0, 128], sizes = [2, 2], strides = [1, 1]} : vector<2x130xf32> to vector<2x2xf32>
    %34 = arith.addf %33, %8 : vector<2x2xf32>
    %35 = vector.broadcast %3 : f32 to vector<2x2xf32>
    %36 = arith.maximumf %35, %34 : vector<2x2xf32>
    %37 = vector.broadcast %4 : f32 to vector<2x2xf32>
    %38 = arith.minimumf %37, %36 : vector<2x2xf32>
    %39 = arith.mulf %24, %38 : vector<2x2xf32>
    %40 = arith.addf %21, %39 : vector<2x2xf32>
    %41 = vector.extract_strided_slice %40 {offsets = [0, 0], sizes = [2, 1], strides = [1, 1]} : vector<2x2xf32> to vector<2x1xf32>
    %42 = vector.broadcast %41 : vector<2x1xf32> to vector<2x2xf32>
    %43 = vector.broadcast %9 : vector<1x2xf32> to vector<2x2xf32>
    %44 = arith.mulf %42, %43 : vector<2x2xf32>
    %45 = vector.extract_strided_slice %40 {offsets = [0, 1], sizes = [2, 1], strides = [1, 1]} : vector<2x2xf32> to vector<2x1xf32>
    %46 = vector.broadcast %45 : vector<2x1xf32> to vector<2x2xf32>
    %47 = vector.broadcast %10 : vector<1x2xf32> to vector<2x2xf32>
    %48 = arith.mulf %46, %47 : vector<2x2xf32>
    %49 = arith.addf %44, %48 : vector<2x2xf32>
    %50 = arith.index_cast %c0_i32_19 : i32 to index
    %c0_30 = arith.constant 0 : index
    %c0_31 = arith.constant 0 : index
    %51 = vector.load %arg8[%50, %c0_30, %c0_31] : memref<8x2x2xf32, #tpu.memory_space<vmem>>, vector<1x2x2xf32>
    %52 = vector.shape_cast %51 : vector<1x2x2xf32> to vector<2x2xf32>
    %53 = arith.addf %49, %52 : vector<2x2xf32>
    %54 = vector.broadcast %3 : f32 to vector<2x2xf32>
    %55 = arith.maximumf %54, %53 : vector<2x2xf32>
    %56 = vector.broadcast %4 : f32 to vector<2x2xf32>
    %57 = arith.minimumf %56, %55 : vector<2x2xf32>
    %58 = arith.index_cast %c0_i32_19 : i32 to index
    %c0_32 = arith.constant 0 : index
    %c0_33 = arith.constant 0 : index
    %59 = vector.load %arg7[%58, %c0_32, %c0_33] : memref<8x2x2xf32, #tpu.memory_space<vmem>>, vector<1x2x2xf32>
    %60 = vector.shape_cast %59 : vector<1x2x2xf32> to vector<2x2xf32>
    %61 = arith.mulf %60, %57 : vector<2x2xf32>
    %cst_34 = arith.constant 1.000000e+00 : f32
    %62 = vector.broadcast %cst_34 : f32 to vector<2x2xf32>
    %63 = arith.subf %62, %60 : vector<2x2xf32>
    %64 = arith.mulf %63, %38 : vector<2x2xf32>
    %65 = arith.addf %61, %64 : vector<2x2xf32>
    %66 = vector.broadcast %3 : f32 to vector<2x2xf32>
    %67 = arith.maximumf %66, %65 : vector<2x2xf32>
    %68 = vector.broadcast %4 : f32 to vector<2x2xf32>
    %69 = arith.minimumf %68, %67 : vector<2x2xf32>
    %70 = arith.mulf %24, %69 : vector<2x2xf32>
    %71 = arith.addf %21, %70 : vector<2x2xf32>
    %72 = arith.subf %18, %38 : vector<2x2xf32>
    %73 = math.absf %72 : vector<2x2xf32>
    %74 = arith.subf %18, %57 : vector<2x2xf32>
    %75 = math.absf %74 : vector<2x2xf32>
    %76 = arith.addf %73, %75 : vector<2x2xf32>
    %77 = arith.subf %18, %69 : vector<2x2xf32>
    %78 = math.absf %77 : vector<2x2xf32>
    %79 = arith.addf %76, %78 : vector<2x2xf32>
    %80 = arith.mulf %79, %27 : vector<2x2xf32>
    %81 = arith.addf %15, %80 : vector<2x2xf32>
    %82 = arith.index_cast %c0_i32_19 : i32 to index
    %c0_35 = arith.constant 0 : index
    %c0_36 = arith.constant 0 : index
    %83 = vector.load %arg9[%82, %c0_35, %c0_36] : memref<8x2x128xf32, #tpu.memory_space<vmem>>, vector<1x2x128xf32>
    %84 = vector.shape_cast %83 : vector<1x2x128xf32> to vector<2x128xf32>
    %85 = vector.extract_strided_slice %71 {offsets = [0, 0], sizes = [2, 1], strides = [1, 1]} : vector<2x2xf32> to vector<2x1xf32>
    %86 = vector.broadcast %85 : vector<2x1xf32> to vector<2x128xf32>
    %87 = vector.broadcast %11 : vector<1x128xf32> to vector<2x128xf32>
    %88 = arith.mulf %86, %87 : vector<2x128xf32>
    %89 = arith.addf %84, %88 : vector<2x128xf32>
    %90 = vector.extract_strided_slice %71 {offsets = [0, 1], sizes = [2, 1], strides = [1, 1]} : vector<2x2xf32> to vector<2x1xf32>
    %91 = vector.broadcast %90 : vector<2x1xf32> to vector<2x128xf32>
    %92 = vector.broadcast %12 : vector<1x128xf32> to vector<2x128xf32>
    %93 = arith.mulf %91, %92 : vector<2x128xf32>
    %94 = arith.addf %89, %93 : vector<2x128xf32>
    %95 = vector.extract_strided_slice %32 {offsets = [0, 0], sizes = [2, 128], strides = [1, 1]} : vector<2x130xf32> to vector<2x128xf32>
    %96 = arith.addf %94, %95 : vector<2x128xf32>
    %97 = vector.extract_strided_slice %96 {offsets = [0, 0], sizes = [2, 96], strides = [1, 1]} : vector<2x128xf32> to vector<2x96xf32>
    %98 = arith.negf %97 : vector<2x96xf32>
    %99 = math.exp %98 : vector<2x96xf32>
    %cst_37 = arith.constant 1.000000e+00 : f32
    %100 = vector.broadcast %cst_37 : f32 to vector<2x96xf32>
    %101 = arith.addf %100, %99 : vector<2x96xf32>
    %102 = arith.divf %100, %101 : vector<2x96xf32>
    %103 = vector.extract_strided_slice %96 {offsets = [0, 96], sizes = [2, 32], strides = [1, 1]} : vector<2x128xf32> to vector<2x32xf32>
    %104 = math.tanh %103 : vector<2x32xf32>
    %105 = vector.extract_strided_slice %102 {offsets = [0, 0], sizes = [2, 32], strides = [1, 1]} : vector<2x96xf32> to vector<2x32xf32>
    %106 = vector.extract_strided_slice %102 {offsets = [0, 32], sizes = [2, 32], strides = [1, 1]} : vector<2x96xf32> to vector<2x32xf32>
    %107 = vector.extract_strided_slice %102 {offsets = [0, 64], sizes = [2, 32], strides = [1, 1]} : vector<2x96xf32> to vector<2x32xf32>
    %108 = arith.mulf %106, %14 : vector<2x32xf32>
    %109 = arith.mulf %105, %104 : vector<2x32xf32>
    %110 = arith.addf %108, %109 : vector<2x32xf32>
    %111 = math.tanh %110 : vector<2x32xf32>
    %112 = arith.mulf %107, %111 : vector<2x32xf32>
    %113 = arith.index_cast %c0_i32_19 : i32 to index
    %c0_38 = arith.constant 0 : index
    %c0_39 = arith.constant 0 : index
    %114 = vector.load %arg15[%113, %c0_38, %c0_39] : memref<8x2x2xf32, #tpu.memory_space<vmem>>, vector<1x2x2xf32>
    %115 = vector.shape_cast %114 : vector<1x2x2xf32> to vector<2x2xf32>
    %116 = vector.shape_cast %71 : vector<2x2xf32> to vector<1x2x2xf32>
    tpu.vector_store %arg15[%113, %c0_38, %c0_39], %116 {strides = array<i32>} : memref<8x2x2xf32, #tpu.memory_space<vmem>>, vector<1x2x2xf32>,
    %c1_i32 = arith.constant 1 : i32
    %117 = arith.index_cast %c1_i32 : i32 to index
    %c0_40 = arith.constant 0 : index
    %c0_41 = arith.constant 0 : index
    %118 = vector.load %arg2[%117, %c0_40, %c0_41] : memref<8x2x2xf32, #tpu.memory_space<vmem>>, vector<1x2x2xf32>
    %119 = vector.shape_cast %118 : vector<1x2x2xf32> to vector<2x2xf32>
    %120 = arith.index_cast %c1_i32 : i32 to index
    %c0_42 = arith.constant 0 : index
    %c0_43 = arith.constant 0 : index
    %121 = vector.load %arg3[%120, %c0_42, %c0_43] : memref<8x2x2xf32, #tpu.memory_space<vmem>>, vector<1x2x2xf32>
    %122 = vector.shape_cast %121 : vector<1x2x2xf32> to vector<2x2xf32>
    %123 = arith.index_cast %c1_i32 : i32 to index
    %c0_44 = arith.constant 0 : index
    %c0_45 = arith.constant 0 : index
    %124 = vector.load %arg4[%123, %c0_44, %c0_45] : memref<8x2x2xf32, #tpu.memory_space<vmem>>, vector<1x2x2xf32>
    %125 = vector.shape_cast %124 : vector<1x2x2xf32> to vector<2x2xf32>
    %126 = arith.index_cast %c1_i32 : i32 to index
    %c0_46 = arith.constant 0 : index
    %c0_47 = arith.constant 0 : index
    %127 = vector.load %arg5[%126, %c0_46, %c0_47] : memref<8x2x2xf32, #tpu.memory_space<vmem>>, vector<1x2x2xf32>
    %128 = vector.shape_cast %127 : vector<1x2x2xf32> to vector<2x2xf32>
    %129 = arith.index_cast %c1_i32 : i32 to index
    %c0_48 = arith.constant 0 : index
    %c0_49 = arith.constant 0 : index
    %130 = vector.load %arg6[%129, %c0_48, %c0_49] : memref<8x2x32xf32, #tpu.memory_space<vmem>>, vector<1x2x32xf32>
    %131 = vector.shape_cast %130 : vector<1x2x32xf32> to vector<2x32xf32>
    %132 = arith.mulf %112, %131 : vector<2x32xf32>
    %cst_50 = arith.constant dense<0.000000e+00> : vector<2x130xf32>
    %133 = tpu.matmul %132, %5, %cst_50 {dimension_numbers = #tpu.dot_dimension_numbers<[1], [0], [0], [1], [0, 0, 1, 1], [], []>} : vector<2x32xf32>, vector<32x130xf32>, vector<2x130xf32> -> vector<2x130xf32>
    %134 = vector.extract_strided_slice %133 {offsets = [0, 128], sizes = [2, 2], strides = [1, 1]} : vector<2x130xf32> to vector<2x2xf32>
    %135 = arith.addf %134, %8 : vector<2x2xf32>
    %136 = vector.broadcast %3 : f32 to vector<2x2xf32>
    %137 = arith.maximumf %136, %135 : vector<2x2xf32>
    %138 = vector.broadcast %4 : f32 to vector<2x2xf32>
    %139 = arith.minimumf %138, %137 : vector<2x2xf32>
    %140 = arith.mulf %125, %139 : vector<2x2xf32>
    %141 = arith.addf %122, %140 : vector<2x2xf32>
    %142 = vector.extract_strided_slice %141 {offsets = [0, 0], sizes = [2, 1], strides = [1, 1]} : vector<2x2xf32> to vector<2x1xf32>
    %143 = vector.broadcast %142 : vector<2x1xf32> to vector<2x2xf32>
    %144 = vector.broadcast %9 : vector<1x2xf32> to vector<2x2xf32>
    %145 = arith.mulf %143, %144 : vector<2x2xf32>
    %146 = vector.extract_strided_slice %141 {offsets = [0, 1], sizes = [2, 1], strides = [1, 1]} : vector<2x2xf32> to vector<2x1xf32>
    %147 = vector.broadcast %146 : vector<2x1xf32> to vector<2x2xf32>
    %148 = vector.broadcast %10 : vector<1x2xf32> to vector<2x2xf32>
    %149 = arith.mulf %147, %148 : vector<2x2xf32>
    %150 = arith.addf %145, %149 : vector<2x2xf32>
    %151 = arith.index_cast %c1_i32 : i32 to index
    %c0_51 = arith.constant 0 : index
    %c0_52 = arith.constant 0 : index
    %152 = vector.load %arg8[%151, %c0_51, %c0_52] : memref<8x2x2xf32, #tpu.memory_space<vmem>>, vector<1x2x2xf32>
    %153 = vector.shape_cast %152 : vector<1x2x2xf32> to vector<2x2xf32>
    %154 = arith.addf %150, %153 : vector<2x2xf32>
    %155 = vector.broadcast %3 : f32 to vector<2x2xf32>
    %156 = arith.maximumf %155, %154 : vector<2x2xf32>
    %157 = vector.broadcast %4 : f32 to vector<2x2xf32>
    %158 = arith.minimumf %157, %156 : vector<2x2xf32>
    %159 = arith.index_cast %c1_i32 : i32 to index
    %c0_53 = arith.constant 0 : index
    %c0_54 = arith.constant 0 : index
    %160 = vector.load %arg7[%159, %c0_53, %c0_54] : memref<8x2x2xf32, #tpu.memory_space<vmem>>, vector<1x2x2xf32>
    %161 = vector.shape_cast %160 : vector<1x2x2xf32> to vector<2x2xf32>
    %162 = arith.mulf %161, %158 : vector<2x2xf32>
    %cst_55 = arith.constant 1.000000e+00 : f32
    %163 = vector.broadcast %cst_55 : f32 to vector<2x2xf32>
    %164 = arith.subf %163, %161 : vector<2x2xf32>
    %165 = arith.mulf %164, %139 : vector<2x2xf32>
    %166 = arith.addf %162, %165 : vector<2x2xf32>
    %167 = vector.broadcast %3 : f32 to vector<2x2xf32>
    %168 = arith.maximumf %167, %166 : vector<2x2xf32>
    %169 = vector.broadcast %4 : f32 to vector<2x2xf32>
    %170 = arith.minimumf %169, %168 : vector<2x2xf32>
    %171 = arith.mulf %125, %170 : vector<2x2xf32>
    %172 = arith.addf %122, %171 : vector<2x2xf32>
    %173 = arith.subf %119, %139 : vector<2x2xf32>
    %174 = math.absf %173 : vector<2x2xf32>
    %175 = arith.subf %119, %158 : vector<2x2xf32>
    %176 = math.absf %175 : vector<2x2xf32>
    %177 = arith.addf %174, %176 : vector<2x2xf32>
    %178 = arith.subf %119, %170 : vector<2x2xf32>
    %179 = math.absf %178 : vector<2x2xf32>
    %180 = arith.addf %177, %179 : vector<2x2xf32>
    %181 = arith.mulf %180, %128 : vector<2x2xf32>
    %182 = arith.addf %81, %181 : vector<2x2xf32>
    %183 = arith.index_cast %c1_i32 : i32 to index
    %c0_56 = arith.constant 0 : index
    %c0_57 = arith.constant 0 : index
    %184 = vector.load %arg9[%183, %c0_56, %c0_57] : memref<8x2x128xf32, #tpu.memory_space<vmem>>, vector<1x2x128xf32>
    %185 = vector.shape_cast %184 : vector<1x2x128xf32> to vector<2x128xf32>
    %186 = vector.extract_strided_slice %172 {offsets = [0, 0], sizes = [2, 1], strides = [1, 1]} : vector<2x2xf32> to vector<2x1xf32>
    %187 = vector.broadcast %186 : vector<2x1xf32> to vector<2x128xf32>
    %188 = vector.broadcast %11 : vector<1x128xf32> to vector<2x128xf32>
    %189 = arith.mulf %187, %188 : vector<2x128xf32>
    %190 = arith.addf %185, %189 : vector<2x128xf32>
    %191 = vector.extract_strided_slice %172 {offsets = [0, 1], sizes = [2, 1], strides = [1, 1]} : vector<2x2xf32> to vector<2x1xf32>
    %192 = vector.broadcast %191 : vector<2x1xf32> to vector<2x128xf32>
    %193 = vector.broadcast %12 : vector<1x128xf32> to vector<2x128xf32>
    %194 = arith.mulf %192, %193 : vector<2x128xf32>
    %195 = arith.addf %190, %194 : vector<2x128xf32>
    %196 = vector.extract_strided_slice %133 {offsets = [0, 0], sizes = [2, 128], strides = [1, 1]} : vector<2x130xf32> to vector<2x128xf32>
    %197 = arith.addf %195, %196 : vector<2x128xf32>
    %198 = vector.extract_strided_slice %197 {offsets = [0, 0], sizes = [2, 96], strides = [1, 1]} : vector<2x128xf32> to vector<2x96xf32>
    %199 = arith.negf %198 : vector<2x96xf32>
    %200 = math.exp %199 : vector<2x96xf32>
    %cst_58 = arith.constant 1.000000e+00 : f32
    %201 = vector.broadcast %cst_58 : f32 to vector<2x96xf32>
    %202 = arith.addf %201, %200 : vector<2x96xf32>
    %203 = arith.divf %201, %202 : vector<2x96xf32>
    %204 = vector.extract_strided_slice %197 {offsets = [0, 96], sizes = [2, 32], strides = [1, 1]} : vector<2x128xf32> to vector<2x32xf32>
    %205 = math.tanh %204 : vector<2x32xf32>
    %206 = vector.extract_strided_slice %203 {offsets = [0, 0], sizes = [2, 32], strides = [1, 1]} : vector<2x96xf32> to vector<2x32xf32>
    %207 = vector.extract_strided_slice %203 {offsets = [0, 32], sizes = [2, 32], strides = [1, 1]} : vector<2x96xf32> to vector<2x32xf32>
    %208 = vector.extract_strided_slice %203 {offsets = [0, 64], sizes = [2, 32], strides = [1, 1]} : vector<2x96xf32> to vector<2x32xf32>
    %209 = arith.mulf %207, %110 : vector<2x32xf32>
    %210 = arith.mulf %206, %205 : vector<2x32xf32>
    %211 = arith.addf %209, %210 : vector<2x32xf32>
    %212 = math.tanh %211 : vector<2x32xf32>
    %213 = arith.mulf %208, %212 : vector<2x32xf32>
    %214 = arith.index_cast %c1_i32 : i32 to index
    %c0_59 = arith.constant 0 : index
    %c0_60 = arith.constant 0 : index
    %215 = vector.load %arg15[%214, %c0_59, %c0_60] : memref<8x2x2xf32, #tpu.memory_space<vmem>>, vector<1x2x2xf32>
    %216 = vector.shape_cast %215 : vector<1x2x2xf32> to vector<2x2xf32>
    %217 = vector.shape_cast %172 : vector<2x2xf32> to vector<1x2x2xf32>
    tpu.vector_store %arg15[%214, %c0_59, %c0_60], %217 {strides = array<i32>} : memref<8x2x2xf32, #tpu.memory_space<vmem>>, vector<1x2x2xf32>,
    %c2_i32 = arith.constant 2 : i32
    %218 = arith.index_cast %c2_i32 : i32 to index
    %c0_61 = arith.constant 0 : index
    %c0_62 = arith.constant 0 : index
    %219 = vector.load %arg2[%218, %c0_61, %c0_62] : memref<8x2x2xf32, #tpu.memory_space<vmem>>, vector<1x2x2xf32>
    %220 = vector.shape_cast %219 : vector<1x2x2xf32> to vector<2x2xf32>
    %221 = arith.index_cast %c2_i32 : i32 to index
    %c0_63 = arith.constant 0 : index
    %c0_64 = arith.constant 0 : index
    %222 = vector.load %arg3[%221, %c0_63, %c0_64] : memref<8x2x2xf32, #tpu.memory_space<vmem>>, vector<1x2x2xf32>
    %223 = vector.shape_cast %222 : vector<1x2x2xf32> to vector<2x2xf32>
    %224 = arith.index_cast %c2_i32 : i32 to index
    %c0_65 = arith.constant 0 : index
    %c0_66 = arith.constant 0 : index
    %225 = vector.load %arg4[%224, %c0_65, %c0_66] : memref<8x2x2xf32, #tpu.memory_space<vmem>>, vector<1x2x2xf32>
    %226 = vector.shape_cast %225 : vector<1x2x2xf32> to vector<2x2xf32>
    %227 = arith.index_cast %c2_i32 : i32 to index
    %c0_67 = arith.constant 0 : index
    %c0_68 = arith.constant 0 : index
    %228 = vector.load %arg5[%227, %c0_67, %c0_68] : memref<8x2x2xf32, #tpu.memory_space<vmem>>, vector<1x2x2xf32>
    %229 = vector.shape_cast %228 : vector<1x2x2xf32> to vector<2x2xf32>
    %230 = arith.index_cast %c2_i32 : i32 to index
    %c0_69 = arith.constant 0 : index
    %c0_70 = arith.constant 0 : index
    %231 = vector.load %arg6[%230, %c0_69, %c0_70] : memref<8x2x32xf32, #tpu.memory_space<vmem>>, vector<1x2x32xf32>
    %232 = vector.shape_cast %231 : vector<1x2x32xf32> to vector<2x32xf32>
    %233 = arith.mulf %213, %232 : vector<2x32xf32>
    %cst_71 = arith.constant dense<0.000000e+00> : vector<2x130xf32>
    %234 = tpu.matmul %233, %5, %cst_71 {dimension_numbers = #tpu.dot_dimension_numbers<[1], [0], [0], [1], [0, 0, 1, 1], [], []>} : vector<2x32xf32>, vector<32x130xf32>, vector<2x130xf32> -> vector<2x130xf32>
    %235 = vector.extract_strided_slice %234 {offsets = [0, 128], sizes = [2, 2], strides = [1, 1]} : vector<2x130xf32> to vector<2x2xf32>
    %236 = arith.addf %235, %8 : vector<2x2xf32>
    %237 = vector.broadcast %3 : f32 to vector<2x2xf32>
    %238 = arith.maximumf %237, %236 : vector<2x2xf32>
    %239 = vector.broadcast %4 : f32 to vector<2x2xf32>
    %240 = arith.minimumf %239, %238 : vector<2x2xf32>
    %241 = arith.mulf %226, %240 : vector<2x2xf32>
    %242 = arith.addf %223, %241 : vector<2x2xf32>
    %243 = vector.extract_strided_slice %242 {offsets = [0, 0], sizes = [2, 1], strides = [1, 1]} : vector<2x2xf32> to vector<2x1xf32>
    %244 = vector.broadcast %243 : vector<2x1xf32> to vector<2x2xf32>
    %245 = vector.broadcast %9 : vector<1x2xf32> to vector<2x2xf32>
    %246 = arith.mulf %244, %245 : vector<2x2xf32>
    %247 = vector.extract_strided_slice %242 {offsets = [0, 1], sizes = [2, 1], strides = [1, 1]} : vector<2x2xf32> to vector<2x1xf32>
    %248 = vector.broadcast %247 : vector<2x1xf32> to vector<2x2xf32>
    %249 = vector.broadcast %10 : vector<1x2xf32> to vector<2x2xf32>
    %250 = arith.mulf %248, %249 : vector<2x2xf32>
    %251 = arith.addf %246, %250 : vector<2x2xf32>
    %252 = arith.index_cast %c2_i32 : i32 to index
    %c0_72 = arith.constant 0 : index
    %c0_73 = arith.constant 0 : index
    %253 = vector.load %arg8[%252, %c0_72, %c0_73] : memref<8x2x2xf32, #tpu.memory_space<vmem>>, vector<1x2x2xf32>
    %254 = vector.shape_cast %253 : vector<1x2x2xf32> to vector<2x2xf32>
    %255 = arith.addf %251, %254 : vector<2x2xf32>
    %256 = vector.broadcast %3 : f32 to vector<2x2xf32>
    %257 = arith.maximumf %256, %255 : vector<2x2xf32>
    %258 = vector.broadcast %4 : f32 to vector<2x2xf32>
    %259 = arith.minimumf %258, %257 : vector<2x2xf32>
    %260 = arith.index_cast %c2_i32 : i32 to index
    %c0_74 = arith.constant 0 : index
    %c0_75 = arith.constant 0 : index
    %261 = vector.load %arg7[%260, %c0_74, %c0_75] : memref<8x2x2xf32, #tpu.memory_space<vmem>>, vector<1x2x2xf32>
    %262 = vector.shape_cast %261 : vector<1x2x2xf32> to vector<2x2xf32>
    %263 = arith.mulf %262, %259 : vector<2x2xf32>
    %cst_76 = arith.constant 1.000000e+00 : f32
    %264 = vector.broadcast %cst_76 : f32 to vector<2x2xf32>
    %265 = arith.subf %264, %262 : vector<2x2xf32>
    %266 = arith.mulf %265, %240 : vector<2x2xf32>
    %267 = arith.addf %263, %266 : vector<2x2xf32>
    %268 = vector.broadcast %3 : f32 to vector<2x2xf32>
    %269 = arith.maximumf %268, %267 : vector<2x2xf32>
    %270 = vector.broadcast %4 : f32 to vector<2x2xf32>
    %271 = arith.minimumf %270, %269 : vector<2x2xf32>
    %272 = arith.mulf %226, %271 : vector<2x2xf32>
    %273 = arith.addf %223, %272 : vector<2x2xf32>
    %274 = arith.subf %220, %240 : vector<2x2xf32>
    %275 = math.absf %274 : vector<2x2xf32>
    %276 = arith.subf %220, %259 : vector<2x2xf32>
    %277 = math.absf %276 : vector<2x2xf32>
    %278 = arith.addf %275, %277 : vector<2x2xf32>
    %279 = arith.subf %220, %271 : vector<2x2xf32>
    %280 = math.absf %279 : vector<2x2xf32>
    %281 = arith.addf %278, %280 : vector<2x2xf32>
    %282 = arith.mulf %281, %229 : vector<2x2xf32>
    %283 = arith.addf %182, %282 : vector<2x2xf32>
    %284 = arith.index_cast %c2_i32 : i32 to index
    %c0_77 = arith.constant 0 : index
    %c0_78 = arith.constant 0 : index
    %285 = vector.load %arg9[%284, %c0_77, %c0_78] : memref<8x2x128xf32, #tpu.memory_space<vmem>>, vector<1x2x128xf32>
    %286 = vector.shape_cast %285 : vector<1x2x128xf32> to vector<2x128xf32>
    %287 = vector.extract_strided_slice %273 {offsets = [0, 0], sizes = [2, 1], strides = [1, 1]} : vector<2x2xf32> to vector<2x1xf32>
    %288 = vector.broadcast %287 : vector<2x1xf32> to vector<2x128xf32>
    %289 = vector.broadcast %11 : vector<1x128xf32> to vector<2x128xf32>
    %290 = arith.mulf %288, %289 : vector<2x128xf32>
    %291 = arith.addf %286, %290 : vector<2x128xf32>
    %292 = vector.extract_strided_slice %273 {offsets = [0, 1], sizes = [2, 1], strides = [1, 1]} : vector<2x2xf32> to vector<2x1xf32>
    %293 = vector.broadcast %292 : vector<2x1xf32> to vector<2x128xf32>
    %294 = vector.broadcast %12 : vector<1x128xf32> to vector<2x128xf32>
    %295 = arith.mulf %293, %294 : vector<2x128xf32>
    %296 = arith.addf %291, %295 : vector<2x128xf32>
    %297 = vector.extract_strided_slice %234 {offsets = [0, 0], sizes = [2, 128], strides = [1, 1]} : vector<2x130xf32> to vector<2x128xf32>
    %298 = arith.addf %296, %297 : vector<2x128xf32>
    %299 = vector.extract_strided_slice %298 {offsets = [0, 0], sizes = [2, 96], strides = [1, 1]} : vector<2x128xf32> to vector<2x96xf32>
    %300 = arith.negf %299 : vector<2x96xf32>
    %301 = math.exp %300 : vector<2x96xf32>
    %cst_79 = arith.constant 1.000000e+00 : f32
    %302 = vector.broadcast %cst_79 : f32 to vector<2x96xf32>
    %303 = arith.addf %302, %301 : vector<2x96xf32>
    %304 = arith.divf %302, %303 : vector<2x96xf32>
    %305 = vector.extract_strided_slice %298 {offsets = [0, 96], sizes = [2, 32], strides = [1, 1]} : vector<2x128xf32> to vector<2x32xf32>
    %306 = math.tanh %305 : vector<2x32xf32>
    %307 = vector.extract_strided_slice %304 {offsets = [0, 0], sizes = [2, 32], strides = [1, 1]} : vector<2x96xf32> to vector<2x32xf32>
    %308 = vector.extract_strided_slice %304 {offsets = [0, 32], sizes = [2, 32], strides = [1, 1]} : vector<2x96xf32> to vector<2x32xf32>
    %309 = vector.extract_strided_slice %304 {offsets = [0, 64], sizes = [2, 32], strides = [1, 1]} : vector<2x96xf32> to vector<2x32xf32>
    %310 = arith.mulf %308, %211 : vector<2x32xf32>
    %311 = arith.mulf %307, %306 : vector<2x32xf32>
    %312 = arith.addf %310, %311 : vector<2x32xf32>
    %313 = math.tanh %312 : vector<2x32xf32>
    %314 = arith.mulf %309, %313 : vector<2x32xf32>
    %315 = arith.index_cast %c2_i32 : i32 to index
    %c0_80 = arith.constant 0 : index
    %c0_81 = arith.constant 0 : index
    %316 = vector.load %arg15[%315, %c0_80, %c0_81] : memref<8x2x2xf32, #tpu.memory_space<vmem>>, vector<1x2x2xf32>
    %317 = vector.shape_cast %316 : vector<1x2x2xf32> to vector<2x2xf32>
    %318 = vector.shape_cast %273 : vector<2x2xf32> to vector<1x2x2xf32>
    tpu.vector_store %arg15[%315, %c0_80, %c0_81], %318 {strides = array<i32>} : memref<8x2x2xf32, #tpu.memory_space<vmem>>, vector<1x2x2xf32>,
    %c3_i32 = arith.constant 3 : i32
    %319 = arith.index_cast %c3_i32 : i32 to index
    %c0_82 = arith.constant 0 : index
    %c0_83 = arith.constant 0 : index
    %320 = vector.load %arg2[%319, %c0_82, %c0_83] : memref<8x2x2xf32, #tpu.memory_space<vmem>>, vector<1x2x2xf32>
    %321 = vector.shape_cast %320 : vector<1x2x2xf32> to vector<2x2xf32>
    %322 = arith.index_cast %c3_i32 : i32 to index
    %c0_84 = arith.constant 0 : index
    %c0_85 = arith.constant 0 : index
    %323 = vector.load %arg3[%322, %c0_84, %c0_85] : memref<8x2x2xf32, #tpu.memory_space<vmem>>, vector<1x2x2xf32>
    %324 = vector.shape_cast %323 : vector<1x2x2xf32> to vector<2x2xf32>
    %325 = arith.index_cast %c3_i32 : i32 to index
    %c0_86 = arith.constant 0 : index
    %c0_87 = arith.constant 0 : index
    %326 = vector.load %arg4[%325, %c0_86, %c0_87] : memref<8x2x2xf32, #tpu.memory_space<vmem>>, vector<1x2x2xf32>
    %327 = vector.shape_cast %326 : vector<1x2x2xf32> to vector<2x2xf32>
    %328 = arith.index_cast %c3_i32 : i32 to index
    %c0_88 = arith.constant 0 : index
    %c0_89 = arith.constant 0 : index
    %329 = vector.load %arg5[%328, %c0_88, %c0_89] : memref<8x2x2xf32, #tpu.memory_space<vmem>>, vector<1x2x2xf32>
    %330 = vector.shape_cast %329 : vector<1x2x2xf32> to vector<2x2xf32>
    %331 = arith.index_cast %c3_i32 : i32 to index
    %c0_90 = arith.constant 0 : index
    %c0_91 = arith.constant 0 : index
    %332 = vector.load %arg6[%331, %c0_90, %c0_91] : memref<8x2x32xf32, #tpu.memory_space<vmem>>, vector<1x2x32xf32>
    %333 = vector.shape_cast %332 : vector<1x2x32xf32> to vector<2x32xf32>
    %334 = arith.mulf %314, %333 : vector<2x32xf32>
    %cst_92 = arith.constant dense<0.000000e+00> : vector<2x130xf32>
    %335 = tpu.matmul %334, %5, %cst_92 {dimension_numbers = #tpu.dot_dimension_numbers<[1], [0], [0], [1], [0, 0, 1, 1], [], []>} : vector<2x32xf32>, vector<32x130xf32>, vector<2x130xf32> -> vector<2x130xf32>
    %336 = vector.extract_strided_slice %335 {offsets = [0, 128], sizes = [2, 2], strides = [1, 1]} : vector<2x130xf32> to vector<2x2xf32>
    %337 = arith.addf %336, %8 : vector<2x2xf32>
    %338 = vector.broadcast %3 : f32 to vector<2x2xf32>
    %339 = arith.maximumf %338, %337 : vector<2x2xf32>
    %340 = vector.broadcast %4 : f32 to vector<2x2xf32>
    %341 = arith.minimumf %340, %339 : vector<2x2xf32>
    %342 = arith.mulf %327, %341 : vector<2x2xf32>
    %343 = arith.addf %324, %342 : vector<2x2xf32>
    %344 = vector.extract_strided_slice %343 {offsets = [0, 0], sizes = [2, 1], strides = [1, 1]} : vector<2x2xf32> to vector<2x1xf32>
    %345 = vector.broadcast %344 : vector<2x1xf32> to vector<2x2xf32>
    %346 = vector.broadcast %9 : vector<1x2xf32> to vector<2x2xf32>
    %347 = arith.mulf %345, %346 : vector<2x2xf32>
    %348 = vector.extract_strided_slice %343 {offsets = [0, 1], sizes = [2, 1], strides = [1, 1]} : vector<2x2xf32> to vector<2x1xf32>
    %349 = vector.broadcast %348 : vector<2x1xf32> to vector<2x2xf32>
    %350 = vector.broadcast %10 : vector<1x2xf32> to vector<2x2xf32>
    %351 = arith.mulf %349, %350 : vector<2x2xf32>
    %352 = arith.addf %347, %351 : vector<2x2xf32>
    %353 = arith.index_cast %c3_i32 : i32 to index
    %c0_93 = arith.constant 0 : index
    %c0_94 = arith.constant 0 : index
    %354 = vector.load %arg8[%353, %c0_93, %c0_94] : memref<8x2x2xf32, #tpu.memory_space<vmem>>, vector<1x2x2xf32>
    %355 = vector.shape_cast %354 : vector<1x2x2xf32> to vector<2x2xf32>
    %356 = arith.addf %352, %355 : vector<2x2xf32>
    %357 = vector.broadcast %3 : f32 to vector<2x2xf32>
    %358 = arith.maximumf %357, %356 : vector<2x2xf32>
    %359 = vector.broadcast %4 : f32 to vector<2x2xf32>
    %360 = arith.minimumf %359, %358 : vector<2x2xf32>
    %361 = arith.index_cast %c3_i32 : i32 to index
    %c0_95 = arith.constant 0 : index
    %c0_96 = arith.constant 0 : index
    %362 = vector.load %arg7[%361, %c0_95, %c0_96] : memref<8x2x2xf32, #tpu.memory_space<vmem>>, vector<1x2x2xf32>
    %363 = vector.shape_cast %362 : vector<1x2x2xf32> to vector<2x2xf32>
    %364 = arith.mulf %363, %360 : vector<2x2xf32>
    %cst_97 = arith.constant 1.000000e+00 : f32
    %365 = vector.broadcast %cst_97 : f32 to vector<2x2xf32>
    %366 = arith.subf %365, %363 : vector<2x2xf32>
    %367 = arith.mulf %366, %341 : vector<2x2xf32>
    %368 = arith.addf %364, %367 : vector<2x2xf32>
    %369 = vector.broadcast %3 : f32 to vector<2x2xf32>
    %370 = arith.maximumf %369, %368 : vector<2x2xf32>
    %371 = vector.broadcast %4 : f32 to vector<2x2xf32>
    %372 = arith.minimumf %371, %370 : vector<2x2xf32>
    %373 = arith.mulf %327, %372 : vector<2x2xf32>
    %374 = arith.addf %324, %373 : vector<2x2xf32>
    %375 = arith.subf %321, %341 : vector<2x2xf32>
    %376 = math.absf %375 : vector<2x2xf32>
    %377 = arith.subf %321, %360 : vector<2x2xf32>
    %378 = math.absf %377 : vector<2x2xf32>
    %379 = arith.addf %376, %378 : vector<2x2xf32>
    %380 = arith.subf %321, %372 : vector<2x2xf32>
    %381 = math.absf %380 : vector<2x2xf32>
    %382 = arith.addf %379, %381 : vector<2x2xf32>
    %383 = arith.mulf %382, %330 : vector<2x2xf32>
    %384 = arith.addf %283, %383 : vector<2x2xf32>
    %385 = arith.index_cast %c3_i32 : i32 to index
    %c0_98 = arith.constant 0 : index
    %c0_99 = arith.constant 0 : index
    %386 = vector.load %arg9[%385, %c0_98, %c0_99] : memref<8x2x128xf32, #tpu.memory_space<vmem>>, vector<1x2x128xf32>
    %387 = vector.shape_cast %386 : vector<1x2x128xf32> to vector<2x128xf32>
    %388 = vector.extract_strided_slice %374 {offsets = [0, 0], sizes = [2, 1], strides = [1, 1]} : vector<2x2xf32> to vector<2x1xf32>
    %389 = vector.broadcast %388 : vector<2x1xf32> to vector<2x128xf32>
    %390 = vector.broadcast %11 : vector<1x128xf32> to vector<2x128xf32>
    %391 = arith.mulf %389, %390 : vector<2x128xf32>
    %392 = arith.addf %387, %391 : vector<2x128xf32>
    %393 = vector.extract_strided_slice %374 {offsets = [0, 1], sizes = [2, 1], strides = [1, 1]} : vector<2x2xf32> to vector<2x1xf32>
    %394 = vector.broadcast %393 : vector<2x1xf32> to vector<2x128xf32>
    %395 = vector.broadcast %12 : vector<1x128xf32> to vector<2x128xf32>
    %396 = arith.mulf %394, %395 : vector<2x128xf32>
    %397 = arith.addf %392, %396 : vector<2x128xf32>
    %398 = vector.extract_strided_slice %335 {offsets = [0, 0], sizes = [2, 128], strides = [1, 1]} : vector<2x130xf32> to vector<2x128xf32>
    %399 = arith.addf %397, %398 : vector<2x128xf32>
    %400 = vector.extract_strided_slice %399 {offsets = [0, 0], sizes = [2, 96], strides = [1, 1]} : vector<2x128xf32> to vector<2x96xf32>
    %401 = arith.negf %400 : vector<2x96xf32>
    %402 = math.exp %401 : vector<2x96xf32>
    %cst_100 = arith.constant 1.000000e+00 : f32
    %403 = vector.broadcast %cst_100 : f32 to vector<2x96xf32>
    %404 = arith.addf %403, %402 : vector<2x96xf32>
    %405 = arith.divf %403, %404 : vector<2x96xf32>
    %406 = vector.extract_strided_slice %399 {offsets = [0, 96], sizes = [2, 32], strides = [1, 1]} : vector<2x128xf32> to vector<2x32xf32>
    %407 = math.tanh %406 : vector<2x32xf32>
    %408 = vector.extract_strided_slice %405 {offsets = [0, 0], sizes = [2, 32], strides = [1, 1]} : vector<2x96xf32> to vector<2x32xf32>
    %409 = vector.extract_strided_slice %405 {offsets = [0, 32], sizes = [2, 32], strides = [1, 1]} : vector<2x96xf32> to vector<2x32xf32>
    %410 = vector.extract_strided_slice %405 {offsets = [0, 64], sizes = [2, 32], strides = [1, 1]} : vector<2x96xf32> to vector<2x32xf32>
    %411 = arith.mulf %409, %312 : vector<2x32xf32>
    %412 = arith.mulf %408, %407 : vector<2x32xf32>
    %413 = arith.addf %411, %412 : vector<2x32xf32>
    %414 = math.tanh %413 : vector<2x32xf32>
    %415 = arith.mulf %410, %414 : vector<2x32xf32>
    %416 = arith.index_cast %c3_i32 : i32 to index
    %c0_101 = arith.constant 0 : index
    %c0_102 = arith.constant 0 : index
    %417 = vector.load %arg15[%416, %c0_101, %c0_102] : memref<8x2x2xf32, #tpu.memory_space<vmem>>, vector<1x2x2xf32>
    %418 = vector.shape_cast %417 : vector<1x2x2xf32> to vector<2x2xf32>
    %419 = vector.shape_cast %374 : vector<2x2xf32> to vector<1x2x2xf32>
    tpu.vector_store %arg15[%416, %c0_101, %c0_102], %419 {strides = array<i32>} : memref<8x2x2xf32, #tpu.memory_space<vmem>>, vector<1x2x2xf32>,
    %c4_i32 = arith.constant 4 : i32
    %420 = arith.index_cast %c4_i32 : i32 to index
    %c0_103 = arith.constant 0 : index
    %c0_104 = arith.constant 0 : index
    %421 = vector.load %arg2[%420, %c0_103, %c0_104] : memref<8x2x2xf32, #tpu.memory_space<vmem>>, vector<1x2x2xf32>
    %422 = vector.shape_cast %421 : vector<1x2x2xf32> to vector<2x2xf32>
    %423 = arith.index_cast %c4_i32 : i32 to index
    %c0_105 = arith.constant 0 : index
    %c0_106 = arith.constant 0 : index
    %424 = vector.load %arg3[%423, %c0_105, %c0_106] : memref<8x2x2xf32, #tpu.memory_space<vmem>>, vector<1x2x2xf32>
    %425 = vector.shape_cast %424 : vector<1x2x2xf32> to vector<2x2xf32>
    %426 = arith.index_cast %c4_i32 : i32 to index
    %c0_107 = arith.constant 0 : index
    %c0_108 = arith.constant 0 : index
    %427 = vector.load %arg4[%426, %c0_107, %c0_108] : memref<8x2x2xf32, #tpu.memory_space<vmem>>, vector<1x2x2xf32>
    %428 = vector.shape_cast %427 : vector<1x2x2xf32> to vector<2x2xf32>
    %429 = arith.index_cast %c4_i32 : i32 to index
    %c0_109 = arith.constant 0 : index
    %c0_110 = arith.constant 0 : index
    %430 = vector.load %arg5[%429, %c0_109, %c0_110] : memref<8x2x2xf32, #tpu.memory_space<vmem>>, vector<1x2x2xf32>
    %431 = vector.shape_cast %430 : vector<1x2x2xf32> to vector<2x2xf32>
    %432 = arith.index_cast %c4_i32 : i32 to index
    %c0_111 = arith.constant 0 : index
    %c0_112 = arith.constant 0 : index
    %433 = vector.load %arg6[%432, %c0_111, %c0_112] : memref<8x2x32xf32, #tpu.memory_space<vmem>>, vector<1x2x32xf32>
    %434 = vector.shape_cast %433 : vector<1x2x32xf32> to vector<2x32xf32>
    %435 = arith.mulf %415, %434 : vector<2x32xf32>
    %cst_113 = arith.constant dense<0.000000e+00> : vector<2x130xf32>
    %436 = tpu.matmul %435, %5, %cst_113 {dimension_numbers = #tpu.dot_dimension_numbers<[1], [0], [0], [1], [0, 0, 1, 1], [], []>} : vector<2x32xf32>, vector<32x130xf32>, vector<2x130xf32> -> vector<2x130xf32>
    %437 = vector.extract_strided_slice %436 {offsets = [0, 128], sizes = [2, 2], strides = [1, 1]} : vector<2x130xf32> to vector<2x2xf32>
    %438 = arith.addf %437, %8 : vector<2x2xf32>
    %439 = vector.broadcast %3 : f32 to vector<2x2xf32>
    %440 = arith.maximumf %439, %438 : vector<2x2xf32>
    %441 = vector.broadcast %4 : f32 to vector<2x2xf32>
    %442 = arith.minimumf %441, %440 : vector<2x2xf32>
    %443 = arith.mulf %428, %442 : vector<2x2xf32>
    %444 = arith.addf %425, %443 : vector<2x2xf32>
    %445 = vector.extract_strided_slice %444 {offsets = [0, 0], sizes = [2, 1], strides = [1, 1]} : vector<2x2xf32> to vector<2x1xf32>
    %446 = vector.broadcast %445 : vector<2x1xf32> to vector<2x2xf32>
    %447 = vector.broadcast %9 : vector<1x2xf32> to vector<2x2xf32>
    %448 = arith.mulf %446, %447 : vector<2x2xf32>
    %449 = vector.extract_strided_slice %444 {offsets = [0, 1], sizes = [2, 1], strides = [1, 1]} : vector<2x2xf32> to vector<2x1xf32>
    %450 = vector.broadcast %449 : vector<2x1xf32> to vector<2x2xf32>
    %451 = vector.broadcast %10 : vector<1x2xf32> to vector<2x2xf32>
    %452 = arith.mulf %450, %451 : vector<2x2xf32>
    %453 = arith.addf %448, %452 : vector<2x2xf32>
    %454 = arith.index_cast %c4_i32 : i32 to index
    %c0_114 = arith.constant 0 : index
    %c0_115 = arith.constant 0 : index
    %455 = vector.load %arg8[%454, %c0_114, %c0_115] : memref<8x2x2xf32, #tpu.memory_space<vmem>>, vector<1x2x2xf32>
    %456 = vector.shape_cast %455 : vector<1x2x2xf32> to vector<2x2xf32>
    %457 = arith.addf %453, %456 : vector<2x2xf32>
    %458 = vector.broadcast %3 : f32 to vector<2x2xf32>
    %459 = arith.maximumf %458, %457 : vector<2x2xf32>
    %460 = vector.broadcast %4 : f32 to vector<2x2xf32>
    %461 = arith.minimumf %460, %459 : vector<2x2xf32>
    %462 = arith.index_cast %c4_i32 : i32 to index
    %c0_116 = arith.constant 0 : index
    %c0_117 = arith.constant 0 : index
    %463 = vector.load %arg7[%462, %c0_116, %c0_117] : memref<8x2x2xf32, #tpu.memory_space<vmem>>, vector<1x2x2xf32>
    %464 = vector.shape_cast %463 : vector<1x2x2xf32> to vector<2x2xf32>
    %465 = arith.mulf %464, %461 : vector<2x2xf32>
    %cst_118 = arith.constant 1.000000e+00 : f32
    %466 = vector.broadcast %cst_118 : f32 to vector<2x2xf32>
    %467 = arith.subf %466, %464 : vector<2x2xf32>
    %468 = arith.mulf %467, %442 : vector<2x2xf32>
    %469 = arith.addf %465, %468 : vector<2x2xf32>
    %470 = vector.broadcast %3 : f32 to vector<2x2xf32>
    %471 = arith.maximumf %470, %469 : vector<2x2xf32>
    %472 = vector.broadcast %4 : f32 to vector<2x2xf32>
    %473 = arith.minimumf %472, %471 : vector<2x2xf32>
    %474 = arith.mulf %428, %473 : vector<2x2xf32>
    %475 = arith.addf %425, %474 : vector<2x2xf32>
    %476 = arith.subf %422, %442 : vector<2x2xf32>
    %477 = math.absf %476 : vector<2x2xf32>
    %478 = arith.subf %422, %461 : vector<2x2xf32>
    %479 = math.absf %478 : vector<2x2xf32>
    %480 = arith.addf %477, %479 : vector<2x2xf32>
    %481 = arith.subf %422, %473 : vector<2x2xf32>
    %482 = math.absf %481 : vector<2x2xf32>
    %483 = arith.addf %480, %482 : vector<2x2xf32>
    %484 = arith.mulf %483, %431 : vector<2x2xf32>
    %485 = arith.addf %384, %484 : vector<2x2xf32>
    %486 = arith.index_cast %c4_i32 : i32 to index
    %c0_119 = arith.constant 0 : index
    %c0_120 = arith.constant 0 : index
    %487 = vector.load %arg9[%486, %c0_119, %c0_120] : memref<8x2x128xf32, #tpu.memory_space<vmem>>, vector<1x2x128xf32>
    %488 = vector.shape_cast %487 : vector<1x2x128xf32> to vector<2x128xf32>
    %489 = vector.extract_strided_slice %475 {offsets = [0, 0], sizes = [2, 1], strides = [1, 1]} : vector<2x2xf32> to vector<2x1xf32>
    %490 = vector.broadcast %489 : vector<2x1xf32> to vector<2x128xf32>
    %491 = vector.broadcast %11 : vector<1x128xf32> to vector<2x128xf32>
    %492 = arith.mulf %490, %491 : vector<2x128xf32>
    %493 = arith.addf %488, %492 : vector<2x128xf32>
    %494 = vector.extract_strided_slice %475 {offsets = [0, 1], sizes = [2, 1], strides = [1, 1]} : vector<2x2xf32> to vector<2x1xf32>
    %495 = vector.broadcast %494 : vector<2x1xf32> to vector<2x128xf32>
    %496 = vector.broadcast %12 : vector<1x128xf32> to vector<2x128xf32>
    %497 = arith.mulf %495, %496 : vector<2x128xf32>
    %498 = arith.addf %493, %497 : vector<2x128xf32>
    %499 = vector.extract_strided_slice %436 {offsets = [0, 0], sizes = [2, 128], strides = [1, 1]} : vector<2x130xf32> to vector<2x128xf32>
    %500 = arith.addf %498, %499 : vector<2x128xf32>
    %501 = vector.extract_strided_slice %500 {offsets = [0, 0], sizes = [2, 96], strides = [1, 1]} : vector<2x128xf32> to vector<2x96xf32>
    %502 = arith.negf %501 : vector<2x96xf32>
    %503 = math.exp %502 : vector<2x96xf32>
    %cst_121 = arith.constant 1.000000e+00 : f32
    %504 = vector.broadcast %cst_121 : f32 to vector<2x96xf32>
    %505 = arith.addf %504, %503 : vector<2x96xf32>
    %506 = arith.divf %504, %505 : vector<2x96xf32>
    %507 = vector.extract_strided_slice %500 {offsets = [0, 96], sizes = [2, 32], strides = [1, 1]} : vector<2x128xf32> to vector<2x32xf32>
    %508 = math.tanh %507 : vector<2x32xf32>
    %509 = vector.extract_strided_slice %506 {offsets = [0, 0], sizes = [2, 32], strides = [1, 1]} : vector<2x96xf32> to vector<2x32xf32>
    %510 = vector.extract_strided_slice %506 {offsets = [0, 32], sizes = [2, 32], strides = [1, 1]} : vector<2x96xf32> to vector<2x32xf32>
    %511 = vector.extract_strided_slice %506 {offsets = [0, 64], sizes = [2, 32], strides = [1, 1]} : vector<2x96xf32> to vector<2x32xf32>
    %512 = arith.mulf %510, %413 : vector<2x32xf32>
    %513 = arith.mulf %509, %508 : vector<2x32xf32>
    %514 = arith.addf %512, %513 : vector<2x32xf32>
    %515 = math.tanh %514 : vector<2x32xf32>
    %516 = arith.mulf %511, %515 : vector<2x32xf32>
    %517 = arith.index_cast %c4_i32 : i32 to index
    %c0_122 = arith.constant 0 : index
    %c0_123 = arith.constant 0 : index
    %518 = vector.load %arg15[%517, %c0_122, %c0_123] : memref<8x2x2xf32, #tpu.memory_space<vmem>>, vector<1x2x2xf32>
    %519 = vector.shape_cast %518 : vector<1x2x2xf32> to vector<2x2xf32>
    %520 = vector.shape_cast %475 : vector<2x2xf32> to vector<1x2x2xf32>
    tpu.vector_store %arg15[%517, %c0_122, %c0_123], %520 {strides = array<i32>} : memref<8x2x2xf32, #tpu.memory_space<vmem>>, vector<1x2x2xf32>,
    %c5_i32 = arith.constant 5 : i32
    %521 = arith.index_cast %c5_i32 : i32 to index
    %c0_124 = arith.constant 0 : index
    %c0_125 = arith.constant 0 : index
    %522 = vector.load %arg2[%521, %c0_124, %c0_125] : memref<8x2x2xf32, #tpu.memory_space<vmem>>, vector<1x2x2xf32>
    %523 = vector.shape_cast %522 : vector<1x2x2xf32> to vector<2x2xf32>
    %524 = arith.index_cast %c5_i32 : i32 to index
    %c0_126 = arith.constant 0 : index
    %c0_127 = arith.constant 0 : index
    %525 = vector.load %arg3[%524, %c0_126, %c0_127] : memref<8x2x2xf32, #tpu.memory_space<vmem>>, vector<1x2x2xf32>
    %526 = vector.shape_cast %525 : vector<1x2x2xf32> to vector<2x2xf32>
    %527 = arith.index_cast %c5_i32 : i32 to index
    %c0_128 = arith.constant 0 : index
    %c0_129 = arith.constant 0 : index
    %528 = vector.load %arg4[%527, %c0_128, %c0_129] : memref<8x2x2xf32, #tpu.memory_space<vmem>>, vector<1x2x2xf32>
    %529 = vector.shape_cast %528 : vector<1x2x2xf32> to vector<2x2xf32>
    %530 = arith.index_cast %c5_i32 : i32 to index
    %c0_130 = arith.constant 0 : index
    %c0_131 = arith.constant 0 : index
    %531 = vector.load %arg5[%530, %c0_130, %c0_131] : memref<8x2x2xf32, #tpu.memory_space<vmem>>, vector<1x2x2xf32>
    %532 = vector.shape_cast %531 : vector<1x2x2xf32> to vector<2x2xf32>
    %533 = arith.index_cast %c5_i32 : i32 to index
    %c0_132 = arith.constant 0 : index
    %c0_133 = arith.constant 0 : index
    %534 = vector.load %arg6[%533, %c0_132, %c0_133] : memref<8x2x32xf32, #tpu.memory_space<vmem>>, vector<1x2x32xf32>
    %535 = vector.shape_cast %534 : vector<1x2x32xf32> to vector<2x32xf32>
    %536 = arith.mulf %516, %535 : vector<2x32xf32>
    %cst_134 = arith.constant dense<0.000000e+00> : vector<2x130xf32>
    %537 = tpu.matmul %536, %5, %cst_134 {dimension_numbers = #tpu.dot_dimension_numbers<[1], [0], [0], [1], [0, 0, 1, 1], [], []>} : vector<2x32xf32>, vector<32x130xf32>, vector<2x130xf32> -> vector<2x130xf32>
    %538 = vector.extract_strided_slice %537 {offsets = [0, 128], sizes = [2, 2], strides = [1, 1]} : vector<2x130xf32> to vector<2x2xf32>
    %539 = arith.addf %538, %8 : vector<2x2xf32>
    %540 = vector.broadcast %3 : f32 to vector<2x2xf32>
    %541 = arith.maximumf %540, %539 : vector<2x2xf32>
    %542 = vector.broadcast %4 : f32 to vector<2x2xf32>
    %543 = arith.minimumf %542, %541 : vector<2x2xf32>
    %544 = arith.mulf %529, %543 : vector<2x2xf32>
    %545 = arith.addf %526, %544 : vector<2x2xf32>
    %546 = vector.extract_strided_slice %545 {offsets = [0, 0], sizes = [2, 1], strides = [1, 1]} : vector<2x2xf32> to vector<2x1xf32>
    %547 = vector.broadcast %546 : vector<2x1xf32> to vector<2x2xf32>
    %548 = vector.broadcast %9 : vector<1x2xf32> to vector<2x2xf32>
    %549 = arith.mulf %547, %548 : vector<2x2xf32>
    %550 = vector.extract_strided_slice %545 {offsets = [0, 1], sizes = [2, 1], strides = [1, 1]} : vector<2x2xf32> to vector<2x1xf32>
    %551 = vector.broadcast %550 : vector<2x1xf32> to vector<2x2xf32>
    %552 = vector.broadcast %10 : vector<1x2xf32> to vector<2x2xf32>
    %553 = arith.mulf %551, %552 : vector<2x2xf32>
    %554 = arith.addf %549, %553 : vector<2x2xf32>
    %555 = arith.index_cast %c5_i32 : i32 to index
    %c0_135 = arith.constant 0 : index
    %c0_136 = arith.constant 0 : index
    %556 = vector.load %arg8[%555, %c0_135, %c0_136] : memref<8x2x2xf32, #tpu.memory_space<vmem>>, vector<1x2x2xf32>
    %557 = vector.shape_cast %556 : vector<1x2x2xf32> to vector<2x2xf32>
    %558 = arith.addf %554, %557 : vector<2x2xf32>
    %559 = vector.broadcast %3 : f32 to vector<2x2xf32>
    %560 = arith.maximumf %559, %558 : vector<2x2xf32>
    %561 = vector.broadcast %4 : f32 to vector<2x2xf32>
    %562 = arith.minimumf %561, %560 : vector<2x2xf32>
    %563 = arith.index_cast %c5_i32 : i32 to index
    %c0_137 = arith.constant 0 : index
    %c0_138 = arith.constant 0 : index
    %564 = vector.load %arg7[%563, %c0_137, %c0_138] : memref<8x2x2xf32, #tpu.memory_space<vmem>>, vector<1x2x2xf32>
    %565 = vector.shape_cast %564 : vector<1x2x2xf32> to vector<2x2xf32>
    %566 = arith.mulf %565, %562 : vector<2x2xf32>
    %cst_139 = arith.constant 1.000000e+00 : f32
    %567 = vector.broadcast %cst_139 : f32 to vector<2x2xf32>
    %568 = arith.subf %567, %565 : vector<2x2xf32>
    %569 = arith.mulf %568, %543 : vector<2x2xf32>
    %570 = arith.addf %566, %569 : vector<2x2xf32>
    %571 = vector.broadcast %3 : f32 to vector<2x2xf32>
    %572 = arith.maximumf %571, %570 : vector<2x2xf32>
    %573 = vector.broadcast %4 : f32 to vector<2x2xf32>
    %574 = arith.minimumf %573, %572 : vector<2x2xf32>
    %575 = arith.mulf %529, %574 : vector<2x2xf32>
    %576 = arith.addf %526, %575 : vector<2x2xf32>
    %577 = arith.subf %523, %543 : vector<2x2xf32>
    %578 = math.absf %577 : vector<2x2xf32>
    %579 = arith.subf %523, %562 : vector<2x2xf32>
    %580 = math.absf %579 : vector<2x2xf32>
    %581 = arith.addf %578, %580 : vector<2x2xf32>
    %582 = arith.subf %523, %574 : vector<2x2xf32>
    %583 = math.absf %582 : vector<2x2xf32>
    %584 = arith.addf %581, %583 : vector<2x2xf32>
    %585 = arith.mulf %584, %532 : vector<2x2xf32>
    %586 = arith.addf %485, %585 : vector<2x2xf32>
    %587 = arith.index_cast %c5_i32 : i32 to index
    %c0_140 = arith.constant 0 : index
    %c0_141 = arith.constant 0 : index
    %588 = vector.load %arg9[%587, %c0_140, %c0_141] : memref<8x2x128xf32, #tpu.memory_space<vmem>>, vector<1x2x128xf32>
    %589 = vector.shape_cast %588 : vector<1x2x128xf32> to vector<2x128xf32>
    %590 = vector.extract_strided_slice %576 {offsets = [0, 0], sizes = [2, 1], strides = [1, 1]} : vector<2x2xf32> to vector<2x1xf32>
    %591 = vector.broadcast %590 : vector<2x1xf32> to vector<2x128xf32>
    %592 = vector.broadcast %11 : vector<1x128xf32> to vector<2x128xf32>
    %593 = arith.mulf %591, %592 : vector<2x128xf32>
    %594 = arith.addf %589, %593 : vector<2x128xf32>
    %595 = vector.extract_strided_slice %576 {offsets = [0, 1], sizes = [2, 1], strides = [1, 1]} : vector<2x2xf32> to vector<2x1xf32>
    %596 = vector.broadcast %595 : vector<2x1xf32> to vector<2x128xf32>
    %597 = vector.broadcast %12 : vector<1x128xf32> to vector<2x128xf32>
    %598 = arith.mulf %596, %597 : vector<2x128xf32>
    %599 = arith.addf %594, %598 : vector<2x128xf32>
    %600 = vector.extract_strided_slice %537 {offsets = [0, 0], sizes = [2, 128], strides = [1, 1]} : vector<2x130xf32> to vector<2x128xf32>
    %601 = arith.addf %599, %600 : vector<2x128xf32>
    %602 = vector.extract_strided_slice %601 {offsets = [0, 0], sizes = [2, 96], strides = [1, 1]} : vector<2x128xf32> to vector<2x96xf32>
    %603 = arith.negf %602 : vector<2x96xf32>
    %604 = math.exp %603 : vector<2x96xf32>
    %cst_142 = arith.constant 1.000000e+00 : f32
    %605 = vector.broadcast %cst_142 : f32 to vector<2x96xf32>
    %606 = arith.addf %605, %604 : vector<2x96xf32>
    %607 = arith.divf %605, %606 : vector<2x96xf32>
    %608 = vector.extract_strided_slice %601 {offsets = [0, 96], sizes = [2, 32], strides = [1, 1]} : vector<2x128xf32> to vector<2x32xf32>
    %609 = math.tanh %608 : vector<2x32xf32>
    %610 = vector.extract_strided_slice %607 {offsets = [0, 0], sizes = [2, 32], strides = [1, 1]} : vector<2x96xf32> to vector<2x32xf32>
    %611 = vector.extract_strided_slice %607 {offsets = [0, 32], sizes = [2, 32], strides = [1, 1]} : vector<2x96xf32> to vector<2x32xf32>
    %612 = vector.extract_strided_slice %607 {offsets = [0, 64], sizes = [2, 32], strides = [1, 1]} : vector<2x96xf32> to vector<2x32xf32>
    %613 = arith.mulf %611, %514 : vector<2x32xf32>
    %614 = arith.mulf %610, %609 : vector<2x32xf32>
    %615 = arith.addf %613, %614 : vector<2x32xf32>
    %616 = math.tanh %615 : vector<2x32xf32>
    %617 = arith.mulf %612, %616 : vector<2x32xf32>
    %618 = arith.index_cast %c5_i32 : i32 to index
    %c0_143 = arith.constant 0 : index
    %c0_144 = arith.constant 0 : index
    %619 = vector.load %arg15[%618, %c0_143, %c0_144] : memref<8x2x2xf32, #tpu.memory_space<vmem>>, vector<1x2x2xf32>
    %620 = vector.shape_cast %619 : vector<1x2x2xf32> to vector<2x2xf32>
    %621 = vector.shape_cast %576 : vector<2x2xf32> to vector<1x2x2xf32>
    tpu.vector_store %arg15[%618, %c0_143, %c0_144], %621 {strides = array<i32>} : memref<8x2x2xf32, #tpu.memory_space<vmem>>, vector<1x2x2xf32>,
    %c6_i32 = arith.constant 6 : i32
    %622 = arith.index_cast %c6_i32 : i32 to index
    %c0_145 = arith.constant 0 : index
    %c0_146 = arith.constant 0 : index
    %623 = vector.load %arg2[%622, %c0_145, %c0_146] : memref<8x2x2xf32, #tpu.memory_space<vmem>>, vector<1x2x2xf32>
    %624 = vector.shape_cast %623 : vector<1x2x2xf32> to vector<2x2xf32>
    %625 = arith.index_cast %c6_i32 : i32 to index
    %c0_147 = arith.constant 0 : index
    %c0_148 = arith.constant 0 : index
    %626 = vector.load %arg3[%625, %c0_147, %c0_148] : memref<8x2x2xf32, #tpu.memory_space<vmem>>, vector<1x2x2xf32>
    %627 = vector.shape_cast %626 : vector<1x2x2xf32> to vector<2x2xf32>
    %628 = arith.index_cast %c6_i32 : i32 to index
    %c0_149 = arith.constant 0 : index
    %c0_150 = arith.constant 0 : index
    %629 = vector.load %arg4[%628, %c0_149, %c0_150] : memref<8x2x2xf32, #tpu.memory_space<vmem>>, vector<1x2x2xf32>
    %630 = vector.shape_cast %629 : vector<1x2x2xf32> to vector<2x2xf32>
    %631 = arith.index_cast %c6_i32 : i32 to index
    %c0_151 = arith.constant 0 : index
    %c0_152 = arith.constant 0 : index
    %632 = vector.load %arg5[%631, %c0_151, %c0_152] : memref<8x2x2xf32, #tpu.memory_space<vmem>>, vector<1x2x2xf32>
    %633 = vector.shape_cast %632 : vector<1x2x2xf32> to vector<2x2xf32>
    %634 = arith.index_cast %c6_i32 : i32 to index
    %c0_153 = arith.constant 0 : index
    %c0_154 = arith.constant 0 : index
    %635 = vector.load %arg6[%634, %c0_153, %c0_154] : memref<8x2x32xf32, #tpu.memory_space<vmem>>, vector<1x2x32xf32>
    %636 = vector.shape_cast %635 : vector<1x2x32xf32> to vector<2x32xf32>
    %637 = arith.mulf %617, %636 : vector<2x32xf32>
    %cst_155 = arith.constant dense<0.000000e+00> : vector<2x130xf32>
    %638 = tpu.matmul %637, %5, %cst_155 {dimension_numbers = #tpu.dot_dimension_numbers<[1], [0], [0], [1], [0, 0, 1, 1], [], []>} : vector<2x32xf32>, vector<32x130xf32>, vector<2x130xf32> -> vector<2x130xf32>
    %639 = vector.extract_strided_slice %638 {offsets = [0, 128], sizes = [2, 2], strides = [1, 1]} : vector<2x130xf32> to vector<2x2xf32>
    %640 = arith.addf %639, %8 : vector<2x2xf32>
    %641 = vector.broadcast %3 : f32 to vector<2x2xf32>
    %642 = arith.maximumf %641, %640 : vector<2x2xf32>
    %643 = vector.broadcast %4 : f32 to vector<2x2xf32>
    %644 = arith.minimumf %643, %642 : vector<2x2xf32>
    %645 = arith.mulf %630, %644 : vector<2x2xf32>
    %646 = arith.addf %627, %645 : vector<2x2xf32>
    %647 = vector.extract_strided_slice %646 {offsets = [0, 0], sizes = [2, 1], strides = [1, 1]} : vector<2x2xf32> to vector<2x1xf32>
    %648 = vector.broadcast %647 : vector<2x1xf32> to vector<2x2xf32>
    %649 = vector.broadcast %9 : vector<1x2xf32> to vector<2x2xf32>
    %650 = arith.mulf %648, %649 : vector<2x2xf32>
    %651 = vector.extract_strided_slice %646 {offsets = [0, 1], sizes = [2, 1], strides = [1, 1]} : vector<2x2xf32> to vector<2x1xf32>
    %652 = vector.broadcast %651 : vector<2x1xf32> to vector<2x2xf32>
    %653 = vector.broadcast %10 : vector<1x2xf32> to vector<2x2xf32>
    %654 = arith.mulf %652, %653 : vector<2x2xf32>
    %655 = arith.addf %650, %654 : vector<2x2xf32>
    %656 = arith.index_cast %c6_i32 : i32 to index
    %c0_156 = arith.constant 0 : index
    %c0_157 = arith.constant 0 : index
    %657 = vector.load %arg8[%656, %c0_156, %c0_157] : memref<8x2x2xf32, #tpu.memory_space<vmem>>, vector<1x2x2xf32>
    %658 = vector.shape_cast %657 : vector<1x2x2xf32> to vector<2x2xf32>
    %659 = arith.addf %655, %658 : vector<2x2xf32>
    %660 = vector.broadcast %3 : f32 to vector<2x2xf32>
    %661 = arith.maximumf %660, %659 : vector<2x2xf32>
    %662 = vector.broadcast %4 : f32 to vector<2x2xf32>
    %663 = arith.minimumf %662, %661 : vector<2x2xf32>
    %664 = arith.index_cast %c6_i32 : i32 to index
    %c0_158 = arith.constant 0 : index
    %c0_159 = arith.constant 0 : index
    %665 = vector.load %arg7[%664, %c0_158, %c0_159] : memref<8x2x2xf32, #tpu.memory_space<vmem>>, vector<1x2x2xf32>
    %666 = vector.shape_cast %665 : vector<1x2x2xf32> to vector<2x2xf32>
    %667 = arith.mulf %666, %663 : vector<2x2xf32>
    %cst_160 = arith.constant 1.000000e+00 : f32
    %668 = vector.broadcast %cst_160 : f32 to vector<2x2xf32>
    %669 = arith.subf %668, %666 : vector<2x2xf32>
    %670 = arith.mulf %669, %644 : vector<2x2xf32>
    %671 = arith.addf %667, %670 : vector<2x2xf32>
    %672 = vector.broadcast %3 : f32 to vector<2x2xf32>
    %673 = arith.maximumf %672, %671 : vector<2x2xf32>
    %674 = vector.broadcast %4 : f32 to vector<2x2xf32>
    %675 = arith.minimumf %674, %673 : vector<2x2xf32>
    %676 = arith.mulf %630, %675 : vector<2x2xf32>
    %677 = arith.addf %627, %676 : vector<2x2xf32>
    %678 = arith.subf %624, %644 : vector<2x2xf32>
    %679 = math.absf %678 : vector<2x2xf32>
    %680 = arith.subf %624, %663 : vector<2x2xf32>
    %681 = math.absf %680 : vector<2x2xf32>
    %682 = arith.addf %679, %681 : vector<2x2xf32>
    %683 = arith.subf %624, %675 : vector<2x2xf32>
    %684 = math.absf %683 : vector<2x2xf32>
    %685 = arith.addf %682, %684 : vector<2x2xf32>
    %686 = arith.mulf %685, %633 : vector<2x2xf32>
    %687 = arith.addf %586, %686 : vector<2x2xf32>
    %688 = arith.index_cast %c6_i32 : i32 to index
    %c0_161 = arith.constant 0 : index
    %c0_162 = arith.constant 0 : index
    %689 = vector.load %arg9[%688, %c0_161, %c0_162] : memref<8x2x128xf32, #tpu.memory_space<vmem>>, vector<1x2x128xf32>
    %690 = vector.shape_cast %689 : vector<1x2x128xf32> to vector<2x128xf32>
    %691 = vector.extract_strided_slice %677 {offsets = [0, 0], sizes = [2, 1], strides = [1, 1]} : vector<2x2xf32> to vector<2x1xf32>
    %692 = vector.broadcast %691 : vector<2x1xf32> to vector<2x128xf32>
    %693 = vector.broadcast %11 : vector<1x128xf32> to vector<2x128xf32>
    %694 = arith.mulf %692, %693 : vector<2x128xf32>
    %695 = arith.addf %690, %694 : vector<2x128xf32>
    %696 = vector.extract_strided_slice %677 {offsets = [0, 1], sizes = [2, 1], strides = [1, 1]} : vector<2x2xf32> to vector<2x1xf32>
    %697 = vector.broadcast %696 : vector<2x1xf32> to vector<2x128xf32>
    %698 = vector.broadcast %12 : vector<1x128xf32> to vector<2x128xf32>
    %699 = arith.mulf %697, %698 : vector<2x128xf32>
    %700 = arith.addf %695, %699 : vector<2x128xf32>
    %701 = vector.extract_strided_slice %638 {offsets = [0, 0], sizes = [2, 128], strides = [1, 1]} : vector<2x130xf32> to vector<2x128xf32>
    %702 = arith.addf %700, %701 : vector<2x128xf32>
    %703 = vector.extract_strided_slice %702 {offsets = [0, 0], sizes = [2, 96], strides = [1, 1]} : vector<2x128xf32> to vector<2x96xf32>
    %704 = arith.negf %703 : vector<2x96xf32>
    %705 = math.exp %704 : vector<2x96xf32>
    %cst_163 = arith.constant 1.000000e+00 : f32
    %706 = vector.broadcast %cst_163 : f32 to vector<2x96xf32>
    %707 = arith.addf %706, %705 : vector<2x96xf32>
    %708 = arith.divf %706, %707 : vector<2x96xf32>
    %709 = vector.extract_strided_slice %702 {offsets = [0, 96], sizes = [2, 32], strides = [1, 1]} : vector<2x128xf32> to vector<2x32xf32>
    %710 = math.tanh %709 : vector<2x32xf32>
    %711 = vector.extract_strided_slice %708 {offsets = [0, 0], sizes = [2, 32], strides = [1, 1]} : vector<2x96xf32> to vector<2x32xf32>
    %712 = vector.extract_strided_slice %708 {offsets = [0, 32], sizes = [2, 32], strides = [1, 1]} : vector<2x96xf32> to vector<2x32xf32>
    %713 = vector.extract_strided_slice %708 {offsets = [0, 64], sizes = [2, 32], strides = [1, 1]} : vector<2x96xf32> to vector<2x32xf32>
    %714 = arith.mulf %712, %615 : vector<2x32xf32>
    %715 = arith.mulf %711, %710 : vector<2x32xf32>
    %716 = arith.addf %714, %715 : vector<2x32xf32>
    %717 = math.tanh %716 : vector<2x32xf32>
    %718 = arith.mulf %713, %717 : vector<2x32xf32>
    %719 = arith.index_cast %c6_i32 : i32 to index
    %c0_164 = arith.constant 0 : index
    %c0_165 = arith.constant 0 : index
    %720 = vector.load %arg15[%719, %c0_164, %c0_165] : memref<8x2x2xf32, #tpu.memory_space<vmem>>, vector<1x2x2xf32>
    %721 = vector.shape_cast %720 : vector<1x2x2xf32> to vector<2x2xf32>
    %722 = vector.shape_cast %677 : vector<2x2xf32> to vector<1x2x2xf32>
    tpu.vector_store %arg15[%719, %c0_164, %c0_165], %722 {strides = array<i32>} : memref<8x2x2xf32, #tpu.memory_space<vmem>>, vector<1x2x2xf32>,
    %c7_i32 = arith.constant 7 : i32
    %723 = arith.index_cast %c7_i32 : i32 to index
    %c0_166 = arith.constant 0 : index
    %c0_167 = arith.constant 0 : index
    %724 = vector.load %arg2[%723, %c0_166, %c0_167] : memref<8x2x2xf32, #tpu.memory_space<vmem>>, vector<1x2x2xf32>
    %725 = vector.shape_cast %724 : vector<1x2x2xf32> to vector<2x2xf32>
    %726 = arith.index_cast %c7_i32 : i32 to index
    %c0_168 = arith.constant 0 : index
    %c0_169 = arith.constant 0 : index
    %727 = vector.load %arg3[%726, %c0_168, %c0_169] : memref<8x2x2xf32, #tpu.memory_space<vmem>>, vector<1x2x2xf32>
    %728 = vector.shape_cast %727 : vector<1x2x2xf32> to vector<2x2xf32>
    %729 = arith.index_cast %c7_i32 : i32 to index
    %c0_170 = arith.constant 0 : index
    %c0_171 = arith.constant 0 : index
    %730 = vector.load %arg4[%729, %c0_170, %c0_171] : memref<8x2x2xf32, #tpu.memory_space<vmem>>, vector<1x2x2xf32>
    %731 = vector.shape_cast %730 : vector<1x2x2xf32> to vector<2x2xf32>
    %732 = arith.index_cast %c7_i32 : i32 to index
    %c0_172 = arith.constant 0 : index
    %c0_173 = arith.constant 0 : index
    %733 = vector.load %arg5[%732, %c0_172, %c0_173] : memref<8x2x2xf32, #tpu.memory_space<vmem>>, vector<1x2x2xf32>
    %734 = vector.shape_cast %733 : vector<1x2x2xf32> to vector<2x2xf32>
    %735 = arith.index_cast %c7_i32 : i32 to index
    %c0_174 = arith.constant 0 : index
    %c0_175 = arith.constant 0 : index
    %736 = vector.load %arg6[%735, %c0_174, %c0_175] : memref<8x2x32xf32, #tpu.memory_space<vmem>>, vector<1x2x32xf32>
    %737 = vector.shape_cast %736 : vector<1x2x32xf32> to vector<2x32xf32>
    %738 = arith.mulf %718, %737 : vector<2x32xf32>
    %cst_176 = arith.constant dense<0.000000e+00> : vector<2x130xf32>
    %739 = tpu.matmul %738, %5, %cst_176 {dimension_numbers = #tpu.dot_dimension_numbers<[1], [0], [0], [1], [0, 0, 1, 1], [], []>} : vector<2x32xf32>, vector<32x130xf32>, vector<2x130xf32> -> vector<2x130xf32>
    %740 = vector.extract_strided_slice %739 {offsets = [0, 128], sizes = [2, 2], strides = [1, 1]} : vector<2x130xf32> to vector<2x2xf32>
    %741 = arith.addf %740, %8 : vector<2x2xf32>
    %742 = vector.broadcast %3 : f32 to vector<2x2xf32>
    %743 = arith.maximumf %742, %741 : vector<2x2xf32>
    %744 = vector.broadcast %4 : f32 to vector<2x2xf32>
    %745 = arith.minimumf %744, %743 : vector<2x2xf32>
    %746 = arith.mulf %731, %745 : vector<2x2xf32>
    %747 = arith.addf %728, %746 : vector<2x2xf32>
    %748 = vector.extract_strided_slice %747 {offsets = [0, 0], sizes = [2, 1], strides = [1, 1]} : vector<2x2xf32> to vector<2x1xf32>
    %749 = vector.broadcast %748 : vector<2x1xf32> to vector<2x2xf32>
    %750 = vector.broadcast %9 : vector<1x2xf32> to vector<2x2xf32>
    %751 = arith.mulf %749, %750 : vector<2x2xf32>
    %752 = vector.extract_strided_slice %747 {offsets = [0, 1], sizes = [2, 1], strides = [1, 1]} : vector<2x2xf32> to vector<2x1xf32>
    %753 = vector.broadcast %752 : vector<2x1xf32> to vector<2x2xf32>
    %754 = vector.broadcast %10 : vector<1x2xf32> to vector<2x2xf32>
    %755 = arith.mulf %753, %754 : vector<2x2xf32>
    %756 = arith.addf %751, %755 : vector<2x2xf32>
    %757 = arith.index_cast %c7_i32 : i32 to index
    %c0_177 = arith.constant 0 : index
    %c0_178 = arith.constant 0 : index
    %758 = vector.load %arg8[%757, %c0_177, %c0_178] : memref<8x2x2xf32, #tpu.memory_space<vmem>>, vector<1x2x2xf32>
    %759 = vector.shape_cast %758 : vector<1x2x2xf32> to vector<2x2xf32>
    %760 = arith.addf %756, %759 : vector<2x2xf32>
    %761 = vector.broadcast %3 : f32 to vector<2x2xf32>
    %762 = arith.maximumf %761, %760 : vector<2x2xf32>
    %763 = vector.broadcast %4 : f32 to vector<2x2xf32>
    %764 = arith.minimumf %763, %762 : vector<2x2xf32>
    %765 = arith.index_cast %c7_i32 : i32 to index
    %c0_179 = arith.constant 0 : index
    %c0_180 = arith.constant 0 : index
    %766 = vector.load %arg7[%765, %c0_179, %c0_180] : memref<8x2x2xf32, #tpu.memory_space<vmem>>, vector<1x2x2xf32>
    %767 = vector.shape_cast %766 : vector<1x2x2xf32> to vector<2x2xf32>
    %768 = arith.mulf %767, %764 : vector<2x2xf32>
    %cst_181 = arith.constant 1.000000e+00 : f32
    %769 = vector.broadcast %cst_181 : f32 to vector<2x2xf32>
    %770 = arith.subf %769, %767 : vector<2x2xf32>
    %771 = arith.mulf %770, %745 : vector<2x2xf32>
    %772 = arith.addf %768, %771 : vector<2x2xf32>
    %773 = vector.broadcast %3 : f32 to vector<2x2xf32>
    %774 = arith.maximumf %773, %772 : vector<2x2xf32>
    %775 = vector.broadcast %4 : f32 to vector<2x2xf32>
    %776 = arith.minimumf %775, %774 : vector<2x2xf32>
    %777 = arith.mulf %731, %776 : vector<2x2xf32>
    %778 = arith.addf %728, %777 : vector<2x2xf32>
    %779 = arith.subf %725, %745 : vector<2x2xf32>
    %780 = math.absf %779 : vector<2x2xf32>
    %781 = arith.subf %725, %764 : vector<2x2xf32>
    %782 = math.absf %781 : vector<2x2xf32>
    %783 = arith.addf %780, %782 : vector<2x2xf32>
    %784 = arith.subf %725, %776 : vector<2x2xf32>
    %785 = math.absf %784 : vector<2x2xf32>
    %786 = arith.addf %783, %785 : vector<2x2xf32>
    %787 = arith.mulf %786, %734 : vector<2x2xf32>
    %788 = arith.addf %687, %787 : vector<2x2xf32>
    %789 = arith.index_cast %c7_i32 : i32 to index
    %c0_182 = arith.constant 0 : index
    %c0_183 = arith.constant 0 : index
    %790 = vector.load %arg9[%789, %c0_182, %c0_183] : memref<8x2x128xf32, #tpu.memory_space<vmem>>, vector<1x2x128xf32>
    %791 = vector.shape_cast %790 : vector<1x2x128xf32> to vector<2x128xf32>
    %792 = vector.extract_strided_slice %778 {offsets = [0, 0], sizes = [2, 1], strides = [1, 1]} : vector<2x2xf32> to vector<2x1xf32>
    %793 = vector.broadcast %792 : vector<2x1xf32> to vector<2x128xf32>
    %794 = vector.broadcast %11 : vector<1x128xf32> to vector<2x128xf32>
    %795 = arith.mulf %793, %794 : vector<2x128xf32>
    %796 = arith.addf %791, %795 : vector<2x128xf32>
    %797 = vector.extract_strided_slice %778 {offsets = [0, 1], sizes = [2, 1], strides = [1, 1]} : vector<2x2xf32> to vector<2x1xf32>
    %798 = vector.broadcast %797 : vector<2x1xf32> to vector<2x128xf32>
    %799 = vector.broadcast %12 : vector<1x128xf32> to vector<2x128xf32>
    %800 = arith.mulf %798, %799 : vector<2x128xf32>
    %801 = arith.addf %796, %800 : vector<2x128xf32>
    %802 = vector.extract_strided_slice %739 {offsets = [0, 0], sizes = [2, 128], strides = [1, 1]} : vector<2x130xf32> to vector<2x128xf32>
    %803 = arith.addf %801, %802 : vector<2x128xf32>
    %804 = vector.extract_strided_slice %803 {offsets = [0, 0], sizes = [2, 96], strides = [1, 1]} : vector<2x128xf32> to vector<2x96xf32>
    %805 = arith.negf %804 : vector<2x96xf32>
    %806 = math.exp %805 : vector<2x96xf32>
    %cst_184 = arith.constant 1.000000e+00 : f32
    %807 = vector.broadcast %cst_184 : f32 to vector<2x96xf32>
    %808 = arith.addf %807, %806 : vector<2x96xf32>
    %809 = arith.divf %807, %808 : vector<2x96xf32>
    %810 = vector.extract_strided_slice %803 {offsets = [0, 96], sizes = [2, 32], strides = [1, 1]} : vector<2x128xf32> to vector<2x32xf32>
    %811 = math.tanh %810 : vector<2x32xf32>
    %812 = vector.extract_strided_slice %809 {offsets = [0, 0], sizes = [2, 32], strides = [1, 1]} : vector<2x96xf32> to vector<2x32xf32>
    %813 = vector.extract_strided_slice %809 {offsets = [0, 32], sizes = [2, 32], strides = [1, 1]} : vector<2x96xf32> to vector<2x32xf32>
    %814 = vector.extract_strided_slice %809 {offsets = [0, 64], sizes = [2, 32], strides = [1, 1]} : vector<2x96xf32> to vector<2x32xf32>
    %815 = arith.mulf %813, %716 : vector<2x32xf32>
    %816 = arith.mulf %812, %811 : vector<2x32xf32>
    %817 = arith.addf %815, %816 : vector<2x32xf32>
    %818 = math.tanh %817 : vector<2x32xf32>
    %819 = arith.mulf %814, %818 : vector<2x32xf32>
    %820 = arith.index_cast %c7_i32 : i32 to index
    %c0_185 = arith.constant 0 : index
    %c0_186 = arith.constant 0 : index
    %821 = vector.load %arg15[%820, %c0_185, %c0_186] : memref<8x2x2xf32, #tpu.memory_space<vmem>>, vector<1x2x2xf32>
    %822 = vector.shape_cast %821 : vector<1x2x2xf32> to vector<2x2xf32>
    %823 = vector.shape_cast %778 : vector<2x2xf32> to vector<1x2x2xf32>
    tpu.vector_store %arg15[%820, %c0_185, %c0_186], %823 {strides = array<i32>} : memref<8x2x2xf32, #tpu.memory_space<vmem>>, vector<1x2x2xf32>,
    %c8_i32 = arith.constant 8 : i32
    %c0_187 = arith.constant 0 : index
    %c0_188 = arith.constant 0 : index
    %824 = vector.load %arg16[%c0_187, %c0_188] : memref<2x32xf32, #tpu.memory_space<vmem>>, vector<2x32xf32>
    tpu.vector_store %arg16[%c0_187, %c0_188], %819 {strides = array<i32>} : memref<2x32xf32, #tpu.memory_space<vmem>>, vector<2x32xf32>,
    %c0_189 = arith.constant 0 : index
    %c0_190 = arith.constant 0 : index
    %825 = vector.load %arg17[%c0_189, %c0_190] : memref<2x32xf32, #tpu.memory_space<vmem>>, vector<2x32xf32>
    tpu.vector_store %arg17[%c0_189, %c0_190], %817 {strides = array<i32>} : memref<2x32xf32, #tpu.memory_space<vmem>>, vector<2x32xf32>,
    %c0_191 = arith.constant 0 : index
    %c0_192 = arith.constant 0 : index
    %826 = vector.load %arg18[%c0_191, %c0_192] : memref<2x2xf32, #tpu.memory_space<vmem>>, vector<2x2xf32>
    tpu.vector_store %arg18[%c0_191, %c0_192], %788 {strides = array<i32>} : memref<2x2xf32, #tpu.memory_space<vmem>>, vector<2x2xf32>,
    %827 = vector.shape_cast %788 : vector<2x2xf32> to vector<1x2x2xf32>
    %cst_193 = arith.constant dense<0.000000e+00> : vector<1xf32>
    %828 = vector.multi_reduction <add>, %827, %cst_193 [1, 2] : vector<1x2x2xf32> to vector<1xf32>
    %829 = vector.shape_cast %828 : vector<1xf32> to vector<1x1x1xf32>
    %830 = vector.extract %829[0, 0, 0] : f32 from vector<1x1x1xf32>
    %c0_194 = arith.constant 0 : index
    %c0_195 = arith.constant 0 : index
    %831 = memref.load %arg14[%c0_194, %c0_195] : memref<1x1xf32, #tpu.memory_space<smem>>
    memref.store %830, %arg14[%c0_194, %c0_195] : memref<1x1xf32, #tpu.memory_space<smem>>
    return
  }
  func.func @transform_0(%arg0: i32) -> i32 {
    %c0_i32 = arith.constant 0 : i32
    %c0_i32_0 = arith.constant 0 : i32
    return %c0_i32 : i32
  }
  func.func @transform_1(%arg0: i32) -> (i32, i32, i32) {
    %c0_i32 = arith.constant 0 : i32
    %c0_i32_0 = arith.constant 0 : i32
    %c0_i32_1 = arith.constant 0 : i32
    return %arg0, %c0_i32, %c0_i32_0 : i32, i32, i32
  }
  func.func @transform_2(%arg0: i32) -> (i32, i32, i32) {
    %c0_i32 = arith.constant 0 : i32
    %c0_i32_0 = arith.constant 0 : i32
    %c0_i32_1 = arith.constant 0 : i32
    return %arg0, %c0_i32, %c0_i32_0 : i32, i32, i32
  }
  func.func @transform_3(%arg0: i32) -> (i32, i32, i32) {
    %c0_i32 = arith.constant 0 : i32
    %c0_i32_0 = arith.constant 0 : i32
    %c0_i32_1 = arith.constant 0 : i32
    return %arg0, %c0_i32, %c0_i32_0 : i32, i32, i32
  }
  func.func @transform_4(%arg0: i32) -> (i32, i32, i32) {
    %c0_i32 = arith.constant 0 : i32
    %c0_i32_0 = arith.constant 0 : i32
    %c0_i32_1 = arith.constant 0 : i32
    return %arg0, %c0_i32, %c0_i32_0 : i32, i32, i32
  }
  func.func @transform_5(%arg0: i32) -> (i32, i32, i32) {
    %c0_i32 = arith.constant 0 : i32
    %c0_i32_0 = arith.constant 0 : i32
    %c0_i32_1 = arith.constant 0 : i32
    return %arg0, %c0_i32, %c0_i32_0 : i32, i32, i32
  }
  func.func @transform_6(%arg0: i32) -> (i32, i32, i32) {
    %c0_i32 = arith.constant 0 : i32
    %c0_i32_0 = arith.constant 0 : i32
    %c0_i32_1 = arith.constant 0 : i32
    return %arg0, %c0_i32, %c0_i32_0 : i32, i32, i32
  }
  func.func @transform_7(%arg0: i32) -> (i32, i32, i32) {
    %c0_i32 = arith.constant 0 : i32
    %c0_i32_0 = arith.constant 0 : i32
    %c0_i32_1 = arith.constant 0 : i32
    return %arg0, %c0_i32, %c0_i32_0 : i32, i32, i32
  }
  func.func @transform_8(%arg0: i32) -> (i32, i32, i32) {
    %c0_i32 = arith.constant 0 : i32
    %c0_i32_0 = arith.constant 0 : i32
    %c0_i32_1 = arith.constant 0 : i32
    return %arg0, %c0_i32, %c0_i32_0 : i32, i32, i32
  }
  func.func @transform_9(%arg0: i32) -> (i32, i32) {
    %c0_i32 = arith.constant 0 : i32
    %c0_i32_0 = arith.constant 0 : i32
    %c0_i32_1 = arith.constant 0 : i32
    return %c0_i32, %c0_i32_0 : i32, i32
  }
  func.func @transform_10(%arg0: i32) -> (i32, i32) {
    %c0_i32 = arith.constant 0 : i32
    %c0_i32_0 = arith.constant 0 : i32
    %c0_i32_1 = arith.constant 0 : i32
    return %c0_i32, %c0_i32_0 : i32, i32
  }
  func.func @transform_11(%arg0: i32) -> (i32, i32) {
    %c0_i32 = arith.constant 0 : i32
    %c0_i32_0 = arith.constant 0 : i32
    %c0_i32_1 = arith.constant 0 : i32
    return %c0_i32, %c0_i32_0 : i32, i32
  }
  func.func @transform_12(%arg0: i32) -> (i32, i32) {
    %c0_i32 = arith.constant 0 : i32
    %c0_i32_0 = arith.constant 0 : i32
    %c0_i32_1 = arith.constant 0 : i32
    return %c0_i32, %c0_i32_0 : i32, i32
  }
  func.func @transform_13(%arg0: i32) -> (i32, i32) {
    %c0_i32 = arith.constant 0 : i32
    %c0_i32_0 = arith.constant 0 : i32
    %c0_i32_1 = arith.constant 0 : i32
    return %c0_i32, %c0_i32_0 : i32, i32
  }
  func.func @transform_14(%arg0: i32) -> (i32, i32, i32) {
    %c0_i32 = arith.constant 0 : i32
    %c0_i32_0 = arith.constant 0 : i32
    %c0_i32_1 = arith.constant 0 : i32
    return %arg0, %c0_i32, %c0_i32_0 : i32, i32, i32
  }
}

</mosaic_0001>

<bundles_post_ra>
// kernel: tpu_custom_call.1
= control target key start
LH: loop header
LB: loop body
LE: loop exit
PB: predicated region body
PF: predicated region fallthrough
CT: control target
= control target key end

     0   :  { %20 = vsyncpa [#allocation7], 0  ;;  %s2296_s0 = inlined_call_operand.vmem [shape: f32[2], index: 0, kind: input, shape index: {}]   ;;  %s2297_s1 = inlined_call_operand.vmem [shape: f32[8,2,2], index: 1, kind: input, shape index: {}]   ;;  %s2298_s2 = inlined_call_operand.vmem [shape: f32[8,2,2], index: 2, kind: input, shape index: {}]   ;;  %s2299_s3 = inlined_call_operand.vmem [shape: f32[8,2,2], index: 3, kind: input, shape index: {}]   ;;  %s2300_s4 = inlined_call_operand.vmem [shape: f32[8,2,2], index: 4, kind: input, shape index: {}]   ;;  %s2301_s5 = inlined_call_operand.vmem [shape: f32[8,2,32], index: 5, kind: input, shape index: {}]   ;;  %s2302_s6 = inlined_call_operand.vmem [shape: f32[8,2,2], index: 6, kind: input, shape index: {}]   ;;  %s2303_s7 = inlined_call_operand.vmem [shape: f32[8,2,2], index: 7, kind: input, shape index: {}]   ;;  %s2304_s8 = inlined_call_operand.vmem [shape: f32[8,2,128], index: 8, kind: input, shape index: {}]   ;;  %s2305_s9 = inlined_call_operand.vmem [shape: f32[32,130], index: 9, kind: input, shape index: {}]   ;;  %s2306_s10 = inlined_call_operand.vmem [shape: f32[1,2], index: 10, kind: input, shape index: {}]   ;;  %s2307_s11 = inlined_call_operand.vmem [shape: f32[2,2], index: 11, kind: input, shape index: {}]   ;;  %s2308_s12 = inlined_call_operand.vmem [shape: f32[2,128], index: 12, kind: input, shape index: {}]   ;;  %s2309_s13 = inlined_call_operand.hbm [shape: f32[1,1], index: 13, kind: output, shape index: {0}]   ;;  %s2310_s14 = inlined_call_operand.vmem [shape: f32[8,2,2], index: 14, kind: output, shape index: {1}]  }
   0x1   :  { %21 = vsyncpa [#allocation6], 0  ;;  %s27_s15 = sshll.u32 %s2296_s0, 4  ;;  %s1606_s16 = smov [#allocation5]   ;;  %s28_s15 = int_to_ptr.vmem [resolvable:$true] %s27_s15 }
   0x2   :  { %30 = dma.vmem_to_smem %s28_s15, 16, %s1606_s16, [#allocation7]  }
   0x3   :  { %1602 = dma.done.wait [#allocation7], 16  }
   0x4   :  { %1603 = vsyncadd [#allocation7], 4294967280 }
   0x5   :  { %59 = sfence }
   0x6   :  { %v1695_v0 = vld [vmem:[%s2305_s9 + $0x38] sm:$0xff]  ;;  %v1700_v1 = vld [vmem:[%s2305_s9 + $0x28] sm:$0xff]  ;;  %vm64_vm0 = vcmask 254976   ;;  %v1607_v2 = vmov 0.0   ;;  %v94_v5 = vld [vmem:[%s2301_s5] sm:$0x3] }
   0x7   :  { %132 = vmatpush.msra.mxu1 %v1695_v0  ;;  %65 = vst.msk [vmem:[#allocation2] sm:$0x3] %vm64_vm0, %v1607_v2  ;;  %296 = vmatpush.msra.mxu3 %v1695_v0  ;;  %v1708_v3 = vld [vmem:[%s2305_s9 + $0x18] sm:$0xff]  ;;  %v1715_v4 = vld [vmem:[%s2305_s9 + $0x8] sm:$0xff]  ;;  %vm96_vm1 = vcmask 261120   ;;  %v1608_v8 = vmov 0  }
   0x8   :  { %66 = vst.msk [vmem:[#allocation3] sm:$0x3] %vm64_vm0, %v1607_v2  ;;  %1485 = vset.pattern.permute.xlu0 %v1608_v8  ;;  %1487 = vset.pattern.permute.xlu1 %v1608_v8  ;;  %s69_s26 = sld [smem:[#allocation5]]  ;;  %v1744_v9 = vld [vmem:[%s2306_s10] ss:$0 sm:$0xff]  ;;  %v1609_v20 = vmov 1  }
   0x9   :  { %133 = vmatpush.msra.mxu1 %v1700_v1  ;;  %297 = vmatpush.msra.mxu3 %v1700_v1  ;;  %s1387_s27 = sld [smem:[#allocation5 + $0x1]]  ;;  %v92_v15 = vld [vmem:[%s2299_s3] sm:$0x3]  ;;  %v1763_v21 = vld [vmem:[%s2305_s9 + $0x30] sm:$0xff]  ;;  %vm67_vm2 = vcmask 9216   ;;  %s1610_s25 = smov 32  }
   0xa   :  { %1489 = vset.pattern.permute.xlu2 %v1608_v8  ;;  %v91_v17 = vld [vmem:[%s2298_s2] sm:$0x3]  ;;  %112 = vmatpush.msra.mxu0 %v1763_v21  ;;  %68 = vst.msk [vmem:[#allocation4] sm:$0x3] %vm67_vm2, %v1607_v2  ;;  %v1776_v23 = vld [vmem:[%s2305_s9 + $0x10] sm:$0xff]  ;;  %s1372_s23 = sshll.u32 %s2309_s13, 4  ;;  %s1373_s23 = int_to_ptr.hbm [resolvable:$true] %s1372_s23 }
   0xb   :  { %134 = vmatpush.msra.mxu1 %v1708_v3  ;;  %298 = vmatpush.msra.mxu3 %v1708_v3  ;;  %v1768_v22 = vld [vmem:[%s2305_s9 + $0x20] sm:$0xff]  ;;  %s1613_s24 = smov [#allocation8]  }
   0xc   :  { %276 = vmatpush.msra.mxu2 %v1763_v21  ;;  %113 = vmatpush.msra.mxu0 %v1768_v22  ;;  %v1785_v25 = vld [vmem:[%s2305_s9] sm:$0xff] }
   0xd   :  { %135 = vmatpush.msra.mxu1 %v1715_v4  ;;  %299 = vmatpush.msra.mxu3 %v1715_v4  ;;  %v1797_v26 = vld [vmem:[%s2307_s11] ss:$0 sm:$0xff]  ;;  %v1802_v27 = vld [vmem:[%s2307_s11 + $0x1] ss:$0 sm:$0xff] }
   0xe   :  { %v87_v6 = vld [vmem:[#allocation2] sm:$0x3]  ;;  %v1746_v11 = vstv %s69_s26  ;;  %277 = vmatpush.msra.mxu2 %v1768_v22  ;;  %114 = vmatpush.msra.mxu0 %v1776_v23 }
   0xf   :  { %453 = vmatpush.msrb.mxu1 %v1695_v0  ;;  %610 = vmatpush.msrb.mxu3 %v1695_v0  ;;  %v95_v7 = vmul.f32 %v94_v5, %v87_v6  ;;  %v1749_v13 = vstv %s1387_s27  ;;  %v161_v31 = vld [vmem:[%s2303_s7] sm:$0x3]  ;;  %v88_v6 = vld [vmem:[#allocation3] sm:$0x3]  ;;  %s1611_s27 = smov 64  }
  0x10   :  { %278 = vmatpush.msra.mxu2 %v1776_v23  ;;  %115 = vmatpush.msra.mxu0 %v1785_v25  ;;  %v165_v33 = vld [vmem:[%s2302_s6] sm:$0x3] }
  0x11   :  { %454 = vmatpush.msrb.mxu1 %v1700_v1  ;;  %611 = vmatpush.msrb.mxu3 %v1700_v1  ;;  %v90_v35 = vld [vmem:[%s2297_s1] sm:$0x3]  ;;  %v167_v36 = vsub.f32 1.0, %v165_v33 }
  0x12   :  { %1389 = vmatmul.msk.f32.vlgmr.msra.gmra.mxu1 %vm96_vm1, %v95_v7  ;;  %279 = vmatpush.msra.mxu2 %v1785_v25  ;;  %v1838_v55 = vld [vmem:[%s2308_s12] ss:$0 sm:$0xff]  ;;  %v1844_v57 = vld [vmem:[%s2308_s12 + $0x1] ss:$0 sm:$0xff] }
  0x13   :  { %455 = vmatpush.msrb.mxu1 %v1708_v3  ;;  %612 = vmatpush.msrb.mxu3 %v1708_v3  ;;  %v184_v58 = vld [vmem:[%s2304_s8] sm:$0x3] }
  0x14   :  { %1388 = vmatmul.msk.f32.vlgmr.msra.gmra.mxu0 %vm96_vm1, %v95_v7  ;;  %590 = vmatpush.msrb.mxu2 %v1763_v21 }
  0x15   :  { %456 = vmatpush.msrb.mxu1 %v1715_v4  ;;  %613 = vmatpush.msrb.mxu3 %v1715_v4 }
  0x16   :  { %433 = vmatpush.msrb.mxu0 %v1763_v21  ;;  %591 = vmatpush.msrb.mxu2 %v1768_v22 }
  0x17   :  { %767 = vmatpush.msra.mxu1 %v1695_v0 }
  0x18   :  { %434 = vmatpush.msrb.mxu0 %v1768_v22  ;;  %592 = vmatpush.msrb.mxu2 %v1776_v23 }
  0x19   :  { %768 = vmatpush.msra.mxu1 %v1700_v1 }
  0x1a   :  { %435 = vmatpush.msrb.mxu0 %v1776_v23  ;;  %593 = vmatpush.msrb.mxu2 %v1785_v25 }
  0x1b   :  { %769 = vmatpush.msra.mxu1 %v1708_v3 }
  0x1c   :  { %436 = vmatpush.msrb.mxu0 %v1785_v25 }
  0x1d   :  { %770 = vmatpush.msra.mxu1 %v1715_v4 }
  0x1e   :  { %747 = vmatpush.msra.mxu0 %v1763_v21 }
  0x20   :  { %748 = vmatpush.msra.mxu0 %v1768_v22 }
  0x22   :  { %749 = vmatpush.msra.mxu0 %v1776_v23 }
  0x24   :  { %750 = vmatpush.msra.mxu0 %v1785_v25 }
  0x8f   :  { %v137_v10 = vpop.f32.mrf.mxu1 }
  0x90   :  { %v140_v12 = vadd.f32 %v1744_v9, %v137_v10 }
  0x91   :  { %v117_v62 = vpop.f32.mrf.mxu0 }
  0x92   :  { %v142_v14 = vmax.f32 %v1746_v11, %v140_v12 }
  0x94   :  { %v144_v16 = vmin.f32 %v1749_v13, %v142_v14  ;;  %v1395_v14 = vld [vmem:[%s2301_s5 + $0x2] sm:$0x3] }
  0x96   :  { %v145_v18 = vmul.f32 %v144_v16, %v92_v15  ;;  %v174_v38 = vsub.f32 %v90_v35, %v144_v16  ;;  %v168_v40 = vmul.f32 %v167_v36, %v144_v16 }
  0x98   :  { %v146_v19 = vadd.f32 %v145_v18, %v91_v17  ;;  %v175_v43 = vand.u32 2147483647, %v174_v38 }
  0x9a   :  { %149 = vperm.xlu0 %1485, %v146_v19  }
  0xa2   :  { %1486 = vset.pattern.permute.xlu0 %v1609_v20 }
  0xa3   :  { %155 = vperm.xlu0 %1486, %v146_v19  }
  0xab   :  { %255 = vrot.lane.b32.xlu0 %v1395_v14, %s1611_s27 }
 0x10c   :  { %v150_v24 = vpop.permute.xlu0 %149 }
 0x10d   :  { %v153_v29 = vmul.f32 %v1797_v26, %v150_v24 }
 0x115   :  { %v156_v28 = vpop.permute.xlu0 %155 }
 0x116   :  { %v159_v30 = vmul.f32 %v1802_v27, %v156_v28 }
 0x118   :  { %v160_v32 = vadd.f32 %v159_v30, %v153_v29 }
 0x11a   :  { %v162_v34 = vadd.f32 %v161_v31, %v160_v32 }
 0x11c   :  { %v163_v37 = vmax.f32 %v1746_v11, %v162_v34 }
 0x11e   :  { %v164_v39 = vmin.f32 %v1749_v13, %v163_v37 }
 0x120   :  { %v166_v41 = vmul.f32 %v165_v33, %v164_v39  ;;  %v176_v42 = vsub.f32 %v90_v35, %v164_v39 }
 0x122   :  { %v177_v44 = vand.u32 2147483647, %v176_v42  ;;  %v169_v45 = vadd.f32 %v168_v40, %v166_v41  ;;  %v256_v40 = vpop.permute.xlu0 %255 }
 0x124   :  { %v178_v46 = vadd.f32 %v177_v44, %v175_v43  ;;  %v170_v47 = vmax.f32 %v1746_v11, %v169_v45 }
 0x126   :  { %v171_v48 = vmin.f32 %v1749_v13, %v170_v47  ;;  %v1393_v47 = vld [vmem:[%s2299_s3 + $0x2] sm:$0x3] }
 0x128   :  { %v172_v49 = vmul.f32 %v171_v48, %v92_v15  ;;  %v179_v50 = vsub.f32 %v90_v35, %v171_v48 }
 0x12a   :  { %v173_v51 = vadd.f32 %v172_v49, %v91_v17  ;;  %v180_v52 = vand.u32 2147483647, %v179_v50  ;;  %v1392_v49 = vld [vmem:[%s2298_s2 + $0x2] sm:$0x3] }
 0x12c   :  { %v1827_v53 = vadd.f32 %v180_v52, %v178_v46  ;;  %187 = vperm.xlu1 %1487, %v173_v51   ;;  %243 = vst.msk [vmem:[%s2310_s14] sm:$0x3] %vm67_vm2, %v173_v51 }
 0x134   :  { %1488 = vset.pattern.permute.xlu1 %v1609_v20 }
 0x135   :  { %194 = vperm.xlu1 %1488, %v173_v51  }
 0x13d   :  { %1490 = vset.pattern.permute.xlu1 %v1608_v8 }
 0x19e   :  { %v188_v54 = vpop.permute.xlu1 %187 }
 0x19f   :  { %v191_v56 = vmul.f32 %v1838_v55, %v188_v54 }
 0x1a1   :  { %v192_v60 = vadd.f32 %v191_v56, %v184_v58 }
 0x1a7   :  { %v195_v59 = vpop.permute.xlu1 %194 }
 0x1a8   :  { %v198_v61 = vmul.f32 %v1844_v57, %v195_v59  ;;  %v1398_v59 = vld [vmem:[%s2303_s7 + $0x2] sm:$0x3] }
 0x1aa   :  { %v199_v63 = vadd.f32 %v198_v61, %v192_v60  ;;  %v1399_v61 = vld [vmem:[%s2302_s6 + $0x2] sm:$0x3] }
 0x1ac   :  { %v200_v2 = vadd.f32 %v199_v63, %v117_v62  ;;  %v1391_v63 = vld [vmem:[%s2297_s1 + $0x2] sm:$0x3] }
 0x1ae   :  { %1509 = vtanh.f32 %v200_v2  ;;  %v1390_v7 = vmul.f32 -1.442695, %v200_v2  ;;  %v329_v2 = vsub.f32 1.0, %v1399_v61 }
 0x1b0   :  { %1511 = vpow2.f32 %v1390_v7 }
 0x1b4   :  { %v1510_v5 = vpop.eup %1509 }
 0x1b5   :  { %227 = vrot.lane.b32.xlu2 %v1510_v5, %s1610_s25 }
 0x1b6   :  { %v1512_v10 = vpop.eup %1511 }
 0x1b7   :  { %v204_v12 = vadd.f32 1.0, %v1512_v10 }
 0x1b9   :  { %1513 = vrcp.f32 %v204_v12  ;;  %v216_v24 = vand.u32 2147483648, %v204_v12  ;;  %vm210_vm4 = vweird.f32 %v204_v12  ;;  %v214_v28 = vand.u32 2147483647, %v204_v12 }
 0x1bb   :  { %v217_v30 = vor.u32 1.1754944e-38, %v216_v24  ;;  %vm215_vm6 = vcmp.eq.f32.partialorder %v214_v28, 8.507059e+37  ;;  %v93_v28 = vld [vmem:[%s2300_s4] sm:$0x3] }
 0x1bd   :  { %222 = vrot.lane.b32.xlu2 %v88_v6, %s1610_s25 }
 0x1bf   :  { %v1514_v15 = vpop.eup %1513 }
 0x1c0   :  { %v206_v16 = vmul.f32 %v1514_v15, %v204_v12  ;;  %vm211_vm3 = vweird.f32 %v1514_v15 }
 0x1c1   :  { %vm212_vm5 = vmor %vm210_vm4, %vm211_vm3 }
 0x1c2   :  { %v207_v17 = vsub.f32 1.0, %v206_v16 }
 0x1c4   :  { %v208_v18 = vmul.f32 %v1514_v15, %v207_v17 }
 0x1c6   :  { %v209_v19 = vadd.f32 %v1514_v15, %v208_v18 }
 0x1c8   :  { %v213_v29 = vsel %vm212_vm5, %v1514_v15, %v209_v19 }
 0x1c9   :  { %v218_v32 = vsel %vm215_vm6, %v217_v30, %v213_v29 }
 0x20f   :  { %v228_v31 = vpop.permute.xlu2 %227 }
 0x210   :  { %v230_v33 = vmul.f32 %v228_v31, %v218_v32  ;;  %v182_v31 = vmul.f32 %v1827_v53, %v93_v28 }
 0x212   :  { %232 = vrot.lane.b32.xlu1 %v230_v33, %s1610_s25 }
 0x217   :  { %v223_v34 = vpop.permute.xlu2 %222 }
 0x218   :  { %v225_v35 = vmul.f32 %v223_v34, %v218_v32  ;;  %v1394_v34 = vld [vmem:[%s2300_s4 + $0x2] sm:$0x3] }
 0x284   :  { %v233_v36 = vpop.permute.xlu1 %232 }
 0x285   :  { %v1857_v37 = vadd.f32 %v233_v36, %v225_v35  ;;  %v89_v35 = vld [vmem:[#allocation4] sm:$0x3] }
 0x287   :  { %1515 = vtanh.f32 %v1857_v37 }
 0x28d   :  { %v1516_v38 = vpop.eup %1515 }
 0x28e   :  { %238 = vrot.lane.b32.xlu2 %v1516_v38, %s1610_s25 }
 0x2e8   :  { %v239_v39 = vpop.permute.xlu2 %238 }
 0x2e9   :  { %v241_v41 = vmul.f32 %v239_v39, %v218_v32  ;;  %v183_v39 = vadd.f32 %v182_v31, %v89_v35  ;;  %v1405_v31 = vld [vmem:[%s2299_s3 + $0x4] sm:$0x3] }
 0x2eb   :  { %v258_v42 = vmul.f32 %v256_v40, %v241_v41  ;;  %v1400_v41 = vld [vmem:[%s2304_s8 + $0x2] sm:$0x3] }
 0x2ed   :  { %260 = vrot.lane.b32.xlu1 %v258_v42, %s1611_s27 }
 0x35f   :  { %v261_v43 = vpop.permute.xlu1 %260 }
 0x360   :  { %1396 = vmatmul.msk.f32.vlgmr.msra.gmra.mxu2 %vm96_vm1, %v261_v43  ;;  %1397 = vmatmul.msk.f32.vlgmr.msra.gmra.mxu3 %vm96_vm1, %v261_v43 }
 0x361   :  { %924 = vmatpush.msra.mxu3 %v1695_v0  ;;  %904 = vmatpush.msra.mxu2 %v1763_v21 }
 0x363   :  { %925 = vmatpush.msra.mxu3 %v1700_v1  ;;  %905 = vmatpush.msra.mxu2 %v1768_v22 }
 0x365   :  { %926 = vmatpush.msra.mxu3 %v1708_v3  ;;  %906 = vmatpush.msra.mxu2 %v1776_v23 }
 0x367   :  { %927 = vmatpush.msra.mxu3 %v1715_v4  ;;  %907 = vmatpush.msra.mxu2 %v1785_v25 }
 0x3e3   :  { %v301_v44 = vpop.f32.mrf.mxu3 }
 0x3e4   :  { %v304_v45 = vadd.f32 %v1744_v9, %v301_v44 }
 0x3e6   :  { %v305_v46 = vmax.f32 %v1746_v11, %v304_v45 }
 0x3e8   :  { %v306_v48 = vmin.f32 %v1749_v13, %v305_v46 }
 0x3ea   :  { %v307_v50 = vmul.f32 %v1393_v47, %v306_v48  ;;  %v336_v6 = vsub.f32 %v1391_v63, %v306_v48  ;;  %v330_v10 = vmul.f32 %v329_v2, %v306_v48 }
 0x3ec   :  { %v308_v51 = vadd.f32 %v1392_v49, %v307_v50  ;;  %v337_v15 = vand.u32 2147483647, %v336_v6 }
 0x3ee   :  { %316 = vperm.xlu0 %1486, %v308_v51   ;;  %311 = vperm.xlu2 %1489, %v308_v51  }
 0x3f6   :  { %1491 = vset.pattern.permute.xlu2 %v1609_v20 }
 0x448   :  { %v312_v52 = vpop.permute.xlu2 %311 }
 0x449   :  { %v314_v56 = vmul.f32 %v1797_v26, %v312_v52 }
 0x460   :  { %v317_v54 = vpop.permute.xlu0 %316 }
 0x461   :  { %v319_v58 = vmul.f32 %v1802_v27, %v317_v54  ;;  %v1407_v54 = vld [vmem:[%s2301_s5 + $0x4] sm:$0x3] }
 0x463   :  { %v320_v60 = vadd.f32 %v319_v58, %v314_v56 }
 0x465   :  { %v323_v62 = vadd.f32 %v1398_v59, %v320_v60 }
 0x467   :  { %v324_v5 = vmax.f32 %v1746_v11, %v323_v62 }
 0x469   :  { %v325_v7 = vmin.f32 %v1749_v13, %v324_v5 }
 0x46b   :  { %v328_v12 = vmul.f32 %v1399_v61, %v325_v7  ;;  %v338_v14 = vsub.f32 %v1391_v63, %v325_v7 }
 0x46d   :  { %v339_v16 = vand.u32 2147483647, %v338_v14  ;;  %v331_v17 = vadd.f32 %v330_v10, %v328_v12 }
 0x46f   :  { %v340_v18 = vadd.f32 %v339_v16, %v337_v15  ;;  %v332_v19 = vmax.f32 %v1746_v11, %v331_v17 }
 0x471   :  { %v333_v24 = vmin.f32 %v1749_v13, %v332_v19 }
 0x473   :  { %v334_v29 = vmul.f32 %v1393_v47, %v333_v24  ;;  %v341_v30 = vsub.f32 %v1391_v63, %v333_v24  ;;  %v281_v47 = vpop.f32.mrf.mxu2 }
 0x475   :  { %v335_v32 = vadd.f32 %v1392_v49, %v334_v29  ;;  %v342_v33 = vand.u32 2147483647, %v341_v30 }
 0x477   :  { %v343_v36 = vadd.f32 %v342_v33, %v340_v18  ;;  %356 = vperm.xlu2 %1491, %v335_v32   ;;  %1402 = vst.msk [vmem:[%s2310_s14 + $0x2] sm:$0x3] %vm67_vm2, %v335_v32  ;;  %350 = vperm.xlu1 %1490, %v335_v32   ;;  %v1404_v33 = vld [vmem:[%s2298_s2 + $0x4] sm:$0x3] }
 0x479   :  { %v344_v38 = vmul.f32 %v1394_v34, %v343_v36 }
 0x47b   :  { %v1908_v40 = vadd.f32 %v344_v38, %v183_v39 }
 0x47f   :  { %1492 = vset.pattern.permute.xlu2 %v1608_v8 }
 0x4d1   :  { %v357_v53 = vpop.permute.xlu2 %356 }
 0x4d2   :  { %v359_v44 = vmul.f32 %v1844_v57, %v357_v53 }
 0x4e9   :  { %v351_v42 = vpop.permute.xlu1 %350 }
 0x4ea   :  { %v353_v43 = vmul.f32 %v1838_v55, %v351_v42 }
 0x4ec   :  { %v354_v45 = vadd.f32 %v1400_v41, %v353_v43  ;;  %v1410_v41 = vld [vmem:[%s2303_s7 + $0x4] sm:$0x3] }
 0x4ed   :  { %v1411_v43 = vld [vmem:[%s2302_s6 + $0x4] sm:$0x3] }
 0x4ee   :  { %v360_v46 = vadd.f32 %v359_v44, %v354_v45  ;;  %v1403_v45 = vld [vmem:[%s2297_s1 + $0x4] sm:$0x3] }
 0x4f0   :  { %v361_v48 = vadd.f32 %v360_v46, %v281_v47  ;;  %v486_v46 = vsub.f32 1.0, %v1411_v43 }
 0x4f2   :  { %1517 = vtanh.f32 %v361_v48  ;;  %v1401_v50 = vmul.f32 -1.442695, %v361_v48 }
 0x4f4   :  { %1519 = vpow2.f32 %v1401_v50 }
 0x4f8   :  { %v1518_v49 = vpop.eup %1517 }
 0x4f9   :  { %384 = vrot.lane.b32.xlu0 %v1518_v49, %s1610_s25 }
 0x4fa   :  { %v1520_v51 = vpop.eup %1519 }
 0x4fb   :  { %v365_v52 = vadd.f32 1.0, %v1520_v51 }
 0x4fd   :  { %1521 = vrcp.f32 %v365_v52  ;;  %v377_v62 = vand.u32 2147483648, %v365_v52  ;;  %vm371_vm8 = vweird.f32 %v365_v52  ;;  %v375_v63 = vand.u32 2147483647, %v365_v52 }
 0x4ff   :  { %v378_v5 = vor.u32 1.1754944e-38, %v377_v62  ;;  %vm376_vm10 = vcmp.eq.f32.partialorder %v375_v63, 8.507059e+37 }
 0x501   :  { %412 = vrot.lane.b32.xlu0 %v1407_v54, %s1611_s27 }
 0x503   :  { %v1522_v56 = vpop.eup %1521 }
 0x504   :  { %v367_v58 = vmul.f32 %v1522_v56, %v365_v52  ;;  %vm372_vm7 = vweird.f32 %v1522_v56 }
 0x505   :  { %vm373_vm9 = vmor %vm371_vm8, %vm372_vm7 }
 0x506   :  { %v368_v59 = vsub.f32 1.0, %v367_v58 }
 0x508   :  { %v369_v60 = vmul.f32 %v1522_v56, %v368_v59 }
 0x50a   :  { %v370_v61 = vadd.f32 %v1522_v56, %v369_v60 }
 0x50c   :  { %v374_v2 = vsel %vm373_vm9, %v1522_v56, %v370_v61 }
 0x50d   :  { %v379_v7 = vsel %vm376_vm10, %v378_v5, %v374_v2 }
 0x50e   :  { %v382_v12 = vmul.f32 %v379_v7, %v1857_v37 }
 0x56b   :  { %v385_v6 = vpop.permute.xlu0 %384 }
 0x56c   :  { %v387_v10 = vmul.f32 %v385_v6, %v379_v7  ;;  %v1406_v6 = vld [vmem:[%s2300_s4 + $0x4] sm:$0x3] }
 0x56e   :  { %389 = vrot.lane.b32.xlu1 %v387_v10, %s1610_s25 }
 0x573   :  { %v413_v18 = vpop.permute.xlu0 %412 }
 0x5e0   :  { %v390_v14 = vpop.permute.xlu1 %389 }
 0x5e1   :  { %v1923_v15 = vadd.f32 %v390_v14, %v382_v12 }
 0x5e3   :  { %1523 = vtanh.f32 %v1923_v15 }
 0x5e9   :  { %v1524_v16 = vpop.eup %1523 }
 0x5ea   :  { %395 = vrot.lane.b32.xlu2 %v1524_v16, %s1610_s25  ;;  %v1412_v16 = vld [vmem:[%s2304_s8 + $0x4] sm:$0x3] }
 0x644   :  { %v396_v17 = vpop.permute.xlu2 %395 }
 0x645   :  { %v398_v19 = vmul.f32 %v396_v17, %v379_v7 }
 0x647   :  { %v415_v24 = vmul.f32 %v413_v18, %v398_v19 }
 0x649   :  { %417 = vrot.lane.b32.xlu1 %v415_v24, %s1611_s27 }
 0x6bb   :  { %v418_v28 = vpop.permute.xlu1 %417 }
 0x6bc   :  { %1408 = vmatmul.msk.f32.vlgmr.msrb.gmra.mxu0 %vm96_vm1, %v418_v28  ;;  %1409 = vmatmul.msk.f32.vlgmr.msrb.gmra.mxu1 %vm96_vm1, %v418_v28 }
 0x6bd   :  { %1081 = vmatpush.msrb.mxu1 %v1695_v0  ;;  %1061 = vmatpush.msrb.mxu0 %v1763_v21 }
 0x6bf   :  { %1082 = vmatpush.msrb.mxu1 %v1700_v1  ;;  %1062 = vmatpush.msrb.mxu0 %v1768_v22 }
 0x6c1   :  { %1083 = vmatpush.msrb.mxu1 %v1708_v3  ;;  %1063 = vmatpush.msrb.mxu0 %v1776_v23 }
 0x6c3   :  { %1084 = vmatpush.msrb.mxu1 %v1715_v4  ;;  %1064 = vmatpush.msrb.mxu0 %v1785_v25 }
 0x739   :  { %v458_v37 = vpop.f32.mrf.mxu1 }
 0x73a   :  { %v461_v29 = vadd.f32 %v1744_v9, %v458_v37  ;;  %v438_v37 = vpop.f32.mrf.mxu0 }
 0x73c   :  { %v462_v30 = vmax.f32 %v1746_v11, %v461_v29 }
 0x73e   :  { %v463_v32 = vmin.f32 %v1749_v13, %v462_v30 }
 0x740   :  { %v464_v34 = vmul.f32 %v1405_v31, %v463_v32  ;;  %v493_v48 = vsub.f32 %v1403_v45, %v463_v32  ;;  %v487_v50 = vmul.f32 %v486_v46, %v463_v32 }
 0x742   :  { %v465_v35 = vadd.f32 %v1404_v33, %v464_v34  ;;  %v494_v54 = vand.u32 2147483647, %v493_v48 }
 0x744   :  { %473 = vperm.xlu0 %1486, %v465_v35   ;;  %468 = vperm.xlu2 %1492, %v465_v35  }
 0x74c   :  { %1493 = vset.pattern.permute.xlu2 %v1609_v20 }
 0x79e   :  { %v469_v36 = vpop.permute.xlu2 %468 }
 0x79f   :  { %v471_v39 = vmul.f32 %v1797_v26, %v469_v36 }
 0x7b6   :  { %v474_v38 = vpop.permute.xlu0 %473 }
 0x7b7   :  { %v476_v53 = vmul.f32 %v1802_v27, %v474_v38 }
 0x7b9   :  { %v477_v42 = vadd.f32 %v476_v53, %v471_v39 }
 0x7bb   :  { %v480_v44 = vadd.f32 %v1410_v41, %v477_v42 }
 0x7bd   :  { %v481_v47 = vmax.f32 %v1746_v11, %v480_v44 }
 0x7bf   :  { %v482_v49 = vmin.f32 %v1749_v13, %v481_v47 }
 0x7c1   :  { %v485_v51 = vmul.f32 %v1411_v43, %v482_v49  ;;  %v495_v52 = vsub.f32 %v1403_v45, %v482_v49 }
 0x7c3   :  { %v496_v56 = vand.u32 2147483647, %v495_v52  ;;  %v488_v58 = vadd.f32 %v487_v50, %v485_v51 }
 0x7c5   :  { %v497_v59 = vadd.f32 %v496_v56, %v494_v54  ;;  %v489_v60 = vmax.f32 %v1746_v11, %v488_v58 }
 0x7c7   :  { %v490_v61 = vmin.f32 %v1749_v13, %v489_v60 }
 0x7c9   :  { %v491_v62 = vmul.f32 %v1405_v31, %v490_v61  ;;  %v498_v63 = vsub.f32 %v1403_v45, %v490_v61 }
 0x7cb   :  { %v492_v2 = vadd.f32 %v1404_v33, %v491_v62  ;;  %v499_v5 = vand.u32 2147483647, %v498_v63  ;;  %v1419_v33 = vld [vmem:[%s2301_s5 + $0x6] sm:$0x3] }
 0x7cc   :  { %v1422_v62 = vld [vmem:[%s2303_s7 + $0x6] sm:$0x3] }
 0x7cd   :  { %v500_v7 = vadd.f32 %v499_v5, %v497_v59  ;;  %513 = vperm.xlu2 %1493, %v492_v2   ;;  %1414 = vst.msk [vmem:[%s2310_s14 + $0x4] sm:$0x3] %vm67_vm2, %v492_v2  ;;  %507 = vperm.xlu1 %1490, %v492_v2   ;;  %v1423_v2 = vld [vmem:[%s2302_s6 + $0x6] sm:$0x3] }
 0x7cf   :  { %v501_v10 = vmul.f32 %v1406_v6, %v500_v7  ;;  %v1415_v6 = vld [vmem:[%s2297_s1 + $0x6] sm:$0x3]  ;;  %v643_v7 = vsub.f32 1.0, %v1423_v2 }
 0x7d1   :  { %v1971_v12 = vadd.f32 %v501_v10, %v1908_v40 }
 0x7d5   :  { %1494 = vset.pattern.permute.xlu2 %v1608_v8 }
 0x827   :  { %v514_v14 = vpop.permute.xlu2 %513 }
 0x828   :  { %v516_v19 = vmul.f32 %v1844_v57, %v514_v14 }
 0x83f   :  { %v508_v17 = vpop.permute.xlu1 %507 }
 0x840   :  { %v510_v18 = vmul.f32 %v1838_v55, %v508_v17 }
 0x842   :  { %v511_v24 = vadd.f32 %v1412_v16, %v510_v18 }
 0x844   :  { %v517_v28 = vadd.f32 %v516_v19, %v511_v24 }
 0x846   :  { %v518_v29 = vadd.f32 %v517_v28, %v438_v37 }
 0x848   :  { %1525 = vtanh.f32 %v518_v29  ;;  %v1413_v40 = vmul.f32 -1.442695, %v518_v29 }
 0x84a   :  { %1527 = vpow2.f32 %v1413_v40 }
 0x84e   :  { %v1526_v30 = vpop.eup %1525 }
 0x84f   :  { %541 = vrot.lane.b32.xlu0 %v1526_v30, %s1610_s25 }
 0x850   :  { %v1528_v31 = vpop.eup %1527 }
 0x851   :  { %v522_v32 = vadd.f32 1.0, %v1528_v31 }
 0x853   :  { %1529 = vrcp.f32 %v522_v32  ;;  %v534_v53 = vand.u32 2147483648, %v522_v32  ;;  %vm528_vm12 = vweird.f32 %v522_v32  ;;  %v532_v41 = vand.u32 2147483647, %v522_v32 }
 0x855   :  { %v535_v43 = vor.u32 1.1754944e-38, %v534_v53  ;;  %vm533_vm14 = vcmp.eq.f32.partialorder %v532_v41, 8.507059e+37  ;;  %v1424_v41 = vld [vmem:[%s2304_s8 + $0x6] sm:$0x3] }
 0x857   :  { %569 = vrot.lane.b32.xlu0 %v1419_v33, %s1611_s27 }
 0x859   :  { %v1530_v34 = vpop.eup %1529 }
 0x85a   :  { %v524_v35 = vmul.f32 %v1530_v34, %v522_v32  ;;  %vm529_vm11 = vweird.f32 %v1530_v34 }
 0x85b   :  { %vm530_vm13 = vmor %vm528_vm12, %vm529_vm11 }
 0x85c   :  { %v525_v36 = vsub.f32 1.0, %v524_v35  ;;  %v1418_v35 = vld [vmem:[%s2300_s4 + $0x6] sm:$0x3] }
 0x85e   :  { %v526_v38 = vmul.f32 %v1530_v34, %v525_v36 }
 0x860   :  { %v527_v39 = vadd.f32 %v1530_v34, %v526_v38 }
 0x862   :  { %v531_v42 = vsel %vm530_vm13, %v1530_v34, %v527_v39 }
 0x863   :  { %v536_v45 = vsel %vm533_vm14, %v535_v43, %v531_v42 }
 0x864   :  { %v539_v47 = vmul.f32 %v536_v45, %v1923_v15 }
 0x8c1   :  { %v542_v44 = vpop.permute.xlu0 %541 }
 0x8c2   :  { %v544_v46 = vmul.f32 %v542_v44, %v536_v45 }
 0x8c4   :  { %546 = vrot.lane.b32.xlu1 %v544_v46, %s1610_s25 }
 0x8c9   :  { %v570_v52 = vpop.permute.xlu0 %569 }
 0x936   :  { %v547_v48 = vpop.permute.xlu1 %546 }
 0x937   :  { %v1986_v49 = vadd.f32 %v547_v48, %v539_v47 }
 0x939   :  { %1531 = vtanh.f32 %v1986_v49 }
 0x93f   :  { %v1532_v50 = vpop.eup %1531 }
 0x940   :  { %552 = vrot.lane.b32.xlu2 %v1532_v50, %s1610_s25 }
 0x99a   :  { %v553_v51 = vpop.permute.xlu2 %552 }
 0x99b   :  { %v555_v54 = vmul.f32 %v553_v51, %v536_v45 }
 0x99d   :  { %v572_v56 = vmul.f32 %v570_v52, %v555_v54  ;;  %v1431_v54 = vld [vmem:[%s2301_s5 + $0x8] sm:$0x3] }
 0x99f   :  { %574 = vrot.lane.b32.xlu1 %v572_v56, %s1611_s27 }
 0xa11   :  { %v575_v58 = vpop.permute.xlu1 %574 }
 0xa12   :  { %1420 = vmatmul.msk.f32.vlgmr.msrb.gmra.mxu2 %vm96_vm1, %v575_v58  ;;  %1421 = vmatmul.msk.f32.vlgmr.msrb.gmra.mxu3 %vm96_vm1, %v575_v58 }
 0xa13   :  { %1238 = vmatpush.msrb.mxu3 %v1695_v0  ;;  %1218 = vmatpush.msrb.mxu2 %v1763_v21  ;;  %v1417_v0 = vld [vmem:[%s2299_s3 + $0x6] sm:$0x3] }
 0xa15   :  { %1239 = vmatpush.msrb.mxu3 %v1700_v1  ;;  %1219 = vmatpush.msrb.mxu2 %v1768_v22 }
 0xa17   :  { %1240 = vmatpush.msrb.mxu3 %v1708_v3  ;;  %1220 = vmatpush.msrb.mxu2 %v1776_v23  ;;  %v1416_v3 = vld [vmem:[%s2298_s2 + $0x6] sm:$0x3] }
 0xa19   :  { %1241 = vmatpush.msrb.mxu3 %v1715_v4  ;;  %1221 = vmatpush.msrb.mxu2 %v1785_v25 }
 0xa95   :  { %v615_v15 = vpop.f32.mrf.mxu3  ;;  %v595_v47 = vpop.f32.mrf.mxu2 }
 0xa96   :  { %v618_v59 = vadd.f32 %v1744_v9, %v615_v15 }
 0xa98   :  { %v619_v60 = vmax.f32 %v1746_v11, %v618_v59 }
 0xa9a   :  { %v620_v1 = vmin.f32 %v1749_v13, %v619_v60 }
 0xa9c   :  { %v621_v21 = vmul.f32 %v1417_v0, %v620_v1  ;;  %v650_v14 = vsub.f32 %v1415_v6, %v620_v1  ;;  %v644_v17 = vmul.f32 %v643_v7, %v620_v1 }
 0xa9e   :  { %v622_v22 = vadd.f32 %v1416_v3, %v621_v21  ;;  %v651_v24 = vand.u32 2147483647, %v650_v14 }
 0xaa0   :  { %630 = vperm.xlu0 %1486, %v622_v22   ;;  %625 = vperm.xlu2 %1494, %v622_v22  }
 0xaa8   :  { %1495 = vset.pattern.permute.xlu2 %v1609_v20 }
 0xafa   :  { %v626_v4 = vpop.permute.xlu2 %625 }
 0xafb   :  { %v628_v25 = vmul.f32 %v1797_v26, %v626_v4 }
 0xb12   :  { %v631_v23 = vpop.permute.xlu0 %630 }
 0xb13   :  { %v633_v61 = vmul.f32 %v1802_v27, %v631_v23 }
 0xb15   :  { %v634_v63 = vadd.f32 %v633_v61, %v628_v25 }
 0xb17   :  { %v637_v5 = vadd.f32 %v1422_v62, %v634_v63 }
 0xb19   :  { %v638_v10 = vmax.f32 %v1746_v11, %v637_v5 }
 0xb1b   :  { %v639_v16 = vmin.f32 %v1749_v13, %v638_v10 }
 0xb1d   :  { %v642_v18 = vmul.f32 %v1423_v2, %v639_v16  ;;  %v652_v19 = vsub.f32 %v1415_v6, %v639_v16 }
 0xb1f   :  { %v653_v28 = vand.u32 2147483647, %v652_v19  ;;  %v645_v37 = vadd.f32 %v644_v17, %v642_v18  ;;  %v1429_v17 = vld [vmem:[%s2299_s3 + $0x8] sm:$0x3] }
 0xb20   :  { %v1428_v19 = vld [vmem:[%s2298_s2 + $0x8] sm:$0x3] }
 0xb21   :  { %v654_v29 = vadd.f32 %v653_v28, %v651_v24  ;;  %v646_v30 = vmax.f32 %v1746_v11, %v645_v37 }
 0xb23   :  { %v647_v40 = vmin.f32 %v1749_v13, %v646_v30 }
 0xb25   :  { %v648_v31 = vmul.f32 %v1417_v0, %v647_v40  ;;  %v655_v32 = vsub.f32 %v1415_v6, %v647_v40  ;;  %v1434_v40 = vld [vmem:[%s2303_s7 + $0x8] sm:$0x3] }
 0xb27   :  { %v649_v33 = vadd.f32 %v1416_v3, %v648_v31  ;;  %v656_v34 = vand.u32 2147483647, %v655_v32  ;;  %v1435_v32 = vld [vmem:[%s2302_s6 + $0x8] sm:$0x3] }
 0xb29   :  { %v657_v36 = vadd.f32 %v656_v34, %v654_v29  ;;  %670 = vperm.xlu2 %1495, %v649_v33   ;;  %1426 = vst.msk [vmem:[%s2310_s14 + $0x6] sm:$0x3] %vm67_vm2, %v649_v33  ;;  %664 = vperm.xlu1 %1490, %v649_v33   ;;  %v1427_v34 = vld [vmem:[%s2297_s1 + $0x8] sm:$0x3] }
 0xb2b   :  { %v658_v38 = vmul.f32 %v1418_v35, %v657_v36  ;;  %v800_v35 = vsub.f32 1.0, %v1435_v32 }
 0xb2d   :  { %v2034_v39 = vadd.f32 %v658_v38, %v1971_v12 }
 0xb31   :  { %1496 = vset.pattern.permute.xlu2 %v1608_v8 }
 0xb83   :  { %v671_v53 = vpop.permute.xlu2 %670 }
 0xb84   :  { %v673_v44 = vmul.f32 %v1844_v57, %v671_v53 }
 0xb9b   :  { %v665_v42 = vpop.permute.xlu1 %664 }
 0xb9c   :  { %v667_v43 = vmul.f32 %v1838_v55, %v665_v42 }
 0xb9e   :  { %v668_v45 = vadd.f32 %v1424_v41, %v667_v43 }
 0xba0   :  { %v674_v46 = vadd.f32 %v673_v44, %v668_v45 }
 0xba2   :  { %v675_v48 = vadd.f32 %v674_v46, %v595_v47 }
 0xba4   :  { %1533 = vtanh.f32 %v675_v48  ;;  %v1425_v12 = vmul.f32 -1.442695, %v675_v48 }
 0xba6   :  { %1535 = vpow2.f32 %v1425_v12 }
 0xbaa   :  { %v1534_v50 = vpop.eup %1533 }
 0xbab   :  { %698 = vrot.lane.b32.xlu0 %v1534_v50, %s1610_s25 }
 0xbac   :  { %v1536_v51 = vpop.eup %1535 }
 0xbad   :  { %v679_v52 = vadd.f32 1.0, %v1536_v51 }
 0xbaf   :  { %1537 = vrcp.f32 %v679_v52  ;;  %v691_v0 = vand.u32 2147483648, %v679_v52  ;;  %vm685_vm3 = vweird.f32 %v679_v52  ;;  %v689_v1 = vand.u32 2147483647, %v679_v52 }
 0xbb1   :  { %v692_v21 = vor.u32 1.1754944e-38, %v691_v0  ;;  %vm690_vm5 = vcmp.eq.f32.partialorder %v689_v1, 8.507059e+37 }
 0xbb3   :  { %726 = vrot.lane.b32.xlu0 %v1431_v54, %s1611_s27 }
 0xbb5   :  { %v1538_v56 = vpop.eup %1537 }
 0xbb6   :  { %v681_v58 = vmul.f32 %v1538_v56, %v679_v52  ;;  %vm686_vm15 = vweird.f32 %v1538_v56  ;;  %v1430_v52 = vld [vmem:[%s2300_s4 + $0x8] sm:$0x3] }
 0xbb7   :  { %vm687_vm4 = vmor %vm685_vm3, %vm686_vm15 }
 0xbb8   :  { %v682_v15 = vsub.f32 1.0, %v681_v58 }
 0xbba   :  { %v683_v59 = vmul.f32 %v1538_v56, %v682_v15 }
 0xbbc   :  { %v684_v60 = vadd.f32 %v1538_v56, %v683_v59  ;;  %v1436_v59 = vld [vmem:[%s2304_s8 + $0x8] sm:$0x3] }
 0xbbe   :  { %v688_v3 = vsel %vm687_vm4, %v1538_v56, %v684_v60 }
 0xbbf   :  { %v693_v4 = vsel %vm690_vm5, %v692_v21, %v688_v3 }
 0xbc0   :  { %v696_v25 = vmul.f32 %v693_v4, %v1986_v49 }
 0xc1d   :  { %v699_v22 = vpop.permute.xlu0 %698 }
 0xc1e   :  { %v701_v23 = vmul.f32 %v699_v22, %v693_v4 }
 0xc20   :  { %703 = vrot.lane.b32.xlu1 %v701_v23, %s1610_s25 }
 0xc25   :  { %v727_v5 = vpop.permute.xlu0 %726 }
 0xc92   :  { %v704_v61 = vpop.permute.xlu1 %703 }
 0xc93   :  { %v2049_v62 = vadd.f32 %v704_v61, %v696_v25 }
 0xc95   :  { %1539 = vtanh.f32 %v2049_v62 }
 0xc9b   :  { %v1540_v63 = vpop.eup %1539 }
 0xc9c   :  { %709 = vrot.lane.b32.xlu2 %v1540_v63, %s1610_s25  ;;  %v1443_v63 = vld [vmem:[%s2301_s5 + $0xa] sm:$0x3] }
 0xcf6   :  { %v710_v2 = vpop.permute.xlu2 %709 }
 0xcf7   :  { %v712_v6 = vmul.f32 %v710_v2, %v693_v4 }
 0xcf9   :  { %v729_v7 = vmul.f32 %v727_v5, %v712_v6 }
 0xcfb   :  { %731 = vrot.lane.b32.xlu1 %v729_v7, %s1611_s27 }
 0xd6d   :  { %v732_v10 = vpop.permute.xlu1 %731 }
 0xd6e   :  { %1432 = vmatmul.msk.f32.vlgmr.msra.gmra.mxu0 %vm96_vm1, %v732_v10  ;;  %1433 = vmatmul.msk.f32.vlgmr.msra.gmra.mxu1 %vm96_vm1, %v732_v10 }
 0xdeb   :  { %v772_v49 = vpop.f32.mrf.mxu1  ;;  %v752_v22 = vpop.f32.mrf.mxu0 }
 0xdec   :  { %v775_v14 = vadd.f32 %v1744_v9, %v772_v49 }
 0xdee   :  { %v776_v16 = vmax.f32 %v1746_v11, %v775_v14 }
 0xdf0   :  { %v777_v18 = vmin.f32 %v1749_v13, %v776_v16 }
 0xdf2   :  { %v778_v24 = vmul.f32 %v1429_v17, %v777_v18  ;;  %v801_v38 = vmul.f32 %v800_v35, %v777_v18 }
 0xdf4   :  { %v779_v28 = vadd.f32 %v1428_v19, %v778_v24 }
 0xdf6   :  { %787 = vperm.xlu0 %1486, %v779_v28   ;;  %782 = vperm.xlu2 %1496, %v779_v28  }
 0xdfe   :  { %1497 = vset.pattern.permute.xlu2 %v1609_v20 }
 0xe50   :  { %v783_v37 = vpop.permute.xlu2 %782 }
 0xe51   :  { %v785_v29 = vmul.f32 %v1797_v26, %v783_v37  ;;  %v807_v26 = vsub.f32 %v1427_v34, %v777_v18 }
 0xe53   :  { %v808_v42 = vand.u32 2147483647, %v807_v26 }
 0xe68   :  { %v788_v9 = vpop.permute.xlu0 %787 }
 0xe69   :  { %v790_v30 = vmul.f32 %v1802_v27, %v788_v9 }
 0xe6b   :  { %v791_v31 = vadd.f32 %v790_v30, %v785_v29 }
 0xe6d   :  { %v794_v33 = vadd.f32 %v1434_v40, %v791_v31 }
 0xe6f   :  { %v795_v36 = vmax.f32 %v1746_v11, %v794_v33  ;;  %v2114_v33 = vld [vmem:[%s2306_s10] ss:$0 sm:$0xff] }
 0xe71   :  { %v796_v27 = vmin.f32 %v1749_v13, %v795_v36  ;;  %v1441_v36 = vld [vmem:[%s2299_s3 + $0xa] sm:$0x3] }
 0xe73   :  { %v799_v53 = vmul.f32 %v1435_v32, %v796_v27  ;;  %v809_v41 = vsub.f32 %v1427_v34, %v796_v27  ;;  %v1440_v27 = vld [vmem:[%s2298_s2 + $0xa] sm:$0x3] }
 0xe75   :  { %v810_v43 = vand.u32 2147483647, %v809_v41  ;;  %v802_v44 = vadd.f32 %v801_v38, %v799_v53 }
 0xe77   :  { %v811_v45 = vadd.f32 %v810_v43, %v808_v42  ;;  %v803_v46 = vmax.f32 %v1746_v11, %v802_v44  ;;  %v2129_v43 = vld [vmem:[%s2307_s11] ss:$0 sm:$0xff] }
 0xe79   :  { %v804_v47 = vmin.f32 %v1749_v13, %v803_v46 }
 0xe7b   :  { %v805_v48 = vmul.f32 %v1429_v17, %v804_v47  ;;  %v812_v50 = vsub.f32 %v1427_v34, %v804_v47  ;;  %v1446_v47 = vld [vmem:[%s2303_s7 + $0xa] sm:$0x3] }
 0xe7d   :  { %v806_v12 = vadd.f32 %v1428_v19, %v805_v48  ;;  %v813_v51 = vand.u32 2147483647, %v812_v50  ;;  %v1447_v50 = vld [vmem:[%s2302_s6 + $0xa] sm:$0x3] }
 0xe7f   :  { %827 = vperm.xlu2 %1497, %v806_v12   ;;  %1438 = vst.msk [vmem:[%s2310_s14 + $0x8] sm:$0x3] %vm67_vm2, %v806_v12  ;;  %821 = vperm.xlu1 %1490, %v806_v12   ;;  %v814_v54 = vadd.f32 %v813_v51, %v811_v45  ;;  %v2135_v45 = vld [vmem:[%s2307_s11 + $0x1] ss:$0 sm:$0xff]  ;;  %v1439_v51 = vld [vmem:[%s2297_s1 + $0xa] sm:$0x3] }
 0xe81   :  { %v815_v56 = vmul.f32 %v1430_v52, %v814_v54  ;;  %v957_v52 = vsub.f32 1.0, %v1447_v50 }
 0xe83   :  { %v2089_v58 = vadd.f32 %v815_v56, %v2034_v39 }
 0xe87   :  { %1498 = vset.pattern.permute.xlu2 %v1608_v8 }
 0xed9   :  { %v828_v15 = vpop.permute.xlu2 %827 }
 0xeda   :  { %v830_v1 = vmul.f32 %v1844_v57, %v828_v15 }
 0xef1   :  { %v822_v60 = vpop.permute.xlu1 %821 }
 0xef2   :  { %v824_v0 = vmul.f32 %v1838_v55, %v822_v60 }
 0xef4   :  { %v825_v3 = vadd.f32 %v1436_v59, %v824_v0 }
 0xef6   :  { %v831_v21 = vadd.f32 %v830_v1, %v825_v3 }
 0xef8   :  { %v832_v4 = vadd.f32 %v831_v21, %v752_v22 }
 0xefa   :  { %1541 = vtanh.f32 %v832_v4  ;;  %v1437_v39 = vmul.f32 -1.442695, %v832_v4 }
 0xefc   :  { %1543 = vpow2.f32 %v1437_v39 }
 0xf00   :  { %v1542_v23 = vpop.eup %1541 }
 0xf01   :  { %855 = vrot.lane.b32.xlu0 %v1542_v23, %s1610_s25 }
 0xf02   :  { %v1544_v25 = vpop.eup %1543 }
 0xf03   :  { %v836_v61 = vadd.f32 1.0, %v1544_v25 }
 0xf05   :  { %1545 = vrcp.f32 %v836_v61  ;;  %v848_v10 = vand.u32 2147483648, %v836_v61  ;;  %vm842_vm7 = vweird.f32 %v836_v61  ;;  %v846_v49 = vand.u32 2147483647, %v836_v61 }
 0xf07   :  { %v849_v16 = vor.u32 1.1754944e-38, %v848_v10  ;;  %vm847_vm9 = vcmp.eq.f32.partialorder %v846_v49, 8.507059e+37  ;;  %v1448_v10 = vld [vmem:[%s2304_s8 + $0xa] sm:$0x3] }
 0xf09   :  { %883 = vrot.lane.b32.xlu0 %v1443_v63, %s1611_s27 }
 0xf0b   :  { %v1546_v55 = vpop.eup %1545 }
 0xf0c   :  { %v838_v2 = vmul.f32 %v1546_v55, %v836_v61  ;;  %vm843_vm6 = vweird.f32 %v1546_v55 }
 0xf0d   :  { %vm844_vm8 = vmor %vm842_vm7, %vm843_vm6 }
 0xf0e   :  { %v839_v5 = vsub.f32 1.0, %v838_v2 }
 0xf10   :  { %v840_v6 = vmul.f32 %v1546_v55, %v839_v5 }
 0xf12   :  { %v841_v7 = vadd.f32 %v1546_v55, %v840_v6 }
 0xf14   :  { %v845_v14 = vsel %vm844_vm8, %v1546_v55, %v841_v7  ;;  %v1442_v55 = vld [vmem:[%s2300_s4 + $0xa] sm:$0x3] }
 0xf15   :  { %v850_v18 = vsel %vm847_vm9, %v849_v16, %v845_v14  ;;  %v2168_v14 = vld [vmem:[%s2308_s12] ss:$0 sm:$0xff] }
 0xf16   :  { %v853_v24 = vmul.f32 %v850_v18, %v2049_v62 }
 0xf73   :  { %v856_v17 = vpop.permute.xlu0 %855 }
 0xf74   :  { %v858_v19 = vmul.f32 %v856_v17, %v850_v18 }
 0xf76   :  { %860 = vrot.lane.b32.xlu1 %v858_v19, %s1610_s25 }
 0xf7b   :  { %v884_v30 = vpop.permute.xlu0 %883 }
 0xfe8   :  { %v861_v28 = vpop.permute.xlu1 %860 }
 0xfe9   :  { %v2104_v37 = vadd.f32 %v861_v28, %v853_v24 }
 0xfeb   :  { %1547 = vtanh.f32 %v2104_v37 }
 0xff1   :  { %v1548_v9 = vpop.eup %1547 }
 0xff2   :  { %866 = vrot.lane.b32.xlu2 %v1548_v9, %s1610_s25 }
0x104c   :  { %v867_v29 = vpop.permute.xlu2 %866 }
0x104d   :  { %v869_v40 = vmul.f32 %v867_v29, %v850_v18 }
0x104f   :  { %v886_v31 = vmul.f32 %v884_v30, %v869_v40  ;;  %v1455_v40 = vld [vmem:[%s2301_s5 + $0xc] sm:$0x3] }
0x1051   :  { %888 = vrot.lane.b32.xlu1 %v886_v31, %s1611_s27 }
0x10c3   :  { %v889_v32 = vpop.permute.xlu1 %888 }
0x10c4   :  { %1444 = vmatmul.msk.f32.vlgmr.msra.gmra.mxu2 %vm96_vm1, %v889_v32  ;;  %1445 = vmatmul.msk.f32.vlgmr.msra.gmra.mxu3 %vm96_vm1, %v889_v32 }
0x1147   :  { %v929_v62 = vpop.f32.mrf.mxu3  ;;  %v909_v19 = vpop.f32.mrf.mxu2 }
0x1148   :  { %v932_v34 = vadd.f32 %v2114_v33, %v929_v62 }
0x114a   :  { %v933_v35 = vmax.f32 %v1746_v11, %v932_v34 }
0x114c   :  { %v934_v26 = vmin.f32 %v1749_v13, %v933_v35 }
0x114e   :  { %v935_v38 = vmul.f32 %v1441_v36, %v934_v26  ;;  %v964_v56 = vsub.f32 %v1439_v51, %v934_v26  ;;  %v958_v59 = vmul.f32 %v957_v52, %v934_v26 }
0x1150   :  { %v936_v53 = vadd.f32 %v1440_v27, %v935_v38  ;;  %v965_v1 = vand.u32 2147483647, %v964_v56 }
0x1152   :  { %944 = vperm.xlu0 %1486, %v936_v53   ;;  %939 = vperm.xlu2 %1498, %v936_v53  }
0x115a   :  { %1499 = vset.pattern.permute.xlu2 %v1609_v20 }
0x11ac   :  { %v940_v41 = vpop.permute.xlu2 %939 }
0x11ad   :  { %v942_v44 = vmul.f32 %v2129_v43, %v940_v41 }
0x11c4   :  { %v945_v42 = vpop.permute.xlu0 %944 }
0x11c5   :  { %v947_v46 = vmul.f32 %v2135_v45, %v945_v42 }
0x11c7   :  { %v948_v48 = vadd.f32 %v947_v46, %v942_v44 }
0x11c9   :  { %v951_v12 = vadd.f32 %v1446_v47, %v948_v48 }
0x11cb   :  { %v952_v54 = vmax.f32 %v1746_v11, %v951_v12 }
0x11cd   :  { %v953_v15 = vmin.f32 %v1749_v13, %v952_v54 }
0x11cf   :  { %v956_v60 = vmul.f32 %v1447_v50, %v953_v15  ;;  %v966_v0 = vsub.f32 %v1439_v51, %v953_v15  ;;  %v1453_v15 = vld [vmem:[%s2299_s3 + $0xc] sm:$0x3] }
0x11d1   :  { %v967_v3 = vand.u32 2147483647, %v966_v0  ;;  %v959_v21 = vadd.f32 %v958_v59, %v956_v60  ;;  %v1452_v60 = vld [vmem:[%s2298_s2 + $0xc] sm:$0x3] }
0x11d3   :  { %v960_v22 = vmax.f32 %v1746_v11, %v959_v21  ;;  %v968_v4 = vadd.f32 %v967_v3, %v965_v1 }
0x11d5   :  { %v961_v23 = vmin.f32 %v1749_v13, %v960_v22 }
0x11d7   :  { %v962_v39 = vmul.f32 %v1441_v36, %v961_v23  ;;  %v969_v25 = vsub.f32 %v1439_v51, %v961_v23  ;;  %v1458_v23 = vld [vmem:[%s2303_s7 + $0xc] sm:$0x3] }
0x11d9   :  { %v963_v61 = vadd.f32 %v1440_v27, %v962_v39  ;;  %v970_v63 = vand.u32 2147483647, %v969_v25  ;;  %v1459_v25 = vld [vmem:[%s2302_s6 + $0xc] sm:$0x3] }
0x11db   :  { %984 = vperm.xlu2 %1499, %v963_v61   ;;  %1450 = vst.msk [vmem:[%s2310_s14 + $0xa] sm:$0x3] %vm67_vm2, %v963_v61  ;;  %978 = vperm.xlu1 %1490, %v963_v61   ;;  %v971_v2 = vadd.f32 %v970_v63, %v968_v4  ;;  %v1451_v63 = vld [vmem:[%s2297_s1 + $0xc] sm:$0x3] }
0x11dd   :  { %v972_v5 = vmul.f32 %v1442_v55, %v971_v2  ;;  %v1114_v55 = vsub.f32 1.0, %v1459_v25 }
0x11df   :  { %v2159_v6 = vadd.f32 %v972_v5, %v2089_v58 }
0x11e3   :  { %1500 = vset.pattern.permute.xlu2 %v1608_v8 }
0x1235   :  { %v985_v7 = vpop.permute.xlu2 %984 }
0x1236   :  { %v987_v17 = vmul.f32 %v1844_v57, %v985_v7 }
0x124d   :  { %v979_v49 = vpop.permute.xlu1 %978 }
0x124e   :  { %v981_v16 = vmul.f32 %v2168_v14, %v979_v49 }
0x1250   :  { %v982_v18 = vadd.f32 %v1448_v10, %v981_v16 }
0x1252   :  { %v988_v58 = vadd.f32 %v987_v17, %v982_v18 }
0x1254   :  { %v989_v24 = vadd.f32 %v988_v58, %v909_v19 }
0x1256   :  { %1549 = vtanh.f32 %v989_v24  ;;  %v1449_v9 = vmul.f32 -1.442695, %v989_v24 }
0x1258   :  { %1551 = vpow2.f32 %v1449_v9 }
0x125c   :  { %v1550_v28 = vpop.eup %1549 }
0x125d   :  { %1012 = vrot.lane.b32.xlu0 %v1550_v28, %s1610_s25 }
0x125e   :  { %v1552_v29 = vpop.eup %1551 }
0x125f   :  { %v993_v30 = vadd.f32 1.0, %v1552_v29 }
0x1261   :  { %1553 = vrcp.f32 %v993_v30  ;;  %v1005_v35 = vand.u32 2147483648, %v993_v30  ;;  %vm999_vm11 = vweird.f32 %v993_v30  ;;  %v1003_v36 = vand.u32 2147483647, %v993_v30 }
0x1263   :  { %v1006_v27 = vor.u32 1.1754944e-38, %v1005_v35  ;;  %vm1004_vm13 = vcmp.eq.f32.partialorder %v1003_v36, 8.507059e+37  ;;  %v1460_v35 = vld [vmem:[%s2304_s8 + $0xc] sm:$0x3] }
0x1265   :  { %1040 = vrot.lane.b32.xlu0 %v1455_v40, %s1611_s27 }
0x1267   :  { %v1554_v57 = vpop.eup %1553 }
0x1268   :  { %v995_v31 = vmul.f32 %v1554_v57, %v993_v30  ;;  %vm1000_vm10 = vweird.f32 %v1554_v57 }
0x1269   :  { %vm1001_vm12 = vmor %vm999_vm11, %vm1000_vm10 }
0x126a   :  { %v996_v32 = vsub.f32 1.0, %v995_v31 }
0x126c   :  { %v997_v62 = vmul.f32 %v1554_v57, %v996_v32 }
0x126e   :  { %v998_v34 = vadd.f32 %v1554_v57, %v997_v62 }
0x1270   :  { %v1002_v26 = vsel %vm1001_vm12, %v1554_v57, %v998_v34  ;;  %v1454_v57 = vld [vmem:[%s2300_s4 + $0xc] sm:$0x3] }
0x1271   :  { %v1007_v53 = vsel %vm1004_vm13, %v1006_v27, %v1002_v26  ;;  %v2229_v27 = vld [vmem:[%s2308_s12 + $0x1] ss:$0 sm:$0xff] }
0x1272   :  { %v1010_v42 = vmul.f32 %v1007_v53, %v2104_v37 }
0x12cf   :  { %v1013_v38 = vpop.permute.xlu0 %1012 }
0x12d0   :  { %v1015_v41 = vmul.f32 %v1013_v38, %v1007_v53 }
0x12d2   :  { %1017 = vrot.lane.b32.xlu1 %v1015_v41, %s1610_s25 }
0x12d7   :  { %v1041_v50 = vpop.permute.xlu0 %1040 }
0x1344   :  { %v1018_v44 = vpop.permute.xlu1 %1017 }
0x1345   :  { %v2179_v46 = vadd.f32 %v1018_v44, %v1010_v42 }
0x1347   :  { %1555 = vtanh.f32 %v2179_v46 }
0x134d   :  { %v1556_v47 = vpop.eup %1555 }
0x134e   :  { %1023 = vrot.lane.b32.xlu2 %v1556_v47, %s1610_s25 }
0x13a8   :  { %v1024_v48 = vpop.permute.xlu2 %1023 }
0x13a9   :  { %v1026_v12 = vmul.f32 %v1024_v48, %v1007_v53 }
0x13ab   :  { %v1043_v51 = vmul.f32 %v1041_v50, %v1026_v12  ;;  %v1467_v50 = vld [vmem:[%s2301_s5 + $0xe] sm:$0x3] }
0x13ad   :  { %1045 = vrot.lane.b32.xlu1 %v1043_v51, %s1611_s27 }
0x141f   :  { %v1046_v52 = vpop.permute.xlu1 %1045 }
0x1420   :  { %1456 = vmatmul.msk.f32.vlgmr.msrb.gmra.mxu0 %vm96_vm1, %v1046_v52  ;;  %1457 = vmatmul.msk.f32.vlgmr.msrb.gmra.mxu1 %vm96_vm1, %v1046_v52 }
0x149d   :  { %v1086_v37 = vpop.f32.mrf.mxu1  ;;  %v1066_v41 = vpop.f32.mrf.mxu0 }
0x149e   :  { %v1089_v54 = vadd.f32 %v2114_v33, %v1086_v37 }
0x14a0   :  { %v1090_v56 = vmax.f32 %v1746_v11, %v1089_v54 }
0x14a2   :  { %v1091_v59 = vmin.f32 %v1749_v13, %v1090_v56 }
0x14a4   :  { %v1092_v0 = vmul.f32 %v1453_v15, %v1091_v59  ;;  %v1121_v5 = vsub.f32 %v1451_v63, %v1091_v59  ;;  %v1115_v10 = vmul.f32 %v1114_v55, %v1091_v59 }
0x14a6   :  { %v1093_v1 = vadd.f32 %v1452_v60, %v1092_v0  ;;  %v1122_v17 = vand.u32 2147483647, %v1121_v5 }
0x14a8   :  { %1101 = vperm.xlu0 %1486, %v1093_v1   ;;  %1096 = vperm.xlu2 %1500, %v1093_v1  }
0x14b0   :  { %1501 = vset.pattern.permute.xlu2 %v1609_v20 }
0x1502   :  { %v1097_v3 = vpop.permute.xlu2 %1096 }
0x1503   :  { %v1099_v22 = vmul.f32 %v2129_v43, %v1097_v3 }
0x151a   :  { %v1102_v21 = vpop.permute.xlu0 %1101 }
0x151b   :  { %v1104_v4 = vmul.f32 %v2135_v45, %v1102_v21 }
0x151d   :  { %v1105_v39 = vadd.f32 %v1104_v4, %v1099_v22 }
0x151f   :  { %v1108_v61 = vadd.f32 %v1458_v23, %v1105_v39 }
0x1521   :  { %v1109_v2 = vmax.f32 %v1746_v11, %v1108_v61 }
0x1523   :  { %v1110_v7 = vmin.f32 %v1749_v13, %v1109_v2 }
0x1525   :  { %v1113_v49 = vmul.f32 %v1459_v25, %v1110_v7  ;;  %v1123_v16 = vsub.f32 %v1451_v63, %v1110_v7  ;;  %v1465_v7 = vld [vmem:[%s2299_s3 + $0xe] sm:$0x3] }
0x1527   :  { %v1124_v18 = vand.u32 2147483647, %v1123_v16  ;;  %v1116_v58 = vadd.f32 %v1115_v10, %v1113_v49  ;;  %v1464_v49 = vld [vmem:[%s2298_s2 + $0xe] sm:$0x3] }
0x1529   :  { %v1117_v19 = vmax.f32 %v1746_v11, %v1116_v58  ;;  %v1125_v24 = vadd.f32 %v1124_v18, %v1122_v17 }
0x152b   :  { %v1118_v28 = vmin.f32 %v1749_v13, %v1117_v19 }
0x152d   :  { %v1119_v9 = vmul.f32 %v1453_v15, %v1118_v28  ;;  %v1126_v29 = vsub.f32 %v1451_v63, %v1118_v28 }
0x152f   :  { %v1120_v30 = vadd.f32 %v1452_v60, %v1119_v9  ;;  %v1127_v40 = vand.u32 2147483647, %v1126_v29  ;;  %v1471_v9 = vld [vmem:[%s2302_s6 + $0xe] sm:$0x3] }
0x1531   :  { %1141 = vperm.xlu2 %1501, %v1120_v30   ;;  %1462 = vst.msk [vmem:[%s2310_s14 + $0xc] sm:$0x3] %vm67_vm2, %v1120_v30  ;;  %1135 = vperm.xlu1 %1490, %v1120_v30   ;;  %v1128_v31 = vadd.f32 %v1127_v40, %v1125_v24  ;;  %v1470_v24 = vld [vmem:[%s2303_s7 + $0xe] sm:$0x3]  ;;  %v1271_v30 = vsub.f32 1.0, %v1471_v9 }
0x1533   :  { %v1129_v32 = vmul.f32 %v1454_v57, %v1128_v31 }
0x1535   :  { %v2219_v62 = vadd.f32 %v1129_v32, %v2159_v6 }
0x1539   :  { %1502 = vset.pattern.permute.xlu2 %v1608_v8 }
0x158b   :  { %v1142_v34 = vpop.permute.xlu2 %1141 }
0x158c   :  { %v1144_v38 = vmul.f32 %v2229_v27, %v1142_v34 }
0x15a3   :  { %v1136_v36 = vpop.permute.xlu1 %1135 }
0x15a4   :  { %v1138_v26 = vmul.f32 %v2168_v14, %v1136_v36 }
0x15a6   :  { %v1139_v53 = vadd.f32 %v1460_v35, %v1138_v26 }
0x15a8   :  { %v1145_v6 = vadd.f32 %v1144_v38, %v1139_v53 }
0x15aa   :  { %v1146_v42 = vadd.f32 %v1145_v6, %v1066_v41 }
0x15ac   :  { %1557 = vtanh.f32 %v1146_v42  ;;  %v1461_v44 = vmul.f32 -1.442695, %v1146_v42 }
0x15ae   :  { %1559 = vpow2.f32 %v1461_v44  ;;  %v1466_v44 = vld [vmem:[%s2300_s4 + $0xe] sm:$0x3] }
0x15b2   :  { %v1558_v8 = vpop.eup %1557 }
0x15b3   :  { %1169 = vrot.lane.b32.xlu0 %v1558_v8, %s1610_s25 }
0x15b4   :  { %v1560_v47 = vpop.eup %1559 }
0x15b5   :  { %v1150_v48 = vadd.f32 1.0, %v1560_v47 }
0x15b7   :  { %1561 = vrcp.f32 %v1150_v48  ;;  %v1162_v56 = vand.u32 2147483648, %v1150_v48  ;;  %vm1156_vm15 = vweird.f32 %v1150_v48  ;;  %v1160_v15 = vand.u32 2147483647, %v1150_v48 }
0x15b9   :  { %v1163_v60 = vor.u32 1.1754944e-38, %v1162_v56  ;;  %vm1161_vm4 = vcmp.eq.f32.partialorder %v1160_v15, 8.507059e+37 }
0x15bb   :  { %1197 = vrot.lane.b32.xlu0 %v1467_v50, %s1611_s27 }
0x15bd   :  { %v1562_v12 = vpop.eup %1561 }
0x15be   :  { %v1152_v51 = vmul.f32 %v1562_v12, %v1150_v48  ;;  %vm1157_vm14 = vweird.f32 %v1562_v12 }
0x15bf   :  { %vm1158_vm3 = vmor %vm1156_vm15, %vm1157_vm14 }
0x15c0   :  { %v1153_v52 = vsub.f32 1.0, %v1152_v51 }
0x15c2   :  { %v1154_v37 = vmul.f32 %v1562_v12, %v1153_v52 }
0x15c4   :  { %v1155_v54 = vadd.f32 %v1562_v12, %v1154_v37 }
0x15c6   :  { %v1159_v59 = vsel %vm1158_vm3, %v1562_v12, %v1155_v54  ;;  %v1472_v12 = vld [vmem:[%s2304_s8 + $0xe] sm:$0x3]  ;;  %s1612_s8 = smov 96  }
0x15c7   :  { %v1164_v1 = vsel %vm1161_vm4, %v1163_v60, %v1159_v59 }
0x15c8   :  { %v1167_v21 = vmul.f32 %v1164_v1, %v2179_v46 }
0x1625   :  { %v1170_v0 = vpop.permute.xlu0 %1169 }
0x1626   :  { %v1172_v3 = vmul.f32 %v1170_v0, %v1164_v1 }
0x1628   :  { %1174 = vrot.lane.b32.xlu1 %v1172_v3, %s1610_s25 }
0x162d   :  { %v1198_v25 = vpop.permute.xlu0 %1197 }
0x169a   :  { %v1175_v22 = vpop.permute.xlu1 %1174 }
0x169b   :  { %v2239_v4 = vadd.f32 %v1175_v22, %v1167_v21 }
0x169d   :  { %1563 = vtanh.f32 %v2239_v4 }
0x16a3   :  { %v1564_v23 = vpop.eup %1563 }
0x16a4   :  { %1180 = vrot.lane.b32.xlu2 %v1564_v23, %s1610_s25 }
0x16fe   :  { %v1181_v39 = vpop.permute.xlu2 %1180 }
0x16ff   :  { %v1183_v61 = vmul.f32 %v1181_v39, %v1164_v1 }
0x1701   :  { %v1200_v63 = vmul.f32 %v1198_v25, %v1183_v61 }
0x1703   :  { %1202 = vrot.lane.b32.xlu1 %v1200_v63, %s1611_s27 }
0x1775   :  { %v1203_v55 = vpop.permute.xlu1 %1202 }
0x1776   :  { %1468 = vmatmul.msk.f32.vlgmr.msrb.gmra.mxu2 %vm96_vm1, %v1203_v55  ;;  %1469 = vmatmul.msk.f32.vlgmr.msrb.gmra.mxu3 %vm96_vm1, %v1203_v55 }
0x17f9   :  { %v1243_v46 = vpop.f32.mrf.mxu3  ;;  %v1223_v15 = vpop.f32.mrf.mxu2 }
0x17fa   :  { %v1246_v2 = vadd.f32 %v2114_v33, %v1243_v46 }
0x17fc   :  { %v1247_v5 = vmax.f32 %v1746_v11, %v1246_v2 }
0x17fe   :  { %v1248_v10 = vmin.f32 %v1749_v13, %v1247_v5 }
0x1800   :  { %v1249_v16 = vmul.f32 %v1465_v7, %v1248_v10  ;;  %v1272_v57 = vmul.f32 %v1271_v30, %v1248_v10 }
0x1802   :  { %v1250_v17 = vadd.f32 %v1464_v49, %v1249_v16 }
0x1804   :  { %1258 = vperm.xlu0 %1486, %v1250_v17   ;;  %1253 = vperm.xlu2 %1502, %v1250_v17  }
0x180c   :  { %1503 = vset.pattern.permute.xlu2 %v1609_v20 }
0x185e   :  { %v1254_v18 = vpop.permute.xlu2 %1253 }
0x185f   :  { %v1256_v58 = vmul.f32 %v2129_v43, %v1254_v18  ;;  %v1463_v43 = vld [vmem:[%s2297_s1 + $0xe] sm:$0x3] }
0x1860   :  { %v1278_v34 = vsub.f32 %v1463_v43, %v1248_v10 }
0x1862   :  { %v1279_v38 = vand.u32 2147483647, %v1278_v34 }
0x1876   :  { %v1259_v33 = vpop.permute.xlu0 %1258 }
0x1877   :  { %v1261_v19 = vmul.f32 %v2135_v45, %v1259_v33 }
0x1879   :  { %v1262_v28 = vadd.f32 %v1261_v19, %v1256_v58 }
0x187b   :  { %v1265_v29 = vadd.f32 %v1470_v24, %v1262_v28 }
0x187d   :  { %v1266_v40 = vmax.f32 %v1746_v11, %v1265_v29 }
0x187f   :  { %v1267_v20 = vmin.f32 %v1749_v13, %v1266_v40 }
0x1881   :  { %v1270_v31 = vmul.f32 %v1471_v9, %v1267_v20  ;;  %v1280_v45 = vsub.f32 %v1463_v43, %v1267_v20 }
0x1883   :  { %v1273_v32 = vadd.f32 %v1272_v57, %v1270_v31  ;;  %v1281_v26 = vand.u32 2147483647, %v1280_v45 }
0x1885   :  { %v1274_v35 = vmax.f32 %v1746_v11, %v1273_v32  ;;  %v1282_v42 = vadd.f32 %v1281_v26, %v1279_v38 }
0x1887   :  { %v1275_v36 = vmin.f32 %v1749_v13, %v1274_v35 }
0x1889   :  { %v1276_v53 = vmul.f32 %v1465_v7, %v1275_v36  ;;  %v1283_v6 = vsub.f32 %v1463_v43, %v1275_v36 }
0x188b   :  { %v1277_v41 = vadd.f32 %v1464_v49, %v1276_v53  ;;  %v1284_v8 = vand.u32 2147483647, %v1283_v6 }
0x188d   :  { %1298 = vperm.xlu2 %1503, %v1277_v41   ;;  %1474 = vst.msk [vmem:[%s2310_s14 + $0xe] sm:$0x3] %vm67_vm2, %v1277_v41  ;;  %1292 = vperm.xlu1 %1490, %v1277_v41   ;;  %v1285_v11 = vadd.f32 %v1284_v8, %v1282_v42 }
0x188f   :  { %v1286_v13 = vmul.f32 %v1466_v44, %v1285_v11 }
0x1891   :  { %v1287_v47 = vadd.f32 %v1286_v13, %v2219_v62 }
0x1893   :  { %1354 = vst.msk [vmem:[#allocation4] sm:$0x3] %vm67_vm2, %v1287_v47  ;;  %v1355_v48 = vsel %vm67_vm2, %v1287_v47, 0.0 }
0x18b6   :  { %1356 = vadd.xlane.f32.xlu2 %v1355_v48 }
0x18e7   :  { %v1299_v50 = vpop.permute.xlu2 %1298 }
0x18e8   :  { %v1301_v37 = vmul.f32 %v2229_v27, %v1299_v50 }
0x18ff   :  { %v1293_v51 = vpop.permute.xlu1 %1292 }
0x1900   :  { %v1295_v52 = vmul.f32 %v2168_v14, %v1293_v51 }
0x1902   :  { %v1296_v54 = vadd.f32 %v1472_v12, %v1295_v52 }
0x1904   :  { %v1302_v56 = vadd.f32 %v1301_v37, %v1296_v54 }
0x1906   :  { %v1303_v59 = vadd.f32 %v1302_v56, %v1223_v15 }
0x1908   :  { %1565 = vtanh.f32 %v1303_v59  ;;  %v1473_v39 = vmul.f32 -1.442695, %v1303_v59 }
0x190a   :  { %1567 = vpow2.f32 %v1473_v39 }
0x190e   :  { %v1566_v62 = vpop.eup %1565 }
0x190f   :  { %1326 = vrot.lane.b32.xlu0 %v1566_v62, %s1610_s25 }
0x1910   :  { %v1568_v14 = vpop.eup %1567 }
0x1911   :  { %v1307_v27 = vadd.f32 1.0, %v1568_v14 }
0x1913   :  { %1569 = vrcp.f32 %v1307_v27  ;;  %v1319_v2 = vand.u32 2147483648, %v1307_v27  ;;  %vm1313_vm2 = vweird.f32 %v1307_v27  ;;  %v1317_v5 = vand.u32 2147483647, %v1307_v27 }
0x1915   :  { %v1320_v10 = vor.u32 1.1754944e-38, %v1319_v2  ;;  %vm1318_vm6 = vcmp.eq.f32.partialorder %v1317_v5, 8.507059e+37 }
0x1919   :  { %v1570_v25 = vpop.eup %1569 }
0x191a   :  { %v1309_v61 = vmul.f32 %v1570_v25, %v1307_v27  ;;  %vm1314_vm1 = vweird.f32 %v1570_v25 }
0x191b   :  { %vm1315_vm5 = vmor %vm1313_vm2, %vm1314_vm1 }
0x191c   :  { %v1310_v63 = vsub.f32 1.0, %v1309_v61 }
0x191e   :  { %v1311_v55 = vmul.f32 %v1570_v25, %v1310_v63 }
0x1920   :  { %v1312_v46 = vadd.f32 %v1570_v25, %v1311_v55 }
0x1922   :  { %v1316_v7 = vsel %vm1315_vm5, %v1570_v25, %v1312_v46 }
0x1923   :  { %v1321_v16 = vsel %vm1318_vm6, %v1320_v10, %v1316_v7 }
0x1924   :  { %v1324_v18 = vmul.f32 %v1321_v16, %v2239_v4 }
0x1929   :  { %v1357_v60 = vpop.xlane.xlu2 %1356 }
0x192a   :  { %v1358_v0 = vrot.slane %v1357_v60, 4 }
0x192c   :  { %v1359_v1 = vadd.f32 %v1358_v0, %v1357_v60 }
0x192e   :  { %v1360_v3 = vrot.slane %v1359_v1, 2 }
0x1930   :  { %v1361_v21 = vadd.f32 %v1360_v3, %v1359_v1 }
0x1932   :  { %v1362_v22 = vrot.slane %v1361_v21, 1 }
0x1934   :  { %v1363_v23 = vadd.f32 %v1362_v22, %v1361_v21 }
0x1936   :  { %1475 = vpush %v1363_v23 }
0x1967   :  { %s1476_s4 = spop %1475 }
0x1968   :  { %1366 = sst [smem:[#allocation8]] %s1476_s4 }
0x1969   :  { %1375 = dma.smem_to_hbm %s1613_s24, 16, %s1373_s23, [#allocation6]  }
0x1981   :  { %v1327_v49 = vpop.permute.xlu0 %1326 }
0x1982   :  { %v1329_v17 = vmul.f32 %v1327_v49, %v1321_v16 }
0x1984   :  { %1331 = vrot.lane.b32.xlu1 %v1329_v17, %s1610_s25 }
0x19f6   :  { %v1332_v33 = vpop.permute.xlu1 %1331 }
0x19f7   :  { %v1334_v58 = vadd.f32 %v1332_v33, %v1324_v18 }
0x19f9   :  { %1571 = vtanh.f32 %v1334_v58 }
0x19ff   :  { %v1572_v19 = vpop.eup %1571 }
0x1a00   :  { %1337 = vrot.lane.b32.xlu0 %v1572_v19, %s1610_s25 }
0x1a08   :  { %1350 = vrot.lane.b32.xlu0 %v1334_v58, %s1612_s8 }
0x1a72   :  { %v1338_v24 = vpop.permute.xlu0 %1337 }
0x1a73   :  { %v1340_v28 = vmul.f32 %v1338_v24, %v1321_v16 }
0x1a75   :  { %1344 = vrot.lane.b32.xlu1 %v1340_v28, %s1611_s27 }
0x1a7a   :  { %v1351_v4 = vpop.permute.xlu0 %1350 }
0x1a7b   :  { %1353 = vst.msk [vmem:[#allocation3] sm:$0x3] %vm64_vm0, %v1351_v4 }
0x1ae7   :  { %v1345_v9 = vpop.permute.xlu1 %1344 }
0x1ae8   :  { %1348 = vst.msk [vmem:[#allocation2] sm:$0x3] %vm64_vm0, %v1345_v9 }
0x1ae9   :  { %1604 = dma.done.wait [#allocation6], 16  }
0x1aea   :  { %1605 = vsyncadd [#allocation6], 4294967280 }
0x1aeb   :  { %1384 = sfence }
0x1aec   :  { %1385 = vsyncpa [#allocation6], 1 }
0x1aed   :  { %1386 = vsyncpa [#allocation7], 1 }

</bundles_post_ra>
